<compile_context>
chip_gen: v7x
topology: tpu7x:2x2x1
jax: 0.10.0
libtpu: 0.0.40
codegen_flags: <defaults>
</compile_context>

<pallas_src>
import jax
import jax.numpy as jnp
from jax.experimental import pallas as pl
from jax.experimental.pallas import tpu as pltpu


# ----------------------------- Pallas kernel -------------------------------

def _fused_cef_kernel(x_ref, wb_ref, bb_ref, wc_ref, bc_ref,
                      w1_ref, scale_ref, shift_ref, w2_ref, b2_ref,
                      cls_ref, head_ref):
    """One-shot fused forward:
         feat = x @ W_back + b_back                      (backbone stand-ins, fused)
         cls  = feat @ W_cls(+pad) + b_cls               (padded to 128 lanes)
         h    = relu((feat @ W_fc1) * bn_scale + bn_shift)   (fc1 bias folded in)
         head = h @ W_fc2 + b_fc2
       All matmuls are bf16 x bf16 -> f32 accumulation on the MXU; BN/ReLU in f32.
       `feat` lives only in vregs/VMEM — never written back to HBM."""
    feat = (jnp.dot(x_ref[...], wb_ref[...],
                    preferred_element_type=jnp.float32)
            + bb_ref[...])
    feat_bf = feat.astype(jnp.bfloat16)

    # cls linear (output lanes padded to 128; real 7 columns sliced outside)
    cls_ref[...] = (jnp.dot(feat_bf, wc_ref[...],
                            preferred_element_type=jnp.float32)
                    + bc_ref[...]).astype(cls_ref.dtype)

    # MLP head: fc1 -> BatchNorm1d(eval, folded) -> ReLU -> fc2
    h = jnp.dot(feat_bf, w1_ref[...], preferred_element_type=jnp.float32)
    h = jnp.maximum(h * scale_ref[...] + shift_ref[...], 0.0)   # f32 VPU path
    head_ref[...] = (jnp.dot(h.astype(jnp.bfloat16), w2_ref[...],
                             preferred_element_type=jnp.float32)
                     + b2_ref[...]).astype(head_ref.dtype)


# ------------------------------ wrapper -------------------------------------

def pallas_cef_fused(x_flat, params):
    """x_flat: (M, K) bf16 with M a multiple of 8. Returns (cls_pad, head) for
    all M rows; caller slices the a/b/c row ranges and the 7 real cls lanes."""
    M, K = x_flat.shape
    L = params["w_back"].shape[1]          # lengths
    NC = params["cls_w_pad"].shape[1]      # padded cls lanes (128)
    Hh = params["fc1_w"].shape[1]          # hidden (2048)

    full = lambda shape: pl.BlockSpec(shape, lambda i: tuple(0 for _ in shape))

    return pl.pallas_call(
        _fused_cef_kernel,
        out_shape=(jax.ShapeDtypeStruct((M, NC), jnp.float32),
                   jax.ShapeDtypeStruct((M, L), jnp.float32)),
        grid=(1,),
        in_specs=[
            full((M, K)),        # x_flat (bf16)
            full((K, L)),        # fused backbone weight (bf16)
            full((1, L)),        # fused backbone bias (f32)
            full((L, NC)),       # cls weight, padded (bf16)
            full((1, NC)),       # cls bias, padded (f32)
            full((L, Hh)),       # fc1 weight (bf16)
            full((1, Hh)),       # BN scale (f32)
            full((1, Hh)),       # BN shift + folded fc1 bias (f32)
            full((Hh, L)),       # fc2 weight (bf16)
            full((1, L)),        # fc2 bias (f32)
        ],
        out_specs=(full((M, NC)), full((M, L))),
        compiler_params=pltpu.CompilerParams(
            dimension_semantics=("arbitrary",),
            vmem_limit_bytes=32 * 1024 * 1024),
    )(x_flat, params["w_back"], params["b_back"],
      params["cls_w_pad"], params["cls_b_pad"],
      params["fc1_w"], params["bn_scale"], params["bn_shift"],
      params["fc2_w"], params["fc2_b"])


# ------------------------------ model ---------------------------------------

def make_params(lengths, hidden=2048, in_flat=3 * 16 * 16, cls_pad=128):
    half = lengths // 2

    def w(key, shape, scale=0.02):
        return scale * jax.random.normal(key, shape, dtype=jnp.float32)

    ks = jax.random.split(jax.random.PRNGKey(42), 12)

    # stand-in backbones (fused by linearity -> one weight / one bias)
    poster_w = w(ks[0], (in_flat, half)); poster_b = w(ks[1], (1, half), 0.01)
    r1_w = w(ks[2], (in_flat, half));     r1_b = w(ks[3], (1, half), 0.01)
    r2_w = w(ks[4], (in_flat, half));     r2_b = w(ks[5], (1, half), 0.01)
    w_back = jnp.concatenate([poster_w, (r1_w + r2_w) / 2.0], axis=1)
    b_back = jnp.concatenate([poster_b, (r1_b + r2_b) / 2.0], axis=1)

    # cls = Linear(lengths, 7), padded to 128 output lanes (slice [:, :7] outside)
    cls_w = w(ks[6], (lengths, 7)); cls_b = w(ks[7], (1, 7), 0.01)
    cls_w_pad = jnp.zeros((lengths, cls_pad), jnp.float32).at[:, :7].set(cls_w)
    cls_b_pad = jnp.zeros((1, cls_pad), jnp.float32).at[:, :7].set(cls_b)

    # head = MLP(lengths, hidden, lengths); Dropout = identity (eval mode)
    fc1_w = w(ks[8], (lengths, hidden)); fc1_b = w(ks[9], (1, hidden), 0.01)
    fc2_w = w(ks[10], (hidden, lengths)); fc2_b = w(ks[11], (1, lengths), 0.01)

    # BatchNorm1d(hidden) eval-mode defaults: gamma=1, beta=0, mean=0, var=1
    gamma = jnp.ones((1, hidden), jnp.float32)
    beta = jnp.zeros((1, hidden), jnp.float32)
    running_mean = jnp.zeros((1, hidden), jnp.float32)
    running_var = jnp.ones((1, hidden), jnp.float32)
    eps = 1e-5
    bn_scale = gamma / jnp.sqrt(running_var + eps)
    # fold fc1 bias into the BN shift: (h+b1)*s + t == h*s + (t + b1*s)
    bn_shift = (beta - running_mean * bn_scale) + fc1_b * bn_scale

    return {
        "w_back": w_back.astype(jnp.bfloat16), "b_back": b_back,
        "cls_w_pad": cls_w_pad.astype(jnp.bfloat16), "cls_b_pad": cls_b_pad,
        "fc1_w": fc1_w.astype(jnp.bfloat16),
        "fc2_w": fc2_w.astype(jnp.bfloat16), "fc2_b": fc2_b,
        "bn_scale": bn_scale, "bn_shift": bn_shift,
    }


def old_cef_forward(params, x):
    """x: (B, C, H, W) float32 (NCHW, like PyTorch). Returns (cls(a), head(b), head(c))."""
    B = x.shape[0]
    # flatten NCHW image for the stand-in backbones, cast once to bf16,
    # pad batch to a multiple of 8 so every output store is full-sublane.
    x_flat = x.reshape(B, -1).astype(jnp.bfloat16)
    M_pad = ((B + 7) // 8) * 8
    if M_pad != B:
        x_flat = jnp.pad(x_flat, ((0, M_pad - B), (0, 0)))

    # single fused launch: padded cls logits + head outputs for all rows.
    cls_all, head_all = pallas_cef_fused(x_flat, params)

    i1 = B // 3
    i2 = B // 3 * 2
    out_a = cls_all[:i1, :7]
    out_b = head_all[i1:i2, :]
    out_c = head_all[i2:B, :]
    return out_a, out_b, out_c


# ------------------------------ reference (for checking) --------------------

def reference_forward(params, x):
    B = x.shape[0]
    x_flat = x.reshape(B, -1)
    feat = x_flat @ params["w_back"].astype(jnp.float32) + params["b_back"]
    i1, i2 = B // 3, B // 3 * 2
    out_a = (feat[:i1] @ params["cls_w_pad"].astype(jnp.float32)[:, :7]
             + params["cls_b_pad"][:, :7])
    bc = feat[i1:]
    h = bc @ params["fc1_w"].astype(jnp.float32)
    h = jnp.maximum(h * params["bn_scale"] + params["bn_shift"], 0.0)
    out = h @ params["fc2_w"].astype(jnp.float32) + params["fc2_b"]
    return out_a, out[:i2 - i1], out[i2 - i1:]


# ------------------------------ main -----------------------------------------

if __name__ == "__main__":
    B, C, H, W = 6, 3, 16, 16          # B splits into 3 chunks of 2
    lengths = 256                      # feat1 (128) + feat2 (128)

    key = jax.random.PRNGKey(0)
    x = jax.random.normal(key, (B, C, H, W), dtype=jnp.float32)

    params = make_params(lengths, hidden=2048, in_flat=C * H * W)

    cls_out, head_b, head_c = jax.jit(old_cef_forward)(params, x)
    jax.block_until_ready((cls_out, head_b, head_c))

    assert cls_out.shape == (B // 3, 7)
    assert head_b.shape == (B // 3, lengths)
    assert head_c.shape == (B - 2 * (B // 3), lengths)

    ref_a, ref_b, ref_c = reference_forward(params, x)
    assert jnp.all(jnp.isfinite(cls_out)) and jnp.all(jnp.isfinite(head_b))
    assert jnp.allclose(cls_out, ref_a, atol=5e-2, rtol=5e-2)
    assert jnp.allclose(head_b, ref_b, atol=5e-2, rtol=5e-2)
    assert jnp.allclose(head_c, ref_c, atol=5e-2, rtol=5e-2)

    print("KERNEL_OK")
</pallas_src>

<mosaic_0001>
module attributes {stable_mosaic.version = 11 : i64} {
  func.func @_fused_cef_kernel(%arg0: i32, %arg1: memref<8x768xbf16, #tpu.memory_space<vmem>>, %arg2: memref<768x256xbf16, #tpu.memory_space<vmem>>, %arg3: memref<1x256xf32, #tpu.memory_space<vmem>>, %arg4: memref<256x128xbf16, #tpu.memory_space<vmem>>, %arg5: memref<1x128xf32, #tpu.memory_space<vmem>>, %arg6: memref<256x2048xbf16, #tpu.memory_space<vmem>>, %arg7: memref<1x2048xf32, #tpu.memory_space<vmem>>, %arg8: memref<1x2048xf32, #tpu.memory_space<vmem>>, %arg9: memref<2048x256xbf16, #tpu.memory_space<vmem>>, %arg10: memref<1x256xf32, #tpu.memory_space<vmem>>, %arg11: memref<8x128xf32, #tpu.memory_space<vmem>>, %arg12: memref<8x256xf32, #tpu.memory_space<vmem>>) attributes {dimension_semantics = [#tpu.dimension_semantics<arbitrary>], iteration_bounds = array<i64: 1>, scalar_prefetch = 0 : i64, scratch_operands = 0 : i64, tpu.core_type = #tpu.core_type<tc>, window_params = [{pipeline_mode = #tpu.pipeline_mode<synchronous>, transform_indices = @transform_0, window_bounds = array<i64: 8, 768>}, {pipeline_mode = #tpu.pipeline_mode<synchronous>, transform_indices = @transform_1, window_bounds = array<i64: 768, 256>}, {pipeline_mode = #tpu.pipeline_mode<synchronous>, transform_indices = @transform_2, window_bounds = array<i64: 1, 256>}, {pipeline_mode = #tpu.pipeline_mode<synchronous>, transform_indices = @transform_3, window_bounds = array<i64: 256, 128>}, {pipeline_mode = #tpu.pipeline_mode<synchronous>, transform_indices = @transform_4, window_bounds = array<i64: 1, 128>}, {pipeline_mode = #tpu.pipeline_mode<synchronous>, transform_indices = @transform_5, window_bounds = array<i64: 256, 2048>}, {pipeline_mode = #tpu.pipeline_mode<synchronous>, transform_indices = @transform_6, window_bounds = array<i64: 1, 2048>}, {pipeline_mode = #tpu.pipeline_mode<synchronous>, transform_indices = @transform_7, window_bounds = array<i64: 1, 2048>}, {pipeline_mode = #tpu.pipeline_mode<synchronous>, transform_indices = @transform_8, window_bounds = array<i64: 2048, 256>}, {pipeline_mode = #tpu.pipeline_mode<synchronous>, transform_indices = @transform_9, window_bounds = array<i64: 1, 256>}, {pipeline_mode = #tpu.pipeline_mode<synchronous>, transform_indices = @transform_10, window_bounds = array<i64: 8, 128>}, {pipeline_mode = #tpu.pipeline_mode<synchronous>, transform_indices = @transform_11, window_bounds = array<i64: 8, 256>}]} {
    %c0 = arith.constant 0 : index
    %c0_0 = arith.constant 0 : index
    %0 = vector.load %arg1[%c0, %c0_0] : memref<8x768xbf16, #tpu.memory_space<vmem>>, vector<8x768xbf16>
    %c0_1 = arith.constant 0 : index
    %c0_2 = arith.constant 0 : index
    %1 = vector.load %arg2[%c0_1, %c0_2] : memref<768x256xbf16, #tpu.memory_space<vmem>>, vector<768x256xbf16>
    %cst = arith.constant dense<0.000000e+00> : vector<8x256xf32>
    %2 = tpu.matmul %0, %1, %cst {dimension_numbers = #tpu.dot_dimension_numbers<[1], [0], [0], [1], [0, 0, 1, 1], [], []>} : vector<8x768xbf16>, vector<768x256xbf16>, vector<8x256xf32> -> vector<8x256xf32>
    %c0_3 = arith.constant 0 : index
    %c0_4 = arith.constant 0 : index
    %3 = vector.load %arg3[%c0_3, %c0_4] : memref<1x256xf32, #tpu.memory_space<vmem>>, vector<1x256xf32>
    %4 = vector.broadcast %3 : vector<1x256xf32> to vector<8x256xf32>
    %5 = arith.addf %2, %4 : vector<8x256xf32>
    %6 = arith.truncf %5 : vector<8x256xf32> to vector<8x256xbf16>
    %c0_5 = arith.constant 0 : index
    %c0_6 = arith.constant 0 : index
    %7 = vector.load %arg4[%c0_5, %c0_6] : memref<256x128xbf16, #tpu.memory_space<vmem>>, vector<256x128xbf16>
    %cst_7 = arith.constant dense<0.000000e+00> : vector<8x128xf32>
    %8 = tpu.matmul %6, %7, %cst_7 {dimension_numbers = #tpu.dot_dimension_numbers<[1], [0], [0], [1], [0, 0, 1, 1], [], []>} : vector<8x256xbf16>, vector<256x128xbf16>, vector<8x128xf32> -> vector<8x128xf32>
    %c0_8 = arith.constant 0 : index
    %c0_9 = arith.constant 0 : index
    %9 = vector.load %arg5[%c0_8, %c0_9] : memref<1x128xf32, #tpu.memory_space<vmem>>, vector<1x128xf32>
    %10 = vector.broadcast %9 : vector<1x128xf32> to vector<8x128xf32>
    %11 = arith.addf %8, %10 : vector<8x128xf32>
    %c0_10 = arith.constant 0 : index
    %c0_11 = arith.constant 0 : index
    %12 = vector.load %arg11[%c0_10, %c0_11] : memref<8x128xf32, #tpu.memory_space<vmem>>, vector<8x128xf32>
    tpu.vector_store %arg11[%c0_10, %c0_11], %11 {strides = array<i32>} : memref<8x128xf32, #tpu.memory_space<vmem>>, vector<8x128xf32>,
    %c0_12 = arith.constant 0 : index
    %c0_13 = arith.constant 0 : index
    %13 = vector.load %arg6[%c0_12, %c0_13] : memref<256x2048xbf16, #tpu.memory_space<vmem>>, vector<256x2048xbf16>
    %cst_14 = arith.constant dense<0.000000e+00> : vector<8x2048xf32>
    %14 = tpu.matmul %6, %13, %cst_14 {dimension_numbers = #tpu.dot_dimension_numbers<[1], [0], [0], [1], [0, 0, 1, 1], [], []>} : vector<8x256xbf16>, vector<256x2048xbf16>, vector<8x2048xf32> -> vector<8x2048xf32>
    %c0_15 = arith.constant 0 : index
    %c0_16 = arith.constant 0 : index
    %15 = vector.load %arg7[%c0_15, %c0_16] : memref<1x2048xf32, #tpu.memory_space<vmem>>, vector<1x2048xf32>
    %16 = vector.broadcast %15 : vector<1x2048xf32> to vector<8x2048xf32>
    %17 = arith.mulf %14, %16 : vector<8x2048xf32>
    %c0_17 = arith.constant 0 : index
    %c0_18 = arith.constant 0 : index
    %18 = vector.load %arg8[%c0_17, %c0_18] : memref<1x2048xf32, #tpu.memory_space<vmem>>, vector<1x2048xf32>
    %19 = vector.broadcast %18 : vector<1x2048xf32> to vector<8x2048xf32>
    %20 = arith.addf %17, %19 : vector<8x2048xf32>
    %cst_19 = arith.constant 0.000000e+00 : f32
    %21 = vector.broadcast %cst_19 : f32 to vector<8x2048xf32>
    %22 = arith.maximumf %20, %21 : vector<8x2048xf32>
    %23 = arith.truncf %22 : vector<8x2048xf32> to vector<8x2048xbf16>
    %c0_20 = arith.constant 0 : index
    %c0_21 = arith.constant 0 : index
    %24 = vector.load %arg9[%c0_20, %c0_21] : memref<2048x256xbf16, #tpu.memory_space<vmem>>, vector<2048x256xbf16>
    %cst_22 = arith.constant dense<0.000000e+00> : vector<8x256xf32>
    %25 = tpu.matmul %23, %24, %cst_22 {dimension_numbers = #tpu.dot_dimension_numbers<[1], [0], [0], [1], [0, 0, 1, 1], [], []>} : vector<8x2048xbf16>, vector<2048x256xbf16>, vector<8x256xf32> -> vector<8x256xf32>
    %c0_23 = arith.constant 0 : index
    %c0_24 = arith.constant 0 : index
    %26 = vector.load %arg10[%c0_23, %c0_24] : memref<1x256xf32, #tpu.memory_space<vmem>>, vector<1x256xf32>
    %27 = vector.broadcast %26 : vector<1x256xf32> to vector<8x256xf32>
    %28 = arith.addf %25, %27 : vector<8x256xf32>
    %c0_25 = arith.constant 0 : index
    %c0_26 = arith.constant 0 : index
    %29 = vector.load %arg12[%c0_25, %c0_26] : memref<8x256xf32, #tpu.memory_space<vmem>>, vector<8x256xf32>
    tpu.vector_store %arg12[%c0_25, %c0_26], %28 {strides = array<i32>} : memref<8x256xf32, #tpu.memory_space<vmem>>, vector<8x256xf32>,
    return
  }
  func.func @transform_0(%arg0: i32) -> (i32, i32) {
    %c0_i32 = arith.constant 0 : i32
    %c0_i32_0 = arith.constant 0 : i32
    %c0_i32_1 = arith.constant 0 : i32
    return %c0_i32, %c0_i32_0 : i32, i32
  }
  func.func @transform_1(%arg0: i32) -> (i32, i32) {
    %c0_i32 = arith.constant 0 : i32
    %c0_i32_0 = arith.constant 0 : i32
    %c0_i32_1 = arith.constant 0 : i32
    return %c0_i32, %c0_i32_0 : i32, i32
  }
  func.func @transform_2(%arg0: i32) -> (i32, i32) {
    %c0_i32 = arith.constant 0 : i32
    %c0_i32_0 = arith.constant 0 : i32
    %c0_i32_1 = arith.constant 0 : i32
    return %c0_i32, %c0_i32_0 : i32, i32
  }
  func.func @transform_3(%arg0: i32) -> (i32, i32) {
    %c0_i32 = arith.constant 0 : i32
    %c0_i32_0 = arith.constant 0 : i32
    %c0_i32_1 = arith.constant 0 : i32
    return %c0_i32, %c0_i32_0 : i32, i32
  }
  func.func @transform_4(%arg0: i32) -> (i32, i32) {
    %c0_i32 = arith.constant 0 : i32
    %c0_i32_0 = arith.constant 0 : i32
    %c0_i32_1 = arith.constant 0 : i32
    return %c0_i32, %c0_i32_0 : i32, i32
  }
  func.func @transform_5(%arg0: i32) -> (i32, i32) {
    %c0_i32 = arith.constant 0 : i32
    %c0_i32_0 = arith.constant 0 : i32
    %c0_i32_1 = arith.constant 0 : i32
    return %c0_i32, %c0_i32_0 : i32, i32
  }
  func.func @transform_6(%arg0: i32) -> (i32, i32) {
    %c0_i32 = arith.constant 0 : i32
    %c0_i32_0 = arith.constant 0 : i32
    %c0_i32_1 = arith.constant 0 : i32
    return %c0_i32, %c0_i32_0 : i32, i32
  }
  func.func @transform_7(%arg0: i32) -> (i32, i32) {
    %c0_i32 = arith.constant 0 : i32
    %c0_i32_0 = arith.constant 0 : i32
    %c0_i32_1 = arith.constant 0 : i32
    return %c0_i32, %c0_i32_0 : i32, i32
  }
  func.func @transform_8(%arg0: i32) -> (i32, i32) {
    %c0_i32 = arith.constant 0 : i32
    %c0_i32_0 = arith.constant 0 : i32
    %c0_i32_1 = arith.constant 0 : i32
    return %c0_i32, %c0_i32_0 : i32, i32
  }
  func.func @transform_9(%arg0: i32) -> (i32, i32) {
    %c0_i32 = arith.constant 0 : i32
    %c0_i32_0 = arith.constant 0 : i32
    %c0_i32_1 = arith.constant 0 : i32
    return %c0_i32, %c0_i32_0 : i32, i32
  }
  func.func @transform_10(%arg0: i32) -> (i32, i32) {
    %c0_i32 = arith.constant 0 : i32
    %c0_i32_0 = arith.constant 0 : i32
    %c0_i32_1 = arith.constant 0 : i32
    return %c0_i32, %c0_i32_0 : i32, i32
  }
  func.func @transform_11(%arg0: i32) -> (i32, i32) {
    %c0_i32 = arith.constant 0 : i32
    %c0_i32_0 = arith.constant 0 : i32
    %c0_i32_1 = arith.constant 0 : i32
    return %c0_i32, %c0_i32_0 : i32, i32
  }
}

</mosaic_0001>

<bundles_post_ra>
// kernel: old_cef_forward.1
= control target key start
LH: loop header
LB: loop body
LE: loop exit
PB: predicated region body
PF: predicated region fallthrough
CT: control target
= control target key end

     0   :  { %17 = vsyncpa [#allocation3], 0  ;;  %s6643_s0 = inlined_call_operand.vmem [shape: bf16[8,768], index: 0, kind: input, shape index: {}]   ;;  %s6644_s1 = inlined_call_operand.hbm [shape: bf16[768,256], index: 1, kind: input, shape index: {}]   ;;  %s6645_s2 = inlined_call_operand.vmem [shape: f32[1,256], index: 2, kind: input, shape index: {}]   ;;  %s6646_s3 = inlined_call_operand.vmem [shape: bf16[256,128], index: 3, kind: input, shape index: {}]   ;;  %s6647_s4 = inlined_call_operand.vmem [shape: f32[1,128], index: 4, kind: input, shape index: {}]   ;;  %s6648_s5 = inlined_call_operand.hbm [shape: bf16[256,2048], index: 5, kind: input, shape index: {}]   ;;  %s6649_s6 = inlined_call_operand.vmem [shape: f32[1,2048], index: 6, kind: input, shape index: {}]   ;;  %s6650_s7 = inlined_call_operand.vmem [shape: f32[1,2048], index: 7, kind: input, shape index: {}]   ;;  %s6651_s8 = inlined_call_operand.hbm [shape: bf16[2048,256], index: 8, kind: input, shape index: {}]   ;;  %s6652_s9 = inlined_call_operand.vmem [shape: f32[1,256], index: 9, kind: input, shape index: {}]   ;;  %s6653_s10 = inlined_call_operand.vmem [shape: f32[8,128], index: 10, kind: output, shape index: {0}]   ;;  %s6654_s11 = inlined_call_operand.vmem [shape: f32[8,256], index: 11, kind: output, shape index: {1}]  }
   0x1   :  { %18 = vsyncpa [#allocation5], 0  ;;  %s6296_s17 = smov [#allocation4]   ;;  %s6226_s21 = scalar_lea.hbm %s6648_s5, 32768 }
   0x2   :  { %s44_s18 = sshll.u32 %s6296_s17, 4  ;;  %p6227_p0 = scmp.ne.s32.totalorder %s6648_s5, %s6226_s21  ;;  %s45_s18 = int_to_ptr.vmem [resolvable:$true] %s44_s18 }
   0x3   :  { %p6230_p1 = scmp.lt.u32.totalorder %s6226_s21, %s6648_s5 }
   0x5   :  { %p6232_p2 = pnand %p6230_p1, %p6227_p0 }
   0x7   :  { %6235 = shalt.err (!%p6232_p2)
}
   0x8   :  { %s6236_s26 = scalar_lea.vmem %s45_s18, 32768  ;;  %p6241_p4 = scmp.lt.s32.totalorder %s45_s18, %s45_s18 }
   0x9   :  { %p6237_p3 = scmp.ne.s32.totalorder %s45_s18, %s6236_s26  ;;  %p6242_p5 = scmp.lt.s32.totalorder %s6236_s26, %s6236_s26 }
   0xb   :  { %p6243_p6 = por %p6242_p5, %p6241_p4 }
   0xd   :  { %p6244_p7 = pnand %p6243_p6, %p6237_p3 }
   0xf   :  { %6247 = shalt.err (!%p6244_p7)
}
  0x10   :  { %s6297_s27 = smov 1024   ;;  %s6298_s28 = smov 64  }
  0x11   :  { %50 = dma.hbm_to_vmem [thread:$0]  %s6648_s5, 32768, %s45_s18, [#allocation5], %s6297_s27, %s6297_s27, %s6298_s28  }
  0x12   :  { %s6299_s12 = smov [#allocation2]   ;;  %s6248_s16 = scalar_lea.hbm %s6644_s1, 12288 }
  0x13   :  { %s26_s13 = sshll.u32 %s6299_s12, 4  ;;  %p6249_p8 = scmp.ne.s32.totalorder %s6644_s1, %s6248_s16  ;;  %s27_s13 = int_to_ptr.vmem [resolvable:$true] %s26_s13 }
  0x14   :  { %p6252_p9 = scmp.lt.u32.totalorder %s6248_s16, %s6644_s1 }
  0x16   :  { %p6254_p10 = pnand %p6252_p9, %p6249_p8 }
  0x18   :  { %6257 = shalt.err (!%p6254_p10)
}
  0x19   :  { %s6258_s22 = scalar_lea.vmem %s27_s13, 12288  ;;  %p6263_p12 = scmp.lt.s32.totalorder %s27_s13, %s27_s13 }
  0x1a   :  { %p6259_p11 = scmp.ne.s32.totalorder %s27_s13, %s6258_s22  ;;  %p6264_p13 = scmp.lt.s32.totalorder %s6258_s22, %s6258_s22 }
  0x1c   :  { %p6265_p0 = por %p6264_p13, %p6263_p12 }
  0x1e   :  { %p6266_p1 = pnand %p6265_p0, %p6259_p11 }
  0x20   :  { %6269 = shalt.err (!%p6266_p1)
}
  0x21   :  { %s6300_s5 = smov 128   ;;  %s6301_s18 = smov 8  }
  0x22   :  { %32 = dma.hbm_to_vmem [thread:$0]  %s6644_s1, 12288, %s27_s13, [#allocation3], %s6300_s5, %s6300_s5, %s6301_s18  }
  0x23   :  { %s6302_s25 = smov [#allocation6]   ;;  %s6270_s29 = scalar_lea.hbm %s6651_s8, 32768 }
  0x24   :  { %s60_s26 = sshll.u32 %s6302_s25, 4  ;;  %p6271_p2 = scmp.ne.s32.totalorder %s6651_s8, %s6270_s29  ;;  %s61_s26 = int_to_ptr.vmem [resolvable:$true] %s60_s26 }
  0x25   :  { %p6274_p3 = scmp.lt.u32.totalorder %s6270_s29, %s6651_s8 }
  0x27   :  { %p6276_p4 = pnand %p6274_p3, %p6271_p2 }
  0x29   :  { %6279 = shalt.err (!%p6276_p4)
}
  0x2a   :  { %s6280_s16 = scalar_lea.vmem %s61_s26, 32768  ;;  %p6285_p6 = scmp.lt.s32.totalorder %s61_s26, %s61_s26 }
  0x2b   :  { %p6281_p5 = scmp.ne.s32.totalorder %s61_s26, %s6280_s16  ;;  %p6286_p7 = scmp.lt.s32.totalorder %s6280_s16, %s6280_s16 }
  0x2d   :  { %p6287_p8 = por %p6286_p7, %p6285_p6 }
  0x2f   :  { %p6288_p9 = pnand %p6287_p8, %p6281_p5 }
  0x31   :  { %6291 = shalt.err (!%p6288_p9)
}
  0x32   :  { %66 = dma.hbm_to_vmem [thread:$0]  %s6651_s8, 32768, %s61_s26, [#allocation5], %s6300_s5, %s6300_s5, %s6301_s18  }
  0x33   :  { %6292 = dma.done.wait [#allocation3], 12288  }
  0x34   :  { %6293 = vsyncadd [#allocation3], 4294955008 }
  0x35   :  { %6294 = dma.done.wait [#allocation5], 65536  }
  0x36   :  { %6295 = vsyncadd [#allocation5], 4294901760  ;;  %v5676_v0 = vld [vmem:[#allocation2 + $0x4] ss:$8 sps:$4 sm:$0xff]   ;;  %v5678_v1 = vld [vmem:[#allocation2] ss:$8 sps:$4 sm:$0xff]  }
  0x37   :  { %691 = vmatprep.subr.bf16.mxu0 %v5676_v0  ;;  %v5679_v2 = vld [vmem:[#allocation2 + $0x14] ss:$8 sps:$4 sm:$0xff]   ;;  %v5681_v3 = vld [vmem:[#allocation2 + $0x10] ss:$8 sps:$4 sm:$0xff]   ;;  %v5682_v4 = vld [vmem:[#allocation2 + $0x24] ss:$8 sps:$4 sm:$0xff]  }
  0x38   :  { %692 = vmatpush1.bf16.msra.mxu0 %v5678_v1  ;;  %v5684_v5 = vld [vmem:[#allocation2 + $0x20] ss:$8 sps:$4 sm:$0xff]   ;;  %v5685_v6 = vld [vmem:[#allocation2 + $0x34] ss:$8 sps:$4 sm:$0xff]   ;;  %v5687_v7 = vld [vmem:[#allocation2 + $0x30] ss:$8 sps:$4 sm:$0xff]  }
  0x39   :  { %693 = vmatprep.subr.bf16.mxu0 %v5679_v2  ;;  %v5688_v8 = vld [vmem:[#allocation2 + $0x44] ss:$8 sps:$4 sm:$0xff]   ;;  %v5690_v9 = vld [vmem:[#allocation2 + $0x40] ss:$8 sps:$4 sm:$0xff]   ;;  %v5691_v10 = vld [vmem:[#allocation2 + $0x54] ss:$8 sps:$4 sm:$0xff]  }
  0x3a   :  { %v5693_v11 = vld [vmem:[#allocation2 + $0x50] ss:$8 sps:$4 sm:$0xff]   ;;  %v5694_v12 = vld [vmem:[#allocation2 + $0x64] ss:$8 sps:$4 sm:$0xff]   ;;  %v5696_v15 = vld [vmem:[#allocation2 + $0x60] ss:$8 sps:$4 sm:$0xff]  }
  0x3b   :  { %v79_v13 = vld [vmem:[%s6643_s0] sm:$0xff]  ;;  %v5697_v16 = vld [vmem:[#allocation2 + $0x74] ss:$8 sps:$4 sm:$0xff]   ;;  %v5699_v17 = vld [vmem:[#allocation2 + $0x70] ss:$8 sps:$4 sm:$0xff]  }
  0x3c   :  { %694 = vmatpush1.bf16.msra.mxu0 %v5681_v3  ;;  %v4977_v14 = vcombine.high %v79_v13, %v79_v13  ;;  %v5700_v18 = vld [vmem:[#allocation2 + $0x84] ss:$8 sps:$4 sm:$0xff]   ;;  %v5702_v19 = vld [vmem:[#allocation2 + $0x80] ss:$8 sps:$4 sm:$0xff]   ;;  %v5703_v20 = vld [vmem:[#allocation2 + $0x94] ss:$8 sps:$4 sm:$0xff]   ;;  %v4976_v36 = vcombine.low %v79_v13, %v79_v13 }
  0x3d   :  { %695 = vmatprep.subr.bf16.mxu0 %v5682_v4  ;;  %v5705_v21 = vld [vmem:[#allocation2 + $0x90] ss:$8 sps:$4 sm:$0xff]   ;;  %v5706_v22 = vld [vmem:[#allocation2 + $0xa4] ss:$8 sps:$4 sm:$0xff]   ;;  %v5708_v23 = vld [vmem:[#allocation2 + $0xa0] ss:$8 sps:$4 sm:$0xff]  }
  0x3e   :  { %723 = vmatprep.mubr.bf16.mxu0 %v4977_v14  ;;  %v5709_v24 = vld [vmem:[#allocation2 + $0xb4] ss:$8 sps:$4 sm:$0xff]   ;;  %v5711_v25 = vld [vmem:[#allocation2 + $0xb0] ss:$8 sps:$4 sm:$0xff]   ;;  %v5712_v26 = vld [vmem:[#allocation2 + $0xc4] ss:$8 sps:$4 sm:$0xff]  }
  0x3f   :  { %v5714_v27 = vld [vmem:[#allocation2 + $0xc0] ss:$8 sps:$4 sm:$0xff]   ;;  %v5715_v28 = vld [vmem:[#allocation2 + $0xd4] ss:$8 sps:$4 sm:$0xff]   ;;  %v5717_v29 = vld [vmem:[#allocation2 + $0xd0] ss:$8 sps:$4 sm:$0xff]  }
  0x40   :  { %696 = vmatpush1.bf16.msra.mxu0 %v5684_v5  ;;  %v5718_v30 = vld [vmem:[#allocation2 + $0xe4] ss:$8 sps:$4 sm:$0xff]   ;;  %v5720_v31 = vld [vmem:[#allocation2 + $0xe0] ss:$8 sps:$4 sm:$0xff]   ;;  %v5721_v32 = vld [vmem:[#allocation2 + $0xf4] ss:$8 sps:$4 sm:$0xff]  }
  0x41   :  { %697 = vmatprep.subr.bf16.mxu0 %v5685_v6  ;;  %v5723_v33 = vld [vmem:[#allocation2 + $0xf0] ss:$8 sps:$4 sm:$0xff]   ;;  %v5728_v34 = vld [vmem:[#allocation2 + $0x104] ss:$8 sps:$4 sm:$0xff]   ;;  %v5726_v37 = vld [vmem:[#allocation2 + $0x100] ss:$8 sps:$4 sm:$0xff]  }
  0x42   :  { %v6405_v35 = vld [vmem:[%s6643_s0 + $0x8] sm:$0xff]  ;;  %v5731_v39 = vld [vmem:[#allocation2 + $0x114] ss:$8 sps:$4 sm:$0xff]   ;;  %v996_v40 = vld [vmem:[#allocation4 + $0x20] sm:$0xff] }
  0x43   :  { %v4979_v38 = vcombine.high %v6405_v35, %v6405_v35  ;;  %v1004_v41 = vld [vmem:[#allocation4 + $0x60] sm:$0xff]  ;;  %v5729_v43 = vld [vmem:[#allocation2 + $0x110] ss:$8 sps:$4 sm:$0xff]   ;;  %v5737_v53 = vld [vmem:[#allocation2 + $0x134] ss:$8 sps:$4 sm:$0xff]  }
  0x44   :  { %698 = vmatpush1.bf16.msra.mxu0 %v5687_v7  ;;  %v1012_v42 = vld [vmem:[#allocation4 + $0xa0] sm:$0xff]  ;;  %v5104_v44 = vcombine.high %v996_v40, %v1004_v41  ;;  %v5103_v45 = vcombine.low %v996_v40, %v1004_v41  ;;  %v5735_v57 = vld [vmem:[#allocation2 + $0x130] ss:$8 sps:$4 sm:$0xff]   ;;  %v5743_v1 = vld [vmem:[#allocation2 + $0x154] ss:$8 sps:$4 sm:$0xff]  }
  0x45   :  { %699 = vmatprep.subr.bf16.mxu0 %v5688_v8  ;;  %v1020_v46 = vld [vmem:[#allocation4 + $0xe0] sm:$0xff]  ;;  %v5741_v5 = vld [vmem:[#allocation2 + $0x150] ss:$8 sps:$4 sm:$0xff]   ;;  %v5749_v14 = vld [vmem:[#allocation2 + $0x174] ss:$8 sps:$4 sm:$0xff]  }
  0x46   :  { %v5734_v47 = vld [vmem:[#allocation2 + $0x124] ss:$8 sps:$4 sm:$0xff]   ;;  %v5120_v48 = vcombine.high %v1012_v42, %v1020_v46  ;;  %2692 = vmatprep.subr.bf16.mxu1 %v5104_v44  ;;  %v5119_v51 = vcombine.low %v1012_v42, %v1020_v46  ;;  %v5732_v52 = vld [vmem:[#allocation2 + $0x120] ss:$8 sps:$4 sm:$0xff]   ;;  %v5759_v42 = vld [vmem:[#allocation2 + $0x1b0] ss:$8 sps:$4 sm:$0xff]  }
  0x47   :  { %v1028_v49 = vld [vmem:[#allocation4 + $0x120] sm:$0xff]  ;;  %2693 = vmatpush1.bf16.msra.mxu1 %v5103_v45 }
  0x48   :  { %700 = vmatpush1.bf16.msra.mxu0 %v5690_v9  ;;  %v1036_v50 = vld [vmem:[#allocation4 + $0x160] sm:$0xff]  ;;  %2694 = vmatprep.subr.bf16.mxu1 %v5120_v48 }
  0x49   :  { %701 = vmatprep.subr.bf16.mxu0 %v5691_v10  ;;  %v5136_v54 = vcombine.high %v1028_v49, %v1036_v50  ;;  %v1044_v55 = vld [vmem:[#allocation4 + $0x1a0] sm:$0xff]  ;;  %v5135_v58 = vcombine.low %v1028_v49, %v1036_v50  ;;  %v5767_v49 = vld [vmem:[#allocation2 + $0x1d4] ss:$8 sps:$4 sm:$0xff]  }
  0x4a   :  { %v1052_v56 = vld [vmem:[#allocation4 + $0x1e0] sm:$0xff] }
  0x4b   :  { %2695 = vmatpush1.bf16.msra.mxu1 %v5119_v51  ;;  %v5740_v59 = vld [vmem:[#allocation2 + $0x144] ss:$8 sps:$4 sm:$0xff]   ;;  %v5152_v60 = vcombine.high %v1044_v55, %v1052_v56  ;;  %v5151_v63 = vcombine.low %v1044_v55, %v1052_v56  ;;  %v5738_v0 = vld [vmem:[#allocation2 + $0x140] ss:$8 sps:$4 sm:$0xff]  }
  0x4c   :  { %702 = vmatpush1.bf16.msra.mxu0 %v5693_v11  ;;  %2696 = vmatprep.subr.bf16.mxu1 %v5136_v54  ;;  %v1060_v61 = vld [vmem:[#allocation4 + $0x220] sm:$0xff]  ;;  %v5765_v54 = vld [vmem:[#allocation2 + $0x1d0] ss:$8 sps:$4 sm:$0xff]  }
  0x4d   :  { %703 = vmatprep.subr.bf16.mxu0 %v5694_v12  ;;  %v1068_v62 = vld [vmem:[#allocation4 + $0x260] sm:$0xff] }
  0x4e   :  { %v5168_v2 = vcombine.high %v1060_v61, %v1068_v62  ;;  %v1076_v3 = vld [vmem:[#allocation4 + $0x2a0] sm:$0xff]  ;;  %v5167_v6 = vcombine.low %v1060_v61, %v1068_v62  ;;  %v5773_v61 = vld [vmem:[#allocation2 + $0x1f4] ss:$8 sps:$4 sm:$0xff]  }
  0x4f   :  { %2697 = vmatpush1.bf16.msra.mxu1 %v5135_v58  ;;  %v1084_v4 = vld [vmem:[#allocation4 + $0x2e0] sm:$0xff] }
  0x50   :  { %704 = vmatpush1.bf16.msra.mxu0 %v5696_v15  ;;  %2698 = vmatprep.subr.bf16.mxu1 %v5152_v60  ;;  %v5746_v7 = vld [vmem:[#allocation2 + $0x164] ss:$8 sps:$4 sm:$0xff]   ;;  %v5184_v8 = vcombine.high %v1076_v3, %v1084_v4  ;;  %v5183_v11 = vcombine.low %v1076_v3, %v1084_v4  ;;  %v5744_v12 = vld [vmem:[#allocation2 + $0x160] ss:$8 sps:$4 sm:$0xff]  }
  0x51   :  { %705 = vmatprep.subr.bf16.mxu0 %v5697_v16  ;;  %v1092_v9 = vld [vmem:[#allocation4 + $0x320] sm:$0xff] }
  0x52   :  { %v1100_v10 = vld [vmem:[#allocation4 + $0x360] sm:$0xff] }
  0x53   :  { %2699 = vmatpush1.bf16.msra.mxu1 %v5151_v63  ;;  %v5200_v13 = vcombine.high %v1092_v9, %v1100_v10  ;;  %v1108_v15 = vld [vmem:[#allocation4 + $0x3a0] sm:$0xff] }
  0x54   :  { %706 = vmatpush1.bf16.msra.mxu0 %v5699_v17  ;;  %2700 = vmatprep.subr.bf16.mxu1 %v5168_v2  ;;  %v1116_v16 = vld [vmem:[#allocation4 + $0x3e0] sm:$0xff]  ;;  %v5747_v17 = vld [vmem:[#allocation2 + $0x170] ss:$8 sps:$4 sm:$0xff]  }
  0x55   :  { %707 = vmatprep.subr.bf16.mxu0 %v5700_v18  ;;  %v5752_v18 = vld [vmem:[#allocation2 + $0x184] ss:$8 sps:$4 sm:$0xff]   ;;  %v5762_v48 = vld [vmem:[#allocation2 + $0x1c0] ss:$8 sps:$4 sm:$0xff]   ;;  %v6412_v2 = vld [vmem:[%s6643_s0 + $0x10] sm:$0xff] }
  0x56   :  { %v1180_v40 = vld [vmem:[#allocation4 + $0x5e0] sm:$0xff] }
  0x57   :  { %2701 = vmatpush1.bf16.msra.mxu1 %v5167_v6  ;;  %v1188_v45 = vld [vmem:[#allocation4 + $0x620] sm:$0xff]  ;;  %v5781_v6 = vld [vmem:[#allocation2 + $0x214] ss:$8 sps:$4 sm:$0xff]  }
  0x58   :  { %708 = vmatpush1.bf16.msra.mxu0 %v5702_v19  ;;  %2702 = vmatprep.subr.bf16.mxu1 %v5184_v8  ;;  %v5199_v19 = vcombine.low %v1092_v9, %v1100_v10  ;;  %v1196_v46 = vld [vmem:[#allocation4 + $0x660] sm:$0xff]  ;;  %v5779_v8 = vld [vmem:[#allocation2 + $0x210] ss:$8 sps:$4 sm:$0xff]  }
  0x59   :  { %709 = vmatprep.subr.bf16.mxu0 %v5703_v20  ;;  %v1124_v20 = vld [vmem:[#allocation4 + $0x420] sm:$0xff]  ;;  %v5295_v56 = vcombine.low %v1188_v45, %v1196_v46 }
  0x5a   :  { %v1204_v51 = vld [vmem:[#allocation4 + $0x6a0] sm:$0xff] }
  0x5b   :  { %2703 = vmatpush1.bf16.msra.mxu1 %v5183_v11  ;;  %v5770_v55 = vld [vmem:[#allocation2 + $0x1e4] ss:$8 sps:$4 sm:$0xff]   ;;  %v5768_v60 = vld [vmem:[#allocation2 + $0x1e0] ss:$8 sps:$4 sm:$0xff]   ;;  %v5787_v11 = vld [vmem:[#allocation2 + $0x234] ss:$8 sps:$4 sm:$0xff]  }
  0x5c   :  { %710 = vmatpush1.bf16.msra.mxu0 %v5705_v21  ;;  %2704 = vmatprep.subr.bf16.mxu1 %v5200_v13  ;;  %v5216_v21 = vcombine.high %v1108_v15, %v1116_v16  ;;  %v1228_v58 = vld [vmem:[#allocation4 + $0x760] sm:$0xff] }
  0x5d   :  { %711 = vmatprep.subr.bf16.mxu0 %v5706_v22  ;;  %v1132_v22 = vld [vmem:[#allocation4 + $0x460] sm:$0xff] }
  0x5e   :  { %v5776_v4 = vld [vmem:[#allocation2 + $0x200] ss:$8 sps:$4 sm:$0xff]   ;;  %v5784_v9 = vld [vmem:[#allocation2 + $0x224] ss:$8 sps:$4 sm:$0xff]  }
  0x5f   :  { %2705 = vmatpush1.bf16.msra.mxu1 %v5199_v19  ;;  %v5782_v10 = vld [vmem:[#allocation2 + $0x220] ss:$8 sps:$4 sm:$0xff]   ;;  %v5790_v13 = vld [vmem:[#allocation2 + $0x244] ss:$8 sps:$4 sm:$0xff]   ;;  %v5797_v19 = vld [vmem:[#allocation2 + $0x270] ss:$8 sps:$4 sm:$0xff]  }
  0x60   :  { %712 = vmatpush1.bf16.msra.mxu0 %v5708_v23  ;;  %v5750_v23 = vld [vmem:[#allocation2 + $0x180] ss:$8 sps:$4 sm:$0xff]   ;;  %2706 = vmatprep.subr.bf16.mxu1 %v5216_v21 }
  0x61   :  { %713 = vmatprep.subr.bf16.mxu0 %v5709_v24  ;;  %v5755_v24 = vld [vmem:[#allocation2 + $0x194] ss:$8 sps:$4 sm:$0xff]   ;;  %v5800_v21 = vld [vmem:[#allocation2 + $0x280] ss:$8 sps:$4 sm:$0xff]  }
  0x64   :  { %714 = vmatpush1.bf16.msra.mxu0 %v5711_v25  ;;  %v5215_v25 = vcombine.low %v1108_v15, %v1116_v16  ;;  %v5791_v15 = vld [vmem:[#allocation2 + $0x250] ss:$8 sps:$4 sm:$0xff]   ;;  %v5796_v16 = vld [vmem:[#allocation2 + $0x264] ss:$8 sps:$4 sm:$0xff]  }
  0x65   :  { %715 = vmatprep.subr.bf16.mxu0 %v5712_v26  ;;  %v1140_v26 = vld [vmem:[#allocation4 + $0x4a0] sm:$0xff] }
  0x66   :  { %2707 = vmatpush1.bf16.msra.mxu1 %v5215_v25  ;;  %v5806_v25 = vld [vmem:[#allocation2 + $0x2a0] ss:$8 sps:$4 sm:$0xff]  }
  0x68   :  { %716 = vmatpush1.bf16.msra.mxu0 %v5714_v27  ;;  %v1148_v27 = vld [vmem:[#allocation4 + $0x4e0] sm:$0xff] }
  0x69   :  { %717 = vmatprep.subr.bf16.mxu0 %v5715_v28  ;;  %v5232_v28 = vcombine.high %v1124_v20, %v1132_v22 }
  0x6b   :  { %2708 = vmatprep.subr.bf16.mxu1 %v5232_v28  ;;  %v5814_v28 = vld [vmem:[#allocation2 + $0x2c4] ss:$8 sps:$4 sm:$0xff]  }
  0x6c   :  { %718 = vmatpush1.bf16.msra.mxu0 %v5717_v29  ;;  %v5753_v29 = vld [vmem:[#allocation2 + $0x190] ss:$8 sps:$4 sm:$0xff]  }
  0x6d   :  { %719 = vmatprep.subr.bf16.mxu0 %v5718_v30  ;;  %v5758_v30 = vld [vmem:[#allocation2 + $0x1a4] ss:$8 sps:$4 sm:$0xff]  }
  0x70   :  { %720 = vmatpush1.bf16.msra.mxu0 %v5720_v31  ;;  %v5231_v31 = vcombine.low %v1124_v20, %v1132_v22  ;;  %v5802_v20 = vld [vmem:[#allocation2 + $0x284] ss:$8 sps:$4 sm:$0xff]   ;;  %v5805_v22 = vld [vmem:[#allocation2 + $0x294] ss:$8 sps:$4 sm:$0xff]  }
  0x71   :  { %721 = vmatprep.subr.bf16.mxu0 %v5721_v32  ;;  %v1156_v32 = vld [vmem:[#allocation4 + $0x520] sm:$0xff] }
  0x72   :  { %2709 = vmatpush1.bf16.msra.mxu1 %v5231_v31  ;;  %v5815_v31 = vld [vmem:[#allocation2 + $0x2d0] ss:$8 sps:$4 sm:$0xff]  }
  0x74   :  { %722 = vmatpush1.bf16.msra.mxu0 %v5723_v33  ;;  %v1164_v33 = vld [vmem:[#allocation4 + $0x560] sm:$0xff] }
  0x75   :  { %732 = vmatprep.subr.bf16.mxu0 %v5728_v34  ;;  %v5248_v34 = vcombine.high %v1140_v26, %v1148_v27  ;;  %v5264_v41 = vcombine.high %v1156_v32, %v1164_v33  ;;  %v5263_v44 = vcombine.low %v1156_v32, %v1164_v33  ;;  %v5820_v32 = vld [vmem:[#allocation2 + $0x2e4] ss:$8 sps:$4 sm:$0xff]   ;;  %v5818_v33 = vld [vmem:[#allocation2 + $0x2e0] ss:$8 sps:$4 sm:$0xff]  }
  0x77   :  { %724 = vmatmul.mubr.bf16.vlgmr.msra.gmra.mrb[0].mxu0 %v4976_v36  ;;  %v5756_v36 = vld [vmem:[#allocation2 + $0x1a0] ss:$8 sps:$4 sm:$0xff]   ;;  %2710 = vmatprep.subr.bf16.mxu1 %v5248_v34  ;;  %v5823_v34 = vld [vmem:[#allocation2 + $0x2f4] ss:$8 sps:$4 sm:$0xff]  }
  0x78   :  { %733 = vmatpush1.bf16.msra.mxu0 %v5726_v37  ;;  %764 = vmatprep.mubr.bf16.mxu0 %v4979_v38  ;;  %v5761_v37 = vld [vmem:[#allocation2 + $0x1b4] ss:$8 sps:$4 sm:$0xff]   ;;  %v5247_v38 = vcombine.low %v1140_v26, %v1148_v27  ;;  %v5809_v27 = vld [vmem:[#allocation2 + $0x2b0] ss:$8 sps:$4 sm:$0xff]  }
  0x79   :  { %734 = vmatprep.subr.bf16.mxu0 %v5731_v39  ;;  %v1172_v39 = vld [vmem:[#allocation4 + $0x5a0] sm:$0xff]  ;;  %v5811_v26 = vld [vmem:[#allocation2 + $0x2b4] ss:$8 sps:$4 sm:$0xff]  }
  0x7a   :  { %2711 = vmatpush1.bf16.msra.mxu1 %v5247_v38  ;;  %v5279_v50 = vcombine.low %v1172_v39, %v1180_v40  ;;  %v4980_v38 = vcombine.low %v6412_v2, %v6412_v2 }
  0x7b   :  { %2712 = vmatprep.subr.bf16.mxu1 %v5264_v41  ;;  %v5829_v41 = vld [vmem:[%s6646_s3 + $0x8] sm:$0xff]  }
  0x7c   :  { %735 = vmatpush1.bf16.msra.mxu0 %v5729_v43  ;;  %v5764_v43 = vld [vmem:[#allocation2 + $0x1c4] ss:$8 sps:$4 sm:$0xff]  }
  0x7d   :  { %736 = vmatprep.subr.bf16.mxu0 %v5734_v47  ;;  %v5280_v47 = vcombine.high %v1172_v39, %v1180_v40  ;;  %v5827_v39 = vld [vmem:[%s6646_s3] sm:$0xff]   ;;  %v5828_v40 = vld [vmem:[%s6646_s3 + $0x48] sm:$0xff]  }
  0x7e   :  { %2713 = vmatpush1.bf16.msra.mxu1 %v5263_v44  ;;  %v5832_v44 = vld [vmem:[%s6646_s3 + $0x58] sm:$0xff]  }
  0x7f   :  { %2714 = vmatprep.subr.bf16.mxu1 %v5280_v47  ;;  %v5835_v47 = vld [vmem:[%s6646_s3 + $0x20] sm:$0xff]  }
  0x80   :  { %737 = vmatpush1.bf16.msra.mxu0 %v5732_v52  ;;  %v1212_v52 = vld [vmem:[#allocation4 + $0x6e0] sm:$0xff] }
  0x81   :  { %738 = vmatprep.subr.bf16.mxu0 %v5737_v53  ;;  %v5296_v53 = vcombine.high %v1188_v45, %v1196_v46  ;;  %v5311_v62 = vcombine.low %v1204_v51, %v1212_v52  ;;  %v5833_v45 = vld [vmem:[%s6646_s3 + $0x18] sm:$0xff]   ;;  %v5834_v46 = vld [vmem:[%s6646_s3 + $0x60] sm:$0xff]  }
  0x82   :  { %2715 = vmatpush1.bf16.msra.mxu1 %v5279_v50  ;;  %v5838_v50 = vld [vmem:[%s6646_s3 + $0x70] sm:$0xff]  }
  0x83   :  { %2716 = vmatprep.subr.bf16.mxu1 %v5296_v53  ;;  %v1244_v53 = vld [vmem:[#allocation4 + $0x7e0] sm:$0xff] }
  0x84   :  { %739 = vmatpush1.bf16.msra.mxu0 %v5735_v57  ;;  %v1220_v57 = vld [vmem:[#allocation4 + $0x720] sm:$0xff] }
  0x85   :  { %740 = vmatprep.subr.bf16.mxu0 %v5740_v59  ;;  %v5312_v59 = vcombine.high %v1204_v51, %v1212_v52  ;;  %v5328_v63 = vcombine.high %v1220_v57, %v1228_v58  ;;  %v5327_v3 = vcombine.low %v1220_v57, %v1228_v58  ;;  %v5839_v51 = vld [vmem:[%s6646_s3 + $0x30] sm:$0xff]   ;;  %v1236_v52 = vld [vmem:[#allocation4 + $0x7a0] sm:$0xff] }
  0x86   :  { %2717 = vmatpush1.bf16.msra.mxu1 %v5295_v56  ;;  %v5841_v56 = vld [vmem:[%s6646_s3 + $0x38] sm:$0xff]   ;;  %v5343_v57 = vcombine.low %v1236_v52, %v1244_v53  ;;  %v992_v58 = vld [vmem:[#allocation4] sm:$0xff] }
  0x87   :  { %2718 = vmatprep.subr.bf16.mxu1 %v5312_v59  ;;  %v1000_v59 = vld [vmem:[#allocation4 + $0x40] sm:$0xff] }
  0x88   :  { %741 = vmatpush1.bf16.msra.mxu0 %v5738_v0  ;;  %v5771_v0 = vld [vmem:[#allocation2 + $0x1f0] ss:$8 sps:$4 sm:$0xff]  }
  0x89   :  { %742 = vmatprep.subr.bf16.mxu0 %v5743_v1  ;;  %v5778_v1 = vld [vmem:[#allocation2 + $0x204] ss:$8 sps:$4 sm:$0xff]  }
  0x8a   :  { %2719 = vmatpush1.bf16.msra.mxu1 %v5311_v62  ;;  %v1006_v62 = vld [vmem:[#allocation4 + $0x70] sm:$0xff] }
  0x8b   :  { %2720 = vmatprep.subr.bf16.mxu1 %v5328_v63  ;;  %v5095_v63 = vcombine.low %v992_v58, %v1000_v59 }
  0x8c   :  { %743 = vmatpush1.bf16.msra.mxu0 %v5741_v5  ;;  %v4978_v5 = vcombine.low %v6405_v35, %v6405_v35  ;;  %v5788_v35 = vld [vmem:[#allocation2 + $0x240] ss:$8 sps:$4 sm:$0xff]  }
  0x8d   :  { %744 = vmatprep.subr.bf16.mxu0 %v5746_v7  ;;  %v4981_v7 = vcombine.high %v6412_v2, %v6412_v2  ;;  %v180_v2 = vlaneseq }
  0x8e   :  { %2721 = vmatpush1.bf16.msra.mxu1 %v5327_v3 }
  0x8f   :  { %v6468_v3 = vshrl.u32 %v180_v2, 7  ;;  %v1118_v2 = vld [vmem:[#allocation4 + $0x3f0] sm:$0xff] }
  0x90   :  { %745 = vmatpush1.bf16.msra.mxu0 %v5744_v12  ;;  %v5785_v12 = vld [vmem:[#allocation2 + $0x230] ss:$8 sps:$4 sm:$0xff]  }
  0x91   :  { %746 = vmatprep.subr.bf16.mxu0 %v5749_v14  ;;  %v5793_v14 = vld [vmem:[#allocation2 + $0x254] ss:$8 sps:$4 sm:$0xff]  }
  0x94   :  { %747 = vmatpush1.bf16.msra.mxu0 %v5747_v17  ;;  %v5794_v17 = vld [vmem:[#allocation2 + $0x260] ss:$8 sps:$4 sm:$0xff]  }
  0x95   :  { %748 = vmatprep.subr.bf16.mxu0 %v5752_v18  ;;  %v5799_v18 = vld [vmem:[#allocation2 + $0x274] ss:$8 sps:$4 sm:$0xff]  }
  0x98   :  { %749 = vmatpush1.bf16.msra.mxu0 %v5750_v23  ;;  %v5803_v23 = vld [vmem:[#allocation2 + $0x290] ss:$8 sps:$4 sm:$0xff]  }
  0x99   :  { %750 = vmatprep.subr.bf16.mxu0 %v5755_v24  ;;  %v5808_v24 = vld [vmem:[#allocation2 + $0x2a4] ss:$8 sps:$4 sm:$0xff]  }
  0x9c   :  { %751 = vmatpush1.bf16.msra.mxu0 %v5753_v29  ;;  %v5812_v29 = vld [vmem:[#allocation2 + $0x2c0] ss:$8 sps:$4 sm:$0xff]  }
  0x9d   :  { %752 = vmatprep.subr.bf16.mxu0 %v5758_v30  ;;  %v5817_v30 = vld [vmem:[#allocation2 + $0x2d4] ss:$8 sps:$4 sm:$0xff]  }
  0xa0   :  { %753 = vmatpush1.bf16.msra.mxu0 %v5756_v36  ;;  %v5821_v36 = vld [vmem:[#allocation2 + $0x2f0] ss:$8 sps:$4 sm:$0xff]  }
  0xa1   :  { %754 = vmatprep.subr.bf16.mxu0 %v5761_v37  ;;  %v5826_v37 = vld [vmem:[%s6646_s3 + $0x40] sm:$0xff]  }
  0xa4   :  { %755 = vmatpush1.bf16.msra.mxu0 %v5759_v42  ;;  %v5830_v42 = vld [vmem:[%s6646_s3 + $0x50] sm:$0xff]  }
  0xa5   :  { %756 = vmatprep.subr.bf16.mxu0 %v5764_v43  ;;  %v5831_v43 = vld [vmem:[%s6646_s3 + $0x10] sm:$0xff]  }
  0xa8   :  { %757 = vmatpush1.bf16.msra.mxu0 %v5762_v48  ;;  %v5836_v48 = vld [vmem:[%s6646_s3 + $0x68] sm:$0xff]  }
  0xa9   :  { %758 = vmatprep.subr.bf16.mxu0 %v5767_v49  ;;  %v5837_v49 = vld [vmem:[%s6646_s3 + $0x28] sm:$0xff]  }
  0xac   :  { %759 = vmatpush1.bf16.msra.mxu0 %v5765_v54  ;;  %v5840_v54 = vld [vmem:[%s6646_s3 + $0x78] sm:$0xff]  }
  0xad   :  { %760 = vmatprep.subr.bf16.mxu0 %v5770_v55  ;;  %v5344_v55 = vcombine.high %v1236_v52, %v1244_v53 }
  0xaf   :  { %2722 = vmatprep.subr.bf16.mxu1 %v5344_v55  ;;  %v1088_v55 = vld [vmem:[#allocation4 + $0x300] sm:$0xff] }
  0xb0   :  { %761 = vmatpush1.bf16.msra.mxu0 %v5768_v60  ;;  %2723 = vmatpush1.bf16.msra.mxu1 %v5343_v57  ;;  %v998_v60 = vld [vmem:[#allocation4 + $0x30] sm:$0xff] }
  0xb1   :  { %762 = vmatprep.subr.bf16.mxu0 %v5773_v61  ;;  %v5096_v61 = vcombine.high %v992_v58, %v1000_v59  ;;  %v1094_v57 = vld [vmem:[#allocation4 + $0x330] sm:$0xff] }
  0xb2   :  { %v1102_v58 = vld [vmem:[#allocation4 + $0x370] sm:$0xff] }
  0xb4   :  { %763 = vmatpush1.bf16.msra.mxu0 %v5771_v0  ;;  %v5107_v0 = vcombine.low %v998_v60, %v1006_v62 }
  0xb5   :  { %773 = vmatprep.subr.bf16.mxu0 %v5778_v1  ;;  %v5108_v1 = vcombine.high %v998_v60, %v1006_v62  ;;  %v5204_v62 = vcombine.high %v1094_v57, %v1102_v58 }
  0xb7   :  { %765 = vmatmul.mubr.bf16.vlgmr.msra.gmra.mrb[0].mxu0 %v4978_v5  ;;  %2774 = vmatprep.subr.bf16.mxu1 %v5108_v1  ;;  %v178_v5 = vld [vmem:[%s6645_s2] sm:$0x3]  ;;  %v1110_v1 = vld [vmem:[#allocation4 + $0x3b0] sm:$0xff] }
  0xb8   :  { %774 = vmatpush1.bf16.msra.mxu0 %v5776_v4  ;;  %805 = vmatprep.mubr.bf16.mxu0 %v4981_v7  ;;  %v6471_v4 = vsub.s32 0, %v6468_v3 }
  0xb9   :  { %775 = vmatprep.subr.bf16.mxu0 %v5781_v6  ;;  %v6477_v6 = vsub.s32 1, %v6468_v3 }
  0xba   :  { %v183_v7 = vrot.slane %v178_v5, %v6471_v4 }
  0xbc   :  { %776 = vmatpush1.bf16.msra.mxu0 %v5779_v8  ;;  %v187_v8 = vrot.slane %v178_v5, %v6477_v6 }
  0xbd   :  { %777 = vmatprep.subr.bf16.mxu0 %v5784_v9 }
  0xc0   :  { %778 = vmatpush1.bf16.msra.mxu0 %v5782_v10 }
  0xc1   :  { %779 = vmatprep.subr.bf16.mxu0 %v5787_v11 }
  0xc4   :  { %780 = vmatpush1.bf16.msra.mxu0 %v5785_v12 }
  0xc5   :  { %781 = vmatprep.subr.bf16.mxu0 %v5790_v13 }
  0xc8   :  { %782 = vmatpush1.bf16.msra.mxu0 %v5788_v35  ;;  %v1008_v35 = vld [vmem:[#allocation4 + $0x80] sm:$0xff] }
  0xc9   :  { %783 = vmatprep.subr.bf16.mxu0 %v5793_v14 }
  0xcc   :  { %784 = vmatpush1.bf16.msra.mxu0 %v5791_v15  ;;  %v1016_v15 = vld [vmem:[#allocation4 + $0xc0] sm:$0xff] }
  0xcd   :  { %785 = vmatprep.subr.bf16.mxu0 %v5796_v16  ;;  %v1014_v16 = vld [vmem:[#allocation4 + $0xb0] sm:$0xff] }
  0xd0   :  { %786 = vmatpush1.bf16.msra.mxu0 %v5794_v17  ;;  %v1022_v17 = vld [vmem:[#allocation4 + $0xf0] sm:$0xff] }
  0xd1   :  { %787 = vmatprep.subr.bf16.mxu0 %v5799_v18 }
  0xd4   :  { %788 = vmatpush1.bf16.msra.mxu0 %v5797_v19 }
  0xd5   :  { %789 = vmatprep.subr.bf16.mxu0 %v5802_v20  ;;  %v1024_v20 = vld [vmem:[#allocation4 + $0x100] sm:$0xff] }
  0xd8   :  { %790 = vmatpush1.bf16.msra.mxu0 %v5800_v21  ;;  %v5112_v21 = vcombine.high %v1008_v35, %v1016_v15 }
  0xd9   :  { %791 = vmatprep.subr.bf16.mxu0 %v5805_v22  ;;  %v5124_v22 = vcombine.high %v1014_v16, %v1022_v17 }
  0xdc   :  { %792 = vmatpush1.bf16.msra.mxu0 %v5803_v23  ;;  %v1032_v23 = vld [vmem:[#allocation4 + $0x140] sm:$0xff] }
  0xdd   :  { %793 = vmatprep.subr.bf16.mxu0 %v5808_v24  ;;  %v1030_v24 = vld [vmem:[#allocation4 + $0x130] sm:$0xff] }
  0xe0   :  { %794 = vmatpush1.bf16.msra.mxu0 %v5806_v25  ;;  %v1038_v25 = vld [vmem:[#allocation4 + $0x170] sm:$0xff] }
  0xe1   :  { %795 = vmatprep.subr.bf16.mxu0 %v5811_v26  ;;  %v5111_v26 = vcombine.low %v1008_v35, %v1016_v15 }
  0xe4   :  { %796 = vmatpush1.bf16.msra.mxu0 %v5809_v27  ;;  %v5123_v27 = vcombine.low %v1014_v16, %v1022_v17  ;;  %v1136_v17 = vld [vmem:[#allocation4 + $0x480] sm:$0xff] }
  0xe5   :  { %797 = vmatprep.subr.bf16.mxu0 %v5814_v28  ;;  %v5128_v28 = vcombine.high %v1024_v20, %v1032_v23 }
  0xe8   :  { %798 = vmatpush1.bf16.msra.mxu0 %v5812_v29  ;;  %v5140_v29 = vcombine.high %v1030_v24, %v1038_v25 }
  0xe9   :  { %799 = vmatprep.subr.bf16.mxu0 %v5817_v30  ;;  %v1040_v30 = vld [vmem:[#allocation4 + $0x180] sm:$0xff] }
  0xec   :  { %800 = vmatpush1.bf16.msra.mxu0 %v5815_v31  ;;  %v1048_v31 = vld [vmem:[#allocation4 + $0x1c0] sm:$0xff] }
  0xed   :  { %801 = vmatprep.subr.bf16.mxu0 %v5820_v32  ;;  %v1046_v32 = vld [vmem:[#allocation4 + $0x1b0] sm:$0xff] }
  0xf0   :  { %802 = vmatpush1.bf16.msra.mxu0 %v5818_v33  ;;  %v1054_v33 = vld [vmem:[#allocation4 + $0x1f0] sm:$0xff] }
  0xf1   :  { %803 = vmatprep.subr.bf16.mxu0 %v5823_v34  ;;  %v5127_v34 = vcombine.low %v1024_v20, %v1032_v23  ;;  %v1144_v20 = vld [vmem:[#allocation4 + $0x4c0] sm:$0xff] }
  0xf4   :  { %804 = vmatpush1.bf16.msra.mxu0 %v5821_v36  ;;  %v5139_v36 = vcombine.low %v1030_v24, %v1038_v25  ;;  %v5240_v25 = vcombine.high %v1136_v17, %v1144_v20 }
  0xf5   :  { %5607 = vmatprep.subr.bf16.mxu0 %v5826_v37  ;;  %v5144_v37 = vcombine.high %v1040_v30, %v1048_v31 }
  0xf7   :  { %806 = vmatmul.mubr.bf16.vlgmr.msra.gmra.mrb[0].mxu0 %v4980_v38  ;;  %v5156_v38 = vcombine.high %v1046_v32, %v1054_v33 }
  0xf8   :  { %5608 = vmatpush3.bf16.msra.mxu0 %v5827_v39  ;;  %v1056_v39 = vld [vmem:[#allocation4 + $0x200] sm:$0xff] }
  0xf9   :  { %5609 = vmatprep.subr.bf16.mxu0 %v5828_v40  ;;  %v1064_v40 = vld [vmem:[#allocation4 + $0x240] sm:$0xff] }
  0xfc   :  { %5610 = vmatpush3.bf16.msra.mxu0 %v5829_v41  ;;  %v1062_v41 = vld [vmem:[#allocation4 + $0x230] sm:$0xff] }
  0xfd   :  { %5611 = vmatprep.subr.bf16.mxu0 %v5830_v42  ;;  %v1070_v42 = vld [vmem:[#allocation4 + $0x270] sm:$0xff] }
  0xfe   :  { %v5171_v52 = vcombine.low %v1062_v41, %v1070_v42 }
 0x100   :  { %5612 = vmatpush3.bf16.msra.mxu0 %v5831_v43  ;;  %v5143_v43 = vcombine.low %v1040_v30, %v1048_v31  ;;  %v1166_v30 = vld [vmem:[#allocation4 + $0x570] sm:$0xff]  ;;  %v5239_v31 = vcombine.low %v1136_v17, %v1144_v20 }
 0x101   :  { %5613 = vmatprep.subr.bf16.mxu0 %v5832_v44  ;;  %v5155_v44 = vcombine.low %v1046_v32, %v1054_v33 }
 0x104   :  { %5614 = vmatpush3.bf16.msra.mxu0 %v5833_v45  ;;  %v5160_v45 = vcombine.high %v1056_v39, %v1064_v40 }
 0x105   :  { %5615 = vmatprep.subr.bf16.mxu0 %v5834_v46  ;;  %v5172_v46 = vcombine.high %v1062_v41, %v1070_v42 }
 0x108   :  { %5616 = vmatpush3.bf16.msra.mxu0 %v5835_v47  ;;  %v1072_v47 = vld [vmem:[#allocation4 + $0x280] sm:$0xff] }
 0x109   :  { %5617 = vmatprep.subr.bf16.mxu0 %v5836_v48  ;;  %v1080_v48 = vld [vmem:[#allocation4 + $0x2c0] sm:$0xff] }
 0x10a   :  { %v5176_v53 = vcombine.high %v1072_v47, %v1080_v48  ;;  %v5175_v59 = vcombine.low %v1072_v47, %v1080_v48  ;;  %v1198_v47 = vld [vmem:[#allocation4 + $0x670] sm:$0xff] }
 0x10c   :  { %5618 = vmatpush3.bf16.msra.mxu0 %v5837_v49  ;;  %v1078_v49 = vld [vmem:[#allocation4 + $0x2b0] sm:$0xff] }
 0x10d   :  { %5619 = vmatprep.subr.bf16.mxu0 %v5838_v50  ;;  %v1086_v50 = vld [vmem:[#allocation4 + $0x2f0] sm:$0xff] }
 0x10e   :  { %v5187_v60 = vcombine.low %v1078_v49, %v1086_v50 }
 0x110   :  { %5620 = vmatpush3.bf16.msra.mxu0 %v5839_v51  ;;  %v5159_v51 = vcombine.low %v1056_v39, %v1064_v40  ;;  %v1182_v39 = vld [vmem:[#allocation4 + $0x5f0] sm:$0xff] }
 0x111   :  { %5621 = vmatprep.subr.bf16.mxu0 %v5840_v54  ;;  %v5188_v54 = vcombine.high %v1078_v49, %v1086_v50 }
 0x114   :  { %5622 = vmatpush3.bf16.msra.mxu0 %v5841_v56  ;;  %v1096_v56 = vld [vmem:[#allocation4 + $0x340] sm:$0xff] }
 0x115   :  { %2528 = vmatprep.subr.bf16.mxu0 %v5096_v61  ;;  %v5192_v61 = vcombine.high %v1088_v55, %v1096_v56  ;;  %v5191_v5 = vcombine.low %v1088_v55, %v1096_v56  ;;  %v1214_v55 = vld [vmem:[#allocation4 + $0x6f0] sm:$0xff] }
 0x1ca   :  { %v807_v9 = vpop.f32.mrb[0].mxu0 }
 0x1cb   :  { %v5629_v10 = vadd.f32 %v807_v9, %v183_v7  ;;  %v809_v11 = vpop.f32.mrb[1].mxu0  ;;  %v5203_v7 = vcombine.low %v1094_v57, %v1102_v58  ;;  %v5220_v9 = vcombine.high %v1110_v1, %v1118_v2 }
 0x1cc   :  { %v5630_v12 = vadd.f32 %v809_v11, %v187_v8  ;;  %v811_v13 = vpop.f32.mrb[2].mxu0  ;;  %v1128_v11 = vld [vmem:[#allocation4 + $0x440] sm:$0xff] }
 0x1cd   :  { %v812_v14 = vpop.f32.mrb[3].mxu0  ;;  %v6483_v19 = vpack.c.bf16 %v5629_v10, %v5629_v10  ;;  %v1120_v10 = vld [vmem:[#allocation4 + $0x400] sm:$0xff]  ;;  %v1134_v13 = vld [vmem:[#allocation4 + $0x470] sm:$0xff] }
 0x1ce   :  { %v6481_v18 = vpack.c.bf16 %v5630_v12, %v5630_v12  ;;  %v1126_v12 = vld [vmem:[#allocation4 + $0x430] sm:$0xff]  ;;  %v5219_v14 = vcombine.low %v1110_v1, %v1118_v2  ;;  %v5224_v15 = vcombine.high %v1120_v10, %v1128_v11  ;;  %v5223_v23 = vcombine.low %v1120_v10, %v1128_v11 }
 0x1cf   :  { %v5236_v16 = vcombine.high %v1126_v12, %v1134_v13  ;;  %v5235_v24 = vcombine.low %v1126_v12, %v1134_v13  ;;  %v1246_v10 = vld [vmem:[#allocation4 + $0x7f0] sm:$0xff] }
 0x1d0   :  { %983 = vmatprep.mubr.bf16.mxu0 %v6481_v18  ;;  %2724 = vmatprep.mubr.bf16.mxu1 %v6481_v18 }
 0x1d1   :  { %984 = vmatmul.mubr.bf16.vlgmr.msra.gmra.mrb[4].mxu0 %v6483_v19  ;;  %2725 = vmatmul.mubr.bf16.vlgmr.msra.gmra.mrb[0].mxu1 %v6483_v19 }
 0x1d2   :  { %2529 = vmatpush1.bf16.msra.mxu0 %v5095_v63  ;;  %2775 = vmatpush1.bf16.msra.mxu1 %v5107_v0  ;;  %v1104_v63 = vld [vmem:[#allocation4 + $0x380] sm:$0xff] }
 0x1d3   :  { %2560 = vmatprep.mubr.bf16.mxu0 %v6481_v18  ;;  %2806 = vmatprep.mubr.bf16.mxu1 %v6481_v18  ;;  %v1112_v0 = vld [vmem:[#allocation4 + $0x3c0] sm:$0xff] }
 0x1d4   :  { %2530 = vmatprep.subr.bf16.mxu0 %v5112_v21  ;;  %2776 = vmatprep.subr.bf16.mxu1 %v5124_v22  ;;  %v5208_v8 = vcombine.high %v1104_v63, %v1112_v0  ;;  %v5207_v35 = vcombine.low %v1104_v63, %v1112_v0  ;;  %v1142_v21 = vld [vmem:[#allocation4 + $0x4b0] sm:$0xff] }
 0x1d5   :  { %v1150_v22 = vld [vmem:[#allocation4 + $0x4f0] sm:$0xff] }
 0x1d6   :  { %2531 = vmatpush1.bf16.msra.mxu0 %v5111_v26  ;;  %2777 = vmatpush1.bf16.msra.mxu1 %v5123_v27  ;;  %v5252_v26 = vcombine.high %v1142_v21, %v1150_v22  ;;  %v1152_v27 = vld [vmem:[#allocation4 + $0x500] sm:$0xff]  ;;  %v5251_v32 = vcombine.low %v1142_v21, %v1150_v22  ;;  %v1230_v63 = vld [vmem:[#allocation4 + $0x770] sm:$0xff]  ;;  %v1009_v21 = vld [vmem:[#allocation4 + $0x88] sm:$0xff] }
 0x1d7   :  { %2532 = vmatprep.subr.bf16.mxu0 %v5128_v28  ;;  %2778 = vmatprep.subr.bf16.mxu1 %v5140_v29  ;;  %v1160_v28 = vld [vmem:[#allocation4 + $0x540] sm:$0xff]  ;;  %v1158_v29 = vld [vmem:[#allocation4 + $0x530] sm:$0xff]  ;;  %v1017_v22 = vld [vmem:[#allocation4 + $0xc8] sm:$0xff] }
 0x1d8   :  { %v5256_v33 = vcombine.high %v1152_v27, %v1160_v28  ;;  %v5255_v40 = vcombine.low %v1152_v27, %v1160_v28  ;;  %v5267_v41 = vcombine.low %v1158_v29, %v1166_v30  ;;  %v5113_v27 = vcombine.low %v1009_v21, %v1017_v22 }
 0x1da   :  { %2533 = vmatpush1.bf16.msra.mxu0 %v5127_v34  ;;  %2779 = vmatpush1.bf16.msra.mxu1 %v5139_v36  ;;  %v5268_v34 = vcombine.high %v1158_v29, %v1166_v30  ;;  %v1168_v36 = vld [vmem:[#allocation4 + $0x580] sm:$0xff]  ;;  %v1041_v29 = vld [vmem:[#allocation4 + $0x188] sm:$0xff] }
 0x1db   :  { %2534 = vmatprep.subr.bf16.mxu0 %v5144_v37  ;;  %2780 = vmatprep.subr.bf16.mxu1 %v5156_v38  ;;  %v1176_v37 = vld [vmem:[#allocation4 + $0x5c0] sm:$0xff]  ;;  %v1174_v38 = vld [vmem:[#allocation4 + $0x5b0] sm:$0xff]  ;;  %v1049_v30 = vld [vmem:[#allocation4 + $0x1c8] sm:$0xff] }
 0x1dc   :  { %v5272_v42 = vcombine.high %v1168_v36, %v1176_v37  ;;  %v5271_v48 = vcombine.low %v1168_v36, %v1176_v37  ;;  %v5283_v49 = vcombine.low %v1174_v38, %v1182_v39  ;;  %v5145_v36 = vcombine.low %v1041_v29, %v1049_v30 }
 0x1de   :  { %2535 = vmatpush1.bf16.msra.mxu0 %v5143_v43  ;;  %2781 = vmatpush1.bf16.msra.mxu1 %v5155_v44  ;;  %v5284_v43 = vcombine.high %v1174_v38, %v1182_v39  ;;  %v1184_v44 = vld [vmem:[#allocation4 + $0x600] sm:$0xff]  ;;  %v1073_v38 = vld [vmem:[#allocation4 + $0x288] sm:$0xff] }
 0x1df   :  { %2536 = vmatprep.subr.bf16.mxu0 %v5160_v45  ;;  %2782 = vmatprep.subr.bf16.mxu1 %v5172_v46  ;;  %v1192_v45 = vld [vmem:[#allocation4 + $0x640] sm:$0xff]  ;;  %v1190_v46 = vld [vmem:[#allocation4 + $0x630] sm:$0xff]  ;;  %v1081_v39 = vld [vmem:[#allocation4 + $0x2c8] sm:$0xff] }
 0x1e0   :  { %v5288_v50 = vcombine.high %v1184_v44, %v1192_v45  ;;  %v5287_v56 = vcombine.low %v1184_v44, %v1192_v45  ;;  %v5299_v57 = vcombine.low %v1190_v46, %v1198_v47  ;;  %v5177_v44 = vcombine.low %v1073_v38, %v1081_v39 }
 0x1e2   :  { %2537 = vmatpush1.bf16.msra.mxu0 %v5159_v51  ;;  %2783 = vmatpush1.bf16.msra.mxu1 %v5171_v52  ;;  %v5300_v51 = vcombine.high %v1190_v46, %v1198_v47  ;;  %v1200_v52 = vld [vmem:[#allocation4 + $0x680] sm:$0xff]  ;;  %v1105_v46 = vld [vmem:[#allocation4 + $0x388] sm:$0xff] }
 0x1e3   :  { %2538 = vmatprep.subr.bf16.mxu0 %v5176_v53  ;;  %2784 = vmatprep.subr.bf16.mxu1 %v5188_v54  ;;  %v1208_v53 = vld [vmem:[#allocation4 + $0x6c0] sm:$0xff]  ;;  %v1206_v54 = vld [vmem:[#allocation4 + $0x6b0] sm:$0xff]  ;;  %v1113_v47 = vld [vmem:[#allocation4 + $0x3c8] sm:$0xff] }
 0x1e4   :  { %v5304_v58 = vcombine.high %v1200_v52, %v1208_v53  ;;  %v5303_v0 = vcombine.low %v1200_v52, %v1208_v53  ;;  %v5315_v1 = vcombine.low %v1206_v54, %v1214_v55  ;;  %v5209_v52 = vcombine.low %v1105_v46, %v1113_v47 }
 0x1e6   :  { %2539 = vmatpush1.bf16.msra.mxu0 %v5175_v59  ;;  %2785 = vmatpush1.bf16.msra.mxu1 %v5187_v60  ;;  %v5316_v59 = vcombine.high %v1206_v54, %v1214_v55  ;;  %v1216_v60 = vld [vmem:[#allocation4 + $0x700] sm:$0xff]  ;;  %v1137_v54 = vld [vmem:[#allocation4 + $0x488] sm:$0xff] }
 0x1e7   :  { %2540 = vmatprep.subr.bf16.mxu0 %v5192_v61  ;;  %2786 = vmatprep.subr.bf16.mxu1 %v5204_v62  ;;  %v1224_v61 = vld [vmem:[#allocation4 + $0x740] sm:$0xff]  ;;  %v1222_v62 = vld [vmem:[#allocation4 + $0x730] sm:$0xff]  ;;  %v1145_v55 = vld [vmem:[#allocation4 + $0x4c8] sm:$0xff] }
 0x1e8   :  { %v5320_v2 = vcombine.high %v1216_v60, %v1224_v61  ;;  %v5319_v11 = vcombine.low %v1216_v60, %v1224_v61  ;;  %v5331_v12 = vcombine.low %v1222_v62, %v1230_v63  ;;  %v1153_v60 = vld [vmem:[#allocation4 + $0x508] sm:$0xff] }
 0x1e9   :  { %v1161_v61 = vld [vmem:[#allocation4 + $0x548] sm:$0xff] }
 0x1ea   :  { %2541 = vmatpush1.bf16.msra.mxu0 %v5191_v5  ;;  %2787 = vmatpush1.bf16.msra.mxu1 %v5203_v7  ;;  %v5332_v5 = vcombine.high %v1222_v62, %v1230_v63  ;;  %v1232_v7 = vld [vmem:[#allocation4 + $0x780] sm:$0xff]  ;;  %v5847_v62 = vld [vmem:[#allocation6 + $0x14] ss:$8 sps:$4 sm:$0xff]   ;;  %v5845_v63 = vld [vmem:[#allocation6 + $0x10] ss:$8 sps:$4 sm:$0xff]  }
 0x1eb   :  { %2542 = vmatprep.subr.bf16.mxu0 %v5208_v8  ;;  %2788 = vmatprep.subr.bf16.mxu1 %v5220_v9  ;;  %v1240_v8 = vld [vmem:[#allocation4 + $0x7c0] sm:$0xff]  ;;  %v1238_v9 = vld [vmem:[#allocation4 + $0x7b0] sm:$0xff] }
 0x1ec   :  { %v5336_v13 = vcombine.high %v1232_v7, %v1240_v8  ;;  %v5347_v17 = vcombine.low %v1238_v9, %v1246_v10 }
 0x1ee   :  { %2543 = vmatpush1.bf16.msra.mxu0 %v5207_v35  ;;  %2789 = vmatpush1.bf16.msra.mxu1 %v5219_v14  ;;  %v5348_v35 = vcombine.high %v1238_v9, %v1246_v10  ;;  %v993_v14 = vld [vmem:[#allocation4 + $0x8] sm:$0xff]  ;;  %v5257_v9 = vcombine.low %v1153_v60, %v1161_v61 }
 0x1ef   :  { %2544 = vmatprep.subr.bf16.mxu0 %v5224_v15  ;;  %2790 = vmatprep.subr.bf16.mxu1 %v5236_v16  ;;  %v1001_v15 = vld [vmem:[#allocation4 + $0x48] sm:$0xff]  ;;  %v5335_v16 = vcombine.low %v1232_v7, %v1240_v8 }
 0x1f0   :  { %v5098_v20 = vcombine.high %v993_v14, %v1001_v15  ;;  %v5850_v7 = vld [vmem:[#allocation6 + $0x24] ss:$8 sps:$4 sm:$0xff]   ;;  %v5848_v8 = vld [vmem:[#allocation6 + $0x20] ss:$8 sps:$4 sm:$0xff]  }
 0x1f2   :  { %2545 = vmatpush1.bf16.msra.mxu0 %v5223_v23  ;;  %2791 = vmatpush1.bf16.msra.mxu1 %v5235_v24  ;;  %v5097_v23 = vcombine.low %v993_v14, %v1001_v15  ;;  %v5114_v24 = vcombine.high %v1009_v21, %v1017_v22  ;;  %v5854_v21 = vld [vmem:[#allocation6 + $0x40] ss:$8 sps:$4 sm:$0xff]  }
 0x1f3   :  { %2546 = vmatprep.subr.bf16.mxu0 %v5240_v25  ;;  %2792 = vmatprep.subr.bf16.mxu1 %v5252_v26  ;;  %v1025_v25 = vld [vmem:[#allocation4 + $0x108] sm:$0xff] }
 0x1f4   :  { %v1033_v26 = vld [vmem:[#allocation4 + $0x148] sm:$0xff] }
 0x1f5   :  { %v5130_v28 = vcombine.high %v1025_v25, %v1033_v26 }
 0x1f6   :  { %2547 = vmatpush1.bf16.msra.mxu0 %v5239_v31  ;;  %2793 = vmatpush1.bf16.msra.mxu1 %v5251_v32  ;;  %v5129_v31 = vcombine.low %v1025_v25, %v1033_v26  ;;  %v5146_v32 = vcombine.high %v1041_v29, %v1049_v30  ;;  %v1225_v25 = vld [vmem:[#allocation4 + $0x748] sm:$0xff]  ;;  %v5859_v26 = vld [vmem:[#allocation6 + $0x54] ss:$8 sps:$4 sm:$0xff]  }
 0x1f7   :  { %2548 = vmatprep.subr.bf16.mxu0 %v5256_v33  ;;  %2794 = vmatprep.subr.bf16.mxu1 %v5268_v34  ;;  %v1057_v33 = vld [vmem:[#allocation4 + $0x208] sm:$0xff] }
 0x1f8   :  { %v1065_v34 = vld [vmem:[#allocation4 + $0x248] sm:$0xff] }
 0x1f9   :  { %v5162_v37 = vcombine.high %v1057_v33, %v1065_v34  ;;  %v1233_v30 = vld [vmem:[#allocation4 + $0x788] sm:$0xff] }
 0x1fa   :  { %2549 = vmatpush1.bf16.msra.mxu0 %v5255_v40  ;;  %2795 = vmatpush1.bf16.msra.mxu1 %v5267_v41  ;;  %v5161_v40 = vcombine.low %v1057_v33, %v1065_v34  ;;  %v5178_v41 = vcombine.high %v1073_v38, %v1081_v39  ;;  %v5860_v33 = vld [vmem:[#allocation6 + $0x60] ss:$8 sps:$4 sm:$0xff]   ;;  %v1002_v38 = vld [vmem:[#allocation4 + $0x50] sm:$0xff] }
 0x1fb   :  { %2550 = vmatprep.subr.bf16.mxu0 %v5272_v42  ;;  %2796 = vmatprep.subr.bf16.mxu1 %v5284_v43  ;;  %v1089_v42 = vld [vmem:[#allocation4 + $0x308] sm:$0xff]  ;;  %v5865_v39 = vld [vmem:[#allocation6 + $0x74] ss:$8 sps:$4 sm:$0xff]  }
 0x1fc   :  { %v1097_v43 = vld [vmem:[#allocation4 + $0x348] sm:$0xff] }
 0x1fd   :  { %v5194_v45 = vcombine.high %v1089_v42, %v1097_v43 }
 0x1fe   :  { %2551 = vmatpush1.bf16.msra.mxu0 %v5271_v48  ;;  %2797 = vmatpush1.bf16.msra.mxu1 %v5283_v49  ;;  %v5193_v48 = vcombine.low %v1089_v42, %v1097_v43  ;;  %v5210_v49 = vcombine.high %v1105_v46, %v1113_v47  ;;  %v1010_v43 = vld [vmem:[#allocation4 + $0x90] sm:$0xff]  ;;  %v5866_v46 = vld [vmem:[#allocation6 + $0x80] ss:$8 sps:$4 sm:$0xff]  }
 0x1ff   :  { %2552 = vmatprep.subr.bf16.mxu0 %v5288_v50  ;;  %2798 = vmatprep.subr.bf16.mxu1 %v5300_v51  ;;  %v1121_v50 = vld [vmem:[#allocation4 + $0x408] sm:$0xff] }
 0x200   :  { %v1129_v51 = vld [vmem:[#allocation4 + $0x448] sm:$0xff] }
 0x201   :  { %v5226_v53 = vcombine.high %v1121_v50, %v1129_v51 }
 0x202   :  { %2553 = vmatpush1.bf16.msra.mxu0 %v5287_v56  ;;  %2799 = vmatpush1.bf16.msra.mxu1 %v5299_v57  ;;  %v5844_v56 = vld [vmem:[#allocation6 + $0x4] ss:$8 sps:$4 sm:$0xff]   ;;  %v5842_v57 = vld [vmem:[#allocation6] ss:$8 sps:$4 sm:$0xff]  }
 0x203   :  { %2554 = vmatprep.subr.bf16.mxu0 %v5304_v58  ;;  %2800 = vmatprep.subr.bf16.mxu1 %v5316_v59  ;;  %v5225_v58 = vcombine.low %v1121_v50, %v1129_v51  ;;  %v5242_v59 = vcombine.high %v1137_v54, %v1145_v55  ;;  %v1034_v50 = vld [vmem:[#allocation4 + $0x150] sm:$0xff] }
 0x204   :  { %v5871_v51 = vld [vmem:[#allocation6 + $0x94] ss:$8 sps:$4 sm:$0xff]  }
 0x206   :  { %2555 = vmatpush1.bf16.msra.mxu0 %v5303_v0  ;;  %2801 = vmatpush1.bf16.msra.mxu1 %v5315_v1  ;;  %v5241_v0 = vcombine.low %v1137_v54, %v1145_v55  ;;  %v5258_v1 = vcombine.high %v1153_v60, %v1161_v61  ;;  %v1042_v55 = vld [vmem:[#allocation4 + $0x190] sm:$0xff] }
 0x207   :  { %2556 = vmatprep.subr.bf16.mxu0 %v5320_v2  ;;  %2802 = vmatprep.subr.bf16.mxu1 %v5332_v5  ;;  %v1169_v2 = vld [vmem:[#allocation4 + $0x588] sm:$0xff]  ;;  %v1058_v61 = vld [vmem:[#allocation4 + $0x210] sm:$0xff] }
 0x208   :  { %v1177_v5 = vld [vmem:[#allocation4 + $0x5c8] sm:$0xff] }
 0x209   :  { %v5274_v10 = vcombine.high %v1169_v2, %v1177_v5  ;;  %v5273_v14 = vcombine.low %v1169_v2, %v1177_v5  ;;  %v1074_v5 = vld [vmem:[#allocation4 + $0x290] sm:$0xff] }
 0x20a   :  { %2557 = vmatpush1.bf16.msra.mxu0 %v5319_v11  ;;  %2803 = vmatpush1.bf16.msra.mxu1 %v5331_v12  ;;  %v1185_v11 = vld [vmem:[#allocation4 + $0x608] sm:$0xff] }
 0x20b   :  { %2558 = vmatprep.subr.bf16.mxu0 %v5336_v13  ;;  %2804 = vmatprep.subr.bf16.mxu1 %v5348_v35  ;;  %v1193_v12 = vld [vmem:[#allocation4 + $0x648] sm:$0xff]  ;;  %v5853_v13 = vld [vmem:[#allocation6 + $0x34] ss:$8 sps:$4 sm:$0xff]   ;;  %v5851_v35 = vld [vmem:[#allocation6 + $0x30] ss:$8 sps:$4 sm:$0xff]  }
 0x20c   :  { %v5290_v15 = vcombine.high %v1185_v11, %v1193_v12  ;;  %v5289_v22 = vcombine.low %v1185_v11, %v1193_v12  ;;  %v1090_v12 = vld [vmem:[#allocation4 + $0x310] sm:$0xff] }
 0x20e   :  { %2559 = vmatpush1.bf16.msra.mxu0 %v5335_v16  ;;  %2805 = vmatpush1.bf16.msra.mxu1 %v5347_v17  ;;  %v1201_v16 = vld [vmem:[#allocation4 + $0x688] sm:$0xff] }
 0x20f   :  { %2569 = vmatprep.subr.bf16.mxu0 %v5098_v20  ;;  %4636 = vmatprep.subr.bf16.mxu1 %v5844_v56  ;;  %v1209_v17 = vld [vmem:[#allocation4 + $0x6c8] sm:$0xff]  ;;  %v1050_v56 = vld [vmem:[#allocation4 + $0x1d0] sm:$0xff] }
 0x210   :  { %v5856_v20 = vld [vmem:[#allocation6 + $0x44] ss:$8 sps:$4 sm:$0xff]   ;;  %v5148_v60 = vcombine.high %v1042_v55, %v1050_v56 }
 0x211   :  { %2561 = vmatmul.mubr.bf16.vlgmr.msra.gmra.mrb[8].mxu0 %v6483_v19  ;;  %2807 = vmatmul.mubr.bf16.vlgmr.msra.gmra.mrb[4].mxu1 %v6483_v19 }
 0x212   :  { %2570 = vmatpush1.bf16.msra.mxu0 %v5097_v23  ;;  %2601 = vmatprep.mubr.bf16.mxu0 %v6481_v18  ;;  %v5306_v23 = vcombine.high %v1201_v16, %v1209_v17 }
 0x213   :  { %2571 = vmatprep.subr.bf16.mxu0 %v5114_v24  ;;  %4637 = vmatpush1.bf16.msra.mxu1 %v5842_v57  ;;  %v1217_v24 = vld [vmem:[#allocation4 + $0x708] sm:$0xff] }
 0x214   :  { %4638 = vmatprep.subr.bf16.mxu1 %v5847_v62  ;;  %v5322_v29 = vcombine.high %v1217_v24, %v1225_v25  ;;  %v5321_v34 = vcombine.low %v1217_v24, %v1225_v25  ;;  %v5874_v57 = vld [vmem:[#allocation6 + $0xa4] ss:$8 sps:$4 sm:$0xff]   ;;  %v1066_v62 = vld [vmem:[#allocation4 + $0x250] sm:$0xff] }
 0x215   :  { %v5164_v2 = vcombine.high %v1058_v61, %v1066_v62  ;;  %v1122_v25 = vld [vmem:[#allocation4 + $0x410] sm:$0xff] }
 0x216   :  { %2572 = vmatpush1.bf16.msra.mxu0 %v5113_v27  ;;  %v5857_v27 = vld [vmem:[#allocation6 + $0x50] ss:$8 sps:$4 sm:$0xff]  }
 0x217   :  { %2573 = vmatprep.subr.bf16.mxu0 %v5130_v28  ;;  %4639 = vmatpush1.bf16.msra.mxu1 %v5845_v63  ;;  %v5305_v28 = vcombine.low %v1201_v16, %v1209_v17  ;;  %v5877_v63 = vld [vmem:[#allocation6 + $0xb4] ss:$8 sps:$4 sm:$0xff]  }
 0x218   :  { %4640 = vmatprep.subr.bf16.mxu1 %v5850_v7  ;;  %v1082_v7 = vld [vmem:[#allocation4 + $0x2d0] sm:$0xff] }
 0x219   :  { %v5180_v11 = vcombine.high %v1074_v5, %v1082_v7  ;;  %v1106_v17 = vld [vmem:[#allocation4 + $0x390] sm:$0xff] }
 0x21a   :  { %2574 = vmatpush1.bf16.msra.mxu0 %v5129_v31  ;;  %v1241_v31 = vld [vmem:[#allocation4 + $0x7c8] sm:$0xff] }
 0x21b   :  { %2575 = vmatprep.subr.bf16.mxu0 %v5146_v32  ;;  %4641 = vmatpush1.bf16.msra.mxu1 %v5848_v8  ;;  %v5862_v32 = vld [vmem:[#allocation6 + $0x64] ss:$8 sps:$4 sm:$0xff]  }
 0x21c   :  { %4642 = vmatprep.subr.bf16.mxu1 %v5853_v13  ;;  %v5880_v8 = vld [vmem:[#allocation6 + $0xc4] ss:$8 sps:$4 sm:$0xff]   ;;  %v1098_v13 = vld [vmem:[#allocation4 + $0x350] sm:$0xff] }
 0x21d   :  { %v5196_v16 = vcombine.high %v1090_v12, %v1098_v13 }
 0x21e   :  { %2576 = vmatpush1.bf16.msra.mxu0 %v5145_v36  ;;  %v5338_v36 = vcombine.high %v1233_v30, %v1241_v31 }
 0x21f   :  { %2577 = vmatprep.subr.bf16.mxu0 %v5162_v37  ;;  %4643 = vmatpush1.bf16.msra.mxu1 %v5851_v35  ;;  %v994_v37 = vld [vmem:[#allocation4 + $0x10] sm:$0xff] }
 0x220   :  { %4644 = vmatprep.subr.bf16.mxu1 %v5856_v20  ;;  %v5100_v42 = vcombine.high %v994_v37, %v1002_v38  ;;  %v5099_v47 = vcombine.low %v994_v37, %v1002_v38  ;;  %v5883_v35 = vld [vmem:[#allocation6 + $0xd4] ss:$8 sps:$4 sm:$0xff]  }
 0x221   :  { %v1114_v20 = vld [vmem:[#allocation4 + $0x3d0] sm:$0xff] }
 0x222   :  { %2578 = vmatpush1.bf16.msra.mxu0 %v5161_v40  ;;  %v5863_v40 = vld [vmem:[#allocation6 + $0x70] ss:$8 sps:$4 sm:$0xff]   ;;  %v5212_v24 = vcombine.high %v1106_v17, %v1114_v20 }
 0x223   :  { %2579 = vmatprep.subr.bf16.mxu0 %v5178_v41  ;;  %4645 = vmatpush1.bf16.msra.mxu1 %v5854_v21  ;;  %v5337_v41 = vcombine.low %v1233_v30, %v1241_v31  ;;  %v5886_v21 = vld [vmem:[#allocation6 + $0xe4] ss:$8 sps:$4 sm:$0xff]   ;;  %v1138_v31 = vld [vmem:[#allocation4 + $0x490] sm:$0xff] }
 0x224   :  { %4646 = vmatprep.subr.bf16.mxu1 %v5859_v26  ;;  %v1130_v26 = vld [vmem:[#allocation4 + $0x450] sm:$0xff] }
 0x225   :  { %v5228_v30 = vcombine.high %v1122_v25, %v1130_v26  ;;  %v1154_v37 = vld [vmem:[#allocation4 + $0x510] sm:$0xff] }
 0x226   :  { %2580 = vmatpush1.bf16.msra.mxu0 %v5177_v44  ;;  %v1018_v44 = vld [vmem:[#allocation4 + $0xd0] sm:$0xff] }
 0x227   :  { %2581 = vmatprep.subr.bf16.mxu0 %v5194_v45  ;;  %4647 = vmatpush1.bf16.msra.mxu1 %v5857_v27  ;;  %v5868_v45 = vld [vmem:[#allocation6 + $0x84] ss:$8 sps:$4 sm:$0xff]   ;;  %v5889_v27 = vld [vmem:[#allocation6 + $0xf4] ss:$8 sps:$4 sm:$0xff]  }
 0x228   :  { %4648 = vmatprep.subr.bf16.mxu1 %v5862_v32  ;;  %v1146_v32 = vld [vmem:[#allocation4 + $0x4d0] sm:$0xff] }
 0x229   :  { %v1162_v38 = vld [vmem:[#allocation4 + $0x550] sm:$0xff] }
 0x22a   :  { %2582 = vmatpush1.bf16.msra.mxu0 %v5193_v48  ;;  %v5116_v48 = vcombine.high %v1010_v43, %v1018_v44 }
 0x22b   :  { %2583 = vmatprep.subr.bf16.mxu0 %v5210_v49  ;;  %4649 = vmatpush1.bf16.msra.mxu1 %v5860_v33  ;;  %v1026_v49 = vld [vmem:[#allocation4 + $0x110] sm:$0xff]  ;;  %v5892_v33 = vld [vmem:[#allocation6 + $0x104] ss:$8 sps:$4 sm:$0xff]  }
 0x22c   :  { %4650 = vmatprep.subr.bf16.mxu1 %v5865_v39  ;;  %v5132_v54 = vcombine.high %v1026_v49, %v1034_v50  ;;  %v5243_v39 = vcombine.low %v1138_v31, %v1146_v32 }
 0x22e   :  { %2584 = vmatpush1.bf16.msra.mxu0 %v5209_v52  ;;  %v5869_v52 = vld [vmem:[#allocation6 + $0x90] ss:$8 sps:$4 sm:$0xff]  }
 0x22f   :  { %2585 = vmatprep.subr.bf16.mxu0 %v5226_v53  ;;  %4651 = vmatpush1.bf16.msra.mxu1 %v5863_v40  ;;  %v5115_v53 = vcombine.low %v1010_v43, %v1018_v44  ;;  %v5260_v40 = vcombine.high %v1154_v37, %v1162_v38  ;;  %v5259_v43 = vcombine.low %v1154_v37, %v1162_v38 }
 0x230   :  { %4652 = vmatprep.subr.bf16.mxu1 %v5868_v45  ;;  %v1186_v45 = vld [vmem:[#allocation4 + $0x610] sm:$0xff] }
 0x232   :  { %2586 = vmatpush1.bf16.msra.mxu0 %v5225_v58  ;;  %v5872_v58 = vld [vmem:[#allocation6 + $0xa0] ss:$8 sps:$4 sm:$0xff]  }
 0x233   :  { %2587 = vmatprep.subr.bf16.mxu0 %v5242_v59  ;;  %4653 = vmatpush1.bf16.msra.mxu1 %v5866_v46  ;;  %v5131_v59 = vcombine.low %v1026_v49, %v1034_v50  ;;  %v1194_v46 = vld [vmem:[#allocation4 + $0x650] sm:$0xff] }
 0x234   :  { %4654 = vmatprep.subr.bf16.mxu1 %v5871_v51  ;;  %v1202_v49 = vld [vmem:[#allocation4 + $0x690] sm:$0xff]  ;;  %v5291_v51 = vcombine.low %v1186_v45, %v1194_v46 }
 0x235   :  { %v1210_v50 = vld [vmem:[#allocation4 + $0x6d0] sm:$0xff] }
 0x236   :  { %2588 = vmatpush1.bf16.msra.mxu0 %v5241_v0  ;;  %v5875_v0 = vld [vmem:[#allocation6 + $0xb0] ss:$8 sps:$4 sm:$0xff]  }
 0x237   :  { %2589 = vmatprep.subr.bf16.mxu0 %v5258_v1  ;;  %4655 = vmatpush1.bf16.msra.mxu1 %v5869_v52  ;;  %v5147_v1 = vcombine.low %v1042_v55, %v1050_v56  ;;  %v5308_v52 = vcombine.high %v1202_v49, %v1210_v50  ;;  %v5307_v55 = vcombine.low %v1202_v49, %v1210_v50  ;;  %v1139_v49 = vld [vmem:[#allocation4 + $0x498] sm:$0xff] }
 0x238   :  { %4656 = vmatprep.subr.bf16.mxu1 %v5874_v57  ;;  %v1234_v57 = vld [vmem:[#allocation4 + $0x790] sm:$0xff]  ;;  %v1147_v50 = vld [vmem:[#allocation4 + $0x4d8] sm:$0xff] }
 0x23a   :  { %2590 = vmatpush1.bf16.msra.mxu0 %v5257_v9  ;;  %v5878_v9 = vld [vmem:[#allocation6 + $0xc0] ss:$8 sps:$4 sm:$0xff]  }
 0x23b   :  { %2591 = vmatprep.subr.bf16.mxu0 %v5274_v10  ;;  %4657 = vmatpush1.bf16.msra.mxu1 %v5872_v58  ;;  %v5163_v10 = vcombine.low %v1058_v61, %v1066_v62  ;;  %v1242_v58 = vld [vmem:[#allocation4 + $0x7d0] sm:$0xff]  ;;  %v995_v61 = vld [vmem:[#allocation4 + $0x18] sm:$0xff] }
 0x23c   :  { %4658 = vmatprep.subr.bf16.mxu1 %v5877_v63  ;;  %v1003_v62 = vld [vmem:[#allocation4 + $0x58] sm:$0xff]  ;;  %v5339_v63 = vcombine.low %v1234_v57, %v1242_v58 }
 0x23e   :  { %2592 = vmatpush1.bf16.msra.mxu0 %v5273_v14  ;;  %v5881_v14 = vld [vmem:[#allocation6 + $0xd0] ss:$8 sps:$4 sm:$0xff]  }
 0x23f   :  { %2593 = vmatprep.subr.bf16.mxu0 %v5290_v15  ;;  %4659 = vmatpush1.bf16.msra.mxu1 %v5875_v0  ;;  %v5179_v15 = vcombine.low %v1074_v5, %v1082_v7  ;;  %v5102_v0 = vcombine.high %v995_v61, %v1003_v62  ;;  %v5101_v5 = vcombine.low %v995_v61, %v1003_v62  ;;  %v1187_v61 = vld [vmem:[#allocation4 + $0x618] sm:$0xff] }
 0x240   :  { %4660 = vmatprep.subr.bf16.mxu1 %v5880_v8  ;;  %v1027_v8 = vld [vmem:[#allocation4 + $0x118] sm:$0xff] }
 0x241   :  { %v1195_v62 = vld [vmem:[#allocation4 + $0x658] sm:$0xff] }
 0x242   :  { %2594 = vmatpush1.bf16.msra.mxu0 %v5289_v22  ;;  %v5884_v22 = vld [vmem:[#allocation6 + $0xe0] ss:$8 sps:$4 sm:$0xff]  }
 0x243   :  { %2595 = vmatprep.subr.bf16.mxu0 %v5306_v23  ;;  %4661 = vmatpush1.bf16.msra.mxu1 %v5878_v9  ;;  %v5195_v23 = vcombine.low %v1090_v12, %v1098_v13  ;;  %v1035_v9 = vld [vmem:[#allocation4 + $0x158] sm:$0xff] }
 0x244   :  { %4662 = vmatprep.subr.bf16.mxu1 %v5883_v35  ;;  %v1043_v12 = vld [vmem:[#allocation4 + $0x198] sm:$0xff]  ;;  %v5133_v35 = vcombine.low %v1027_v8, %v1035_v9 }
 0x245   :  { %v1051_v13 = vld [vmem:[#allocation4 + $0x1d8] sm:$0xff] }
 0x246   :  { %2596 = vmatpush1.bf16.msra.mxu0 %v5305_v28  ;;  %v5887_v28 = vld [vmem:[#allocation6 + $0xf0] ss:$8 sps:$4 sm:$0xff]  }
 0x247   :  { %2597 = vmatprep.subr.bf16.mxu0 %v5322_v29  ;;  %4663 = vmatpush1.bf16.msra.mxu1 %v5881_v14  ;;  %v5211_v29 = vcombine.low %v1106_v17, %v1114_v20  ;;  %v5150_v14 = vcombine.high %v1043_v12, %v1051_v13  ;;  %v5149_v17 = vcombine.low %v1043_v12, %v1051_v13  ;;  %v1235_v12 = vld [vmem:[#allocation4 + $0x798] sm:$0xff] }
 0x248   :  { %4664 = vmatprep.subr.bf16.mxu1 %v5886_v21  ;;  %v1075_v21 = vld [vmem:[#allocation4 + $0x298] sm:$0xff] }
 0x249   :  { %v1243_v13 = vld [vmem:[#allocation4 + $0x7d8] sm:$0xff] }
 0x24a   :  { %2598 = vmatpush1.bf16.msra.mxu0 %v5321_v34  ;;  %v5227_v34 = vcombine.low %v1122_v25, %v1130_v26  ;;  %v1091_v25 = vld [vmem:[#allocation4 + $0x318] sm:$0xff] }
 0x24b   :  { %2599 = vmatprep.subr.bf16.mxu0 %v5338_v36  ;;  %4665 = vmatpush1.bf16.msra.mxu1 %v5884_v22  ;;  %v5244_v36 = vcombine.high %v1138_v31, %v1146_v32  ;;  %v1083_v22 = vld [vmem:[#allocation4 + $0x2d8] sm:$0xff] }
 0x24c   :  { %4666 = vmatprep.subr.bf16.mxu1 %v5889_v27  ;;  %v1099_v26 = vld [vmem:[#allocation4 + $0x358] sm:$0xff]  ;;  %v5181_v27 = vcombine.low %v1075_v21, %v1083_v22 }
 0x24d   :  { %v1107_v31 = vld [vmem:[#allocation4 + $0x398] sm:$0xff] }
 0x24e   :  { %2600 = vmatpush1.bf16.msra.mxu0 %v5337_v41  ;;  %v1170_v41 = vld [vmem:[#allocation4 + $0x590] sm:$0xff]  ;;  %v1115_v32 = vld [vmem:[#allocation4 + $0x3d8] sm:$0xff] }
 0x24f   :  { %2610 = vmatprep.subr.bf16.mxu0 %v5100_v42  ;;  %4667 = vmatpush1.bf16.msra.mxu1 %v5887_v28  ;;  %v1178_v42 = vld [vmem:[#allocation4 + $0x5d0] sm:$0xff]  ;;  %v5198_v28 = vcombine.high %v1091_v25, %v1099_v26 }
 0x250   :  { %4677 = vmatprep.subr.bf16.mxu1 %v5892_v33  ;;  %v5276_v44 = vcombine.high %v1170_v41, %v1178_v42  ;;  %v5078_v33 = vld [vmem:[%s6647_s4] ss:$0 sm:$0xff] }
 0x251   :  { %2602 = vmatmul.mubr.bf16.vlgmr.msra.gmra.mrb[12].mxu0 %v6483_v19 }
 0x252   :  { %2611 = vmatpush1.bf16.msra.mxu0 %v5099_v47  ;;  %2642 = vmatprep.mubr.bf16.mxu0 %v6481_v18  ;;  %v5275_v47 = vcombine.low %v1170_v41, %v1178_v42 }
 0x253   :  { %2612 = vmatprep.subr.bf16.mxu0 %v5116_v48  ;;  %v5292_v48 = vcombine.high %v1186_v45, %v1194_v46  ;;  %v1123_v45 = vld [vmem:[#allocation4 + $0x418] sm:$0xff] }
 0x254   :  { %v1131_v46 = vld [vmem:[#allocation4 + $0x458] sm:$0xff] }
 0x256   :  { %2613 = vmatpush1.bf16.msra.mxu0 %v5115_v53  ;;  %v1218_v53 = vld [vmem:[#allocation4 + $0x710] sm:$0xff] }
 0x257   :  { %2614 = vmatprep.subr.bf16.mxu0 %v5132_v54  ;;  %v1226_v54 = vld [vmem:[#allocation4 + $0x750] sm:$0xff] }
 0x258   :  { %v5324_v56 = vcombine.high %v1218_v53, %v1226_v54 }
 0x25a   :  { %2615 = vmatpush1.bf16.msra.mxu0 %v5131_v59  ;;  %v5323_v59 = vcombine.low %v1218_v53, %v1226_v54  ;;  %v1155_v53 = vld [vmem:[#allocation4 + $0x518] sm:$0xff] }
 0x25b   :  { %2616 = vmatprep.subr.bf16.mxu0 %v5148_v60  ;;  %v5340_v60 = vcombine.high %v1234_v57, %v1242_v58  ;;  %v1163_v54 = vld [vmem:[#allocation4 + $0x558] sm:$0xff] }
 0x25c   :  { %v1171_v57 = vld [vmem:[#allocation4 + $0x598] sm:$0xff] }
 0x25d   :  { %v1179_v58 = vld [vmem:[#allocation4 + $0x5d8] sm:$0xff] }
 0x25e   :  { %2617 = vmatpush1.bf16.msra.mxu0 %v5147_v1  ;;  %v1011_v1 = vld [vmem:[#allocation4 + $0x98] sm:$0xff] }
 0x25f   :  { %2618 = vmatprep.subr.bf16.mxu0 %v5164_v2  ;;  %v1019_v2 = vld [vmem:[#allocation4 + $0xd8] sm:$0xff] }
 0x260   :  { %v5118_v7 = vcombine.high %v1011_v1, %v1019_v2 }
 0x262   :  { %2619 = vmatpush1.bf16.msra.mxu0 %v5163_v10  ;;  %v5117_v10 = vcombine.low %v1011_v1, %v1019_v2  ;;  %v1203_v1 = vld [vmem:[#allocation4 + $0x698] sm:$0xff] }
 0x263   :  { %2620 = vmatprep.subr.bf16.mxu0 %v5180_v11  ;;  %v5134_v11 = vcombine.high %v1027_v8, %v1035_v9  ;;  %v1211_v2 = vld [vmem:[#allocation4 + $0x6d8] sm:$0xff] }
 0x264   :  { %v1219_v8 = vld [vmem:[#allocation4 + $0x718] sm:$0xff] }
 0x265   :  { %v1227_v9 = vld [vmem:[#allocation4 + $0x758] sm:$0xff] }
 0x266   :  { %2621 = vmatpush1.bf16.msra.mxu0 %v5179_v15  ;;  %v1059_v15 = vld [vmem:[#allocation4 + $0x218] sm:$0xff] }
 0x267   :  { %2622 = vmatprep.subr.bf16.mxu0 %v5196_v16  ;;  %v1067_v16 = vld [vmem:[#allocation4 + $0x258] sm:$0xff] }
 0x268   :  { %v5166_v20 = vcombine.high %v1059_v15, %v1067_v16 }
 0x26a   :  { %2623 = vmatpush1.bf16.msra.mxu0 %v5195_v23  ;;  %v5165_v23 = vcombine.low %v1059_v15, %v1067_v16  ;;  %v997_v15 = vld [vmem:[#allocation4 + $0x28] sm:$0xff] }
 0x26b   :  { %2624 = vmatprep.subr.bf16.mxu0 %v5212_v24  ;;  %v5182_v24 = vcombine.high %v1075_v21, %v1083_v22  ;;  %v1005_v16 = vld [vmem:[#allocation4 + $0x68] sm:$0xff] }
 0x26c   :  { %v1013_v21 = vld [vmem:[#allocation4 + $0xa8] sm:$0xff] }
 0x26d   :  { %v1021_v22 = vld [vmem:[#allocation4 + $0xe8] sm:$0xff] }
 0x26e   :  { %2625 = vmatpush1.bf16.msra.mxu0 %v5211_v29 }
 0x26f   :  { %2626 = vmatprep.subr.bf16.mxu0 %v5228_v30 }
 0x272   :  { %2627 = vmatpush1.bf16.msra.mxu0 %v5227_v34 }
 0x273   :  { %2628 = vmatprep.subr.bf16.mxu0 %v5244_v36 }
 0x276   :  { %2629 = vmatpush1.bf16.msra.mxu0 %v5243_v39 }
 0x277   :  { %2630 = vmatprep.subr.bf16.mxu0 %v5260_v40  ;;  %v5197_v40 = vcombine.low %v1091_v25, %v1099_v26  ;;  %v1029_v25 = vld [vmem:[#allocation4 + $0x128] sm:$0xff] }
 0x278   :  { %v1037_v26 = vld [vmem:[#allocation4 + $0x168] sm:$0xff] }
 0x27a   :  { %2631 = vmatpush1.bf16.msra.mxu0 %v5259_v43  ;;  %v5214_v43 = vcombine.high %v1107_v31, %v1115_v32 }
 0x27b   :  { %2632 = vmatprep.subr.bf16.mxu0 %v5276_v44 }
 0x27e   :  { %2633 = vmatpush1.bf16.msra.mxu0 %v5275_v47  ;;  %v5213_v47 = vcombine.low %v1107_v31, %v1115_v32  ;;  %v1053_v31 = vld [vmem:[#allocation4 + $0x1e8] sm:$0xff]  ;;  %v5137_v32 = vcombine.low %v1029_v25, %v1037_v26 }
 0x27f   :  { %2634 = vmatprep.subr.bf16.mxu0 %v5292_v48  ;;  %v5230_v48 = vcombine.high %v1123_v45, %v1131_v46 }
 0x282   :  { %2635 = vmatpush1.bf16.msra.mxu0 %v5291_v51  ;;  %v5229_v51 = vcombine.low %v1123_v45, %v1131_v46  ;;  %v6518_v45 = vld [vmem:[%s6650_s7] sm:$0xff]  ;;  %v1093_v46 = vld [vmem:[#allocation4 + $0x328] sm:$0xff] }
 0x283   :  { %2636 = vmatprep.subr.bf16.mxu0 %v5308_v52  ;;  %v5246_v52 = vcombine.high %v1139_v49, %v1147_v50 }
 0x286   :  { %2637 = vmatpush1.bf16.msra.mxu0 %v5307_v55  ;;  %v5245_v55 = vcombine.low %v1139_v49, %v1147_v50 }
 0x287   :  { %2638 = vmatprep.subr.bf16.mxu0 %v5324_v56  ;;  %v5262_v56 = vcombine.high %v1155_v53, %v1163_v54 }
 0x28a   :  { %2639 = vmatpush1.bf16.msra.mxu0 %v5323_v59  ;;  %v5261_v59 = vcombine.low %v1155_v53, %v1163_v54 }
 0x28b   :  { %2640 = vmatprep.subr.bf16.mxu0 %v5340_v60  ;;  %v5278_v60 = vcombine.high %v1171_v57, %v1179_v58 }
 0x28e   :  { %2641 = vmatpush1.bf16.msra.mxu0 %v5339_v63  ;;  %v5277_v63 = vcombine.low %v1171_v57, %v1179_v58  ;;  %v1117_v57 = vld [vmem:[#allocation4 + $0x3e8] sm:$0xff] }
 0x28f   :  { %2651 = vmatprep.subr.bf16.mxu0 %v5102_v0  ;;  %v5294_v0 = vcombine.high %v1187_v61, %v1195_v62 }
 0x291   :  { %2643 = vmatmul.mubr.bf16.vlgmr.msra.gmra.mrb[16].mxu0 %v6483_v19 }
 0x292   :  { %2652 = vmatpush1.bf16.msra.mxu0 %v5101_v5  ;;  %2683 = vmatprep.mubr.bf16.mxu0 %v6481_v18  ;;  %v5293_v5 = vcombine.low %v1187_v61, %v1195_v62 }
 0x293   :  { %2653 = vmatprep.subr.bf16.mxu0 %v5118_v7  ;;  %v5310_v7 = vcombine.high %v1203_v1, %v1211_v2 }
 0x296   :  { %2654 = vmatpush1.bf16.msra.mxu0 %v5117_v10  ;;  %v5309_v10 = vcombine.low %v1203_v1, %v1211_v2 }
 0x297   :  { %2655 = vmatprep.subr.bf16.mxu0 %v5134_v11  ;;  %v5326_v11 = vcombine.high %v1219_v8, %v1227_v9 }
 0x29a   :  { %2656 = vmatpush1.bf16.msra.mxu0 %v5133_v35  ;;  %v5325_v35 = vcombine.low %v1219_v8, %v1227_v9  ;;  %v1125_v9 = vld [vmem:[#allocation4 + $0x428] sm:$0xff] }
 0x29b   :  { %2657 = vmatprep.subr.bf16.mxu0 %v5150_v14  ;;  %v5342_v14 = vcombine.high %v1235_v12, %v1243_v13 }
 0x29e   :  { %2658 = vmatpush1.bf16.msra.mxu0 %v5149_v17  ;;  %v5341_v17 = vcombine.low %v1235_v12, %v1243_v13 }
 0x29f   :  { %2659 = vmatprep.subr.bf16.mxu0 %v5166_v20  ;;  %v5106_v20 = vcombine.high %v997_v15, %v1005_v16 }
 0x2a2   :  { %2660 = vmatpush1.bf16.msra.mxu0 %v5165_v23  ;;  %v5105_v23 = vcombine.low %v997_v15, %v1005_v16  ;;  %v5890_v15 = vld [vmem:[#allocation6 + $0x100] ss:$8 sps:$4 sm:$0xff]  }
 0x2a3   :  { %2661 = vmatprep.subr.bf16.mxu0 %v5182_v24  ;;  %v5122_v24 = vcombine.high %v1013_v21, %v1021_v22  ;;  %v1141_v16 = vld [vmem:[#allocation4 + $0x4a8] sm:$0xff] }
 0x2a4   :  { %v5623_v29 = vpop.f32.mrb[4].mxu0  ;;  %v6498_v30 = vpop.f32.mrb[0].mxu1 }
 0x2a5   :  { %v5624_v34 = vpop.f32.mrb[5].mxu0  ;;  %v6503_v36 = vpop.f32.mrb[1].mxu1 }
 0x2a6   :  { %v5625_v37 = vadd.f32 %v5624_v34, %v5623_v29  ;;  %2662 = vmatpush1.bf16.msra.mxu0 %v5181_v27  ;;  %v5626_v38 = vpop.f32.mrb[6].mxu0  ;;  %v2730_v39 = vpop.f32.mrb[2].mxu1  ;;  %v5121_v27 = vcombine.low %v1013_v21, %v1021_v22  ;;  %v1045_v29 = vld [vmem:[#allocation4 + $0x1a8] sm:$0xff]  ;;  %v5895_v21 = vld [vmem:[#allocation6 + $0x114] ss:$8 sps:$4 sm:$0xff]  }
 0x2a7   :  { %v5627_v41 = vpop.f32.mrb[7].mxu0  ;;  %v2731_v42 = vpop.f32.mrb[3].mxu1  ;;  %2663 = vmatprep.subr.bf16.mxu0 %v5198_v28  ;;  %v5138_v28 = vcombine.high %v1029_v25, %v1037_v26  ;;  %v1061_v34 = vld [vmem:[#allocation4 + $0x228] sm:$0xff]  ;;  %v5153_v38 = vcombine.low %v1045_v29, %v1053_v31 }
 0x2a8   :  { %v986_v44 = vadd.f32 %v5625_v37, %v5078_v33  ;;  %v5154_v33 = vcombine.high %v1045_v29, %v1053_v31  ;;  %v1069_v37 = vld [vmem:[#allocation4 + $0x268] sm:$0xff] }
 0x2a9   :  { %v5170_v39 = vcombine.high %v1061_v34, %v1069_v37  ;;  %v1085_v41 = vld [vmem:[#allocation4 + $0x2e8] sm:$0xff]  ;;  %v5169_v42 = vcombine.low %v1061_v34, %v1069_v37  ;;  %v5901_v34 = vld [vmem:[#allocation6 + $0x134] ss:$8 sps:$4 sm:$0xff]  }
 0x2aa   :  { %991 = vst [vmem:[%s6653_s10] sm:$0xff] %v986_v44  ;;  %2664 = vmatpush1.bf16.msra.mxu0 %v5197_v40  ;;  %v1077_v40 = vld [vmem:[#allocation4 + $0x2a8] sm:$0xff] }
 0x2ab   :  { %2665 = vmatprep.subr.bf16.mxu0 %v5214_v43  ;;  %v6513_v43 = vld [vmem:[%s6649_s6] sm:$0xff]  ;;  %v5186_v44 = vcombine.high %v1077_v40, %v1085_v41  ;;  %v5185_v50 = vcombine.low %v1077_v40, %v1085_v41  ;;  %v1157_v25 = vld [vmem:[#allocation4 + $0x528] sm:$0xff] }
 0x2ac   :  { %v2867_v49 = vrot.slane %v6513_v43, %v6477_v6  ;;  %v1165_v26 = vld [vmem:[#allocation4 + $0x568] sm:$0xff] }
 0x2ad   :  { %v5266_v29 = vcombine.high %v1157_v25, %v1165_v26  ;;  %v5896_v31 = vld [vmem:[#allocation6 + $0x120] ss:$8 sps:$4 sm:$0xff]   ;;  %v5265_v37 = vcombine.low %v1157_v25, %v1165_v26  ;;  %v1047_v26 = vld [vmem:[#allocation4 + $0x1b8] sm:$0xff] }
 0x2ae   :  { %2666 = vmatpush1.bf16.msra.mxu0 %v5213_v47  ;;  %v1101_v47 = vld [vmem:[#allocation4 + $0x368] sm:$0xff] }
 0x2af   :  { %2667 = vmatprep.subr.bf16.mxu0 %v5230_v48  ;;  %v2863_v48 = vrot.slane %v6513_v43, %v6471_v4  ;;  %v1189_v40 = vld [vmem:[#allocation4 + $0x628] sm:$0xff] }
 0x2b0   :  { %v1197_v41 = vld [vmem:[#allocation4 + $0x668] sm:$0xff] }
 0x2b1   :  { %v5920_v25 = vld [vmem:[#allocation6 + $0x1a0] ss:$8 sps:$4 sm:$0xff]  }
 0x2b2   :  { %2668 = vmatpush1.bf16.msra.mxu0 %v5229_v51  ;;  %v2963_v51 = vrot.slane %v6518_v45, %v6471_v4 }
 0x2b3   :  { %2669 = vmatprep.subr.bf16.mxu0 %v5246_v52  ;;  %v5202_v52 = vcombine.high %v1093_v46, %v1101_v47 }
 0x2b6   :  { %2670 = vmatpush1.bf16.msra.mxu0 %v5245_v55  ;;  %v2967_v55 = vrot.slane %v6518_v45, %v6477_v6 }
 0x2b7   :  { %2671 = vmatprep.subr.bf16.mxu0 %v5262_v56  ;;  %v1109_v56 = vld [vmem:[#allocation4 + $0x3a8] sm:$0xff] }
 0x2b8   :  { %v5217_v13 = vcombine.low %v1109_v56, %v1117_v57 }
 0x2ba   :  { %2672 = vmatpush1.bf16.msra.mxu0 %v5261_v59 }
 0x2bb   :  { %2673 = vmatprep.subr.bf16.mxu0 %v5278_v60 }
 0x2be   :  { %2674 = vmatpush1.bf16.msra.mxu0 %v5277_v63 }
 0x2bf   :  { %2675 = vmatprep.subr.bf16.mxu0 %v5294_v0  ;;  %v5201_v0 = vcombine.low %v1093_v46, %v1101_v47  ;;  %v5298_v46 = vcombine.high %v1189_v40, %v1197_v41  ;;  %v5902_v47 = vld [vmem:[#allocation6 + $0x140] ss:$8 sps:$4 sm:$0xff]  }
 0x2c2   :  { %2676 = vmatpush1.bf16.msra.mxu0 %v5293_v5 }
 0x2c3   :  { %2677 = vmatprep.subr.bf16.mxu0 %v5310_v7  ;;  %v5218_v7 = vcombine.high %v1109_v56, %v1117_v57  ;;  %v1229_v56 = vld [vmem:[#allocation4 + $0x768] sm:$0xff] }
 0x2c4   :  { %v5910_v57 = vld [vmem:[#allocation6 + $0x164] ss:$8 sps:$4 sm:$0xff]  }
 0x2c6   :  { %2678 = vmatpush1.bf16.msra.mxu0 %v5309_v10  ;;  %v1133_v10 = vld [vmem:[#allocation4 + $0x468] sm:$0xff] }
 0x2c7   :  { %2679 = vmatprep.subr.bf16.mxu0 %v5326_v11  ;;  %v5233_v22 = vcombine.low %v1125_v9, %v1133_v10 }
 0x2ca   :  { %2680 = vmatpush1.bf16.msra.mxu0 %v5325_v35  ;;  %v5234_v35 = vcombine.high %v1125_v9, %v1133_v10  ;;  %v5916_v9 = vld [vmem:[#allocation6 + $0x184] ss:$8 sps:$4 sm:$0xff]  }
 0x2cb   :  { %2681 = vmatprep.subr.bf16.mxu0 %v5342_v14 }
 0x2ce   :  { %2682 = vmatpush1.bf16.msra.mxu0 %v5341_v17  ;;  %v1149_v17 = vld [vmem:[#allocation4 + $0x4e8] sm:$0xff] }
 0x2cf   :  { %2733 = vmatprep.subr.bf16.mxu0 %v5106_v20 }
 0x2d1   :  { %2684 = vmatmul.mubr.bf16.vlgmr.msra.gmra.mrb[20].mxu0 %v6483_v19 }
 0x2d2   :  { %2734 = vmatpush1.bf16.msra.mxu0 %v5105_v23  ;;  %2765 = vmatprep.mubr.bf16.mxu0 %v6481_v18  ;;  %v5250_v23 = vcombine.high %v1141_v16, %v1149_v17 }
 0x2d3   :  { %2735 = vmatprep.subr.bf16.mxu0 %v5122_v24  ;;  %v5893_v24 = vld [vmem:[#allocation6 + $0x110] ss:$8 sps:$4 sm:$0xff]  }
 0x2d6   :  { %2736 = vmatpush1.bf16.msra.mxu0 %v5121_v27  ;;  %v5898_v27 = vld [vmem:[#allocation6 + $0x124] ss:$8 sps:$4 sm:$0xff]  }
 0x2d7   :  { %2737 = vmatprep.subr.bf16.mxu0 %v5138_v28  ;;  %v5249_v28 = vcombine.low %v1141_v16, %v1149_v17  ;;  %v5917_v17 = vld [vmem:[#allocation6 + $0x190] ss:$8 sps:$4 sm:$0xff]  }
 0x2da   :  { %2738 = vmatpush1.bf16.msra.mxu0 %v5137_v32  ;;  %v1173_v32 = vld [vmem:[#allocation4 + $0x5a8] sm:$0xff] }
 0x2db   :  { %2739 = vmatprep.subr.bf16.mxu0 %v5154_v33  ;;  %v1181_v33 = vld [vmem:[#allocation4 + $0x5e8] sm:$0xff] }
 0x2de   :  { %2740 = vmatpush1.bf16.msra.mxu0 %v5153_v38  ;;  %v5282_v38 = vcombine.high %v1173_v32, %v1181_v33 }
 0x2df   :  { %2741 = vmatprep.subr.bf16.mxu0 %v5170_v39  ;;  %v5899_v39 = vld [vmem:[#allocation6 + $0x130] ss:$8 sps:$4 sm:$0xff]  }
 0x2e2   :  { %2742 = vmatpush1.bf16.msra.mxu0 %v5169_v42  ;;  %v5904_v42 = vld [vmem:[#allocation6 + $0x144] ss:$8 sps:$4 sm:$0xff]  }
 0x2e3   :  { %2743 = vmatprep.subr.bf16.mxu0 %v5186_v44  ;;  %v5281_v44 = vcombine.low %v1173_v32, %v1181_v33  ;;  %v5923_v32 = vld [vmem:[#allocation6 + $0x1b0] ss:$8 sps:$4 sm:$0xff]  }
 0x2e4   :  { %v2562_v53 = vpop.f32.mrb[8].mxu0  ;;  %v6526_v54 = vpop.f32.mrb[4].mxu1  ;;  %v1063_v33 = vld [vmem:[#allocation4 + $0x238] sm:$0xff] }
 0x2e5   :  { %v2940_v58 = vmul.f32 %v2863_v48, %v2562_v53  ;;  %v2564_v59 = vpop.f32.mrb[9].mxu0  ;;  %v6530_v60 = vpop.f32.mrb[5].mxu1  ;;  %v1205_v48 = vld [vmem:[#allocation4 + $0x6a8] sm:$0xff]  ;;  %v5905_v53 = vld [vmem:[#allocation6 + $0x150] ss:$8 sps:$4 sm:$0xff]  }
 0x2e6   :  { %v2941_v61 = vmul.f32 %v2867_v49, %v2564_v59  ;;  %v2566_v62 = vpop.f32.mrb[10].mxu0  ;;  %2744 = vmatpush1.bf16.msra.mxu0 %v5185_v50  ;;  %v2812_v63 = vpop.f32.mrb[6].mxu1  ;;  %v1213_v49 = vld [vmem:[#allocation4 + $0x6e8] sm:$0xff]  ;;  %v5907_v50 = vld [vmem:[#allocation6 + $0x154] ss:$8 sps:$4 sm:$0xff]  }
 0x2e7   :  { %v3040_v1 = vadd.f32 %v2963_v51, %v2940_v58  ;;  %v2567_v2 = vpop.f32.mrb[11].mxu0  ;;  %v2813_v5 = vpop.f32.mrb[7].mxu1  ;;  %2745 = vmatprep.subr.bf16.mxu0 %v5202_v52  ;;  %v5297_v51 = vcombine.low %v1189_v40, %v1197_v41  ;;  %v5314_v52 = vcombine.high %v1205_v48, %v1213_v49  ;;  %v5313_v58 = vcombine.low %v1205_v48, %v1213_v49  ;;  %v1237_v62 = vld [vmem:[#allocation4 + $0x7a8] sm:$0xff]  ;;  %v1079_v40 = vld [vmem:[#allocation4 + $0x2b8] sm:$0xff] }
 0x2e8   :  { %v3041_v8 = vadd.f32 %v2967_v55, %v2941_v61  ;;  %v1221_v55 = vld [vmem:[#allocation4 + $0x728] sm:$0xff]  ;;  %v5911_v5 = vld [vmem:[#allocation6 + $0x170] ss:$8 sps:$4 sm:$0xff]  }
 0x2e9   :  { %v3056_v11 = vmax.f32 %v3040_v1, 0.0  ;;  %v5330_v59 = vcombine.high %v1221_v55, %v1229_v56  ;;  %v5908_v61 = vld [vmem:[#allocation6 + $0x160] ss:$8 sps:$4 sm:$0xff]   ;;  %v5329_v1 = vcombine.low %v1221_v55, %v1229_v56  ;;  %v1087_v41 = vld [vmem:[#allocation4 + $0x2f8] sm:$0xff] }
 0x2ea   :  { %v3057_v12 = vmax.f32 %v3041_v8, 0.0  ;;  %2746 = vmatpush1.bf16.msra.mxu0 %v5201_v0  ;;  %v1245_v63 = vld [vmem:[#allocation4 + $0x7e8] sm:$0xff]  ;;  %v5913_v0 = vld [vmem:[#allocation6 + $0x174] ss:$8 sps:$4 sm:$0xff]   ;;  %v5190_v48 = vcombine.high %v1079_v40, %v1087_v41  ;;  %v5929_v49 = vld [vmem:[#allocation6 + $0x1d0] ss:$8 sps:$4 sm:$0xff]   ;;  %v5189_v56 = vcombine.low %v1079_v40, %v1087_v41 }
 0x2eb   :  { %2747 = vmatprep.subr.bf16.mxu0 %v5218_v7  ;;  %v3072_v20 = vpack.c.bf16 %v3056_v11, %v3056_v11  ;;  %v5346_v2 = vcombine.high %v1237_v62, %v1245_v63  ;;  %v999_v7 = vld [vmem:[#allocation4 + $0x38] sm:$0xff]  ;;  %v5345_v10 = vcombine.low %v1237_v62, %v1245_v63  ;;  %v5932_v62 = vld [vmem:[#allocation6 + $0x1e0] ss:$8 sps:$4 sm:$0xff]  }
 0x2ec   :  { %v3073_v14 = vpack.c.bf16 %v3057_v12, %v3057_v12  ;;  %v1007_v8 = vld [vmem:[#allocation4 + $0x78] sm:$0xff]  ;;  %v5914_v12 = vld [vmem:[#allocation6 + $0x180] ss:$8 sps:$4 sm:$0xff]  }
 0x2ed   :  { %v5110_v11 = vcombine.high %v999_v7, %v1007_v8  ;;  %v1111_v63 = vld [vmem:[#allocation4 + $0x3b8] sm:$0xff] }
 0x2ee   :  { %2748 = vmatpush1.bf16.msra.mxu0 %v5217_v13  ;;  %4668 = vmatprep.mubr.bf16.mxu1 %v3073_v14  ;;  %v1015_v13 = vld [vmem:[#allocation4 + $0xb8] sm:$0xff] }
 0x2ef   :  { %4669 = vmatmul.mubr.bf16.vlgmr.msra.gmra.mrb[8].mxu1 %v3072_v20  ;;  %2749 = vmatprep.subr.bf16.mxu0 %v5234_v35  ;;  %v1023_v35 = vld [vmem:[#allocation4 + $0xf8] sm:$0xff] }
 0x2f0   :  { %4678 = vmatpush1.bf16.msra.mxu1 %v5890_v15  ;;  %v5919_v14 = vld [vmem:[#allocation6 + $0x194] ss:$8 sps:$4 sm:$0xff]   ;;  %v5109_v15 = vcombine.low %v999_v7, %v1007_v8  ;;  %v5126_v16 = vcombine.high %v1015_v13, %v1023_v35 }
 0x2f1   :  { %4679 = vmatprep.subr.bf16.mxu1 %v5895_v21  ;;  %v1031_v20 = vld [vmem:[#allocation4 + $0x138] sm:$0xff] }
 0x2f2   :  { %2750 = vmatpush1.bf16.msra.mxu0 %v5233_v22  ;;  %v1039_v21 = vld [vmem:[#allocation4 + $0x178] sm:$0xff]  ;;  %v5922_v22 = vld [vmem:[#allocation6 + $0x1a4] ss:$8 sps:$4 sm:$0xff]  }
 0x2f3   :  { %2751 = vmatprep.subr.bf16.mxu0 %v5250_v23  ;;  %v5125_v23 = vcombine.low %v1015_v13, %v1023_v35  ;;  %v5935_v35 = vld [vmem:[#allocation6 + $0x1f0] ss:$8 sps:$4 sm:$0xff]  }
 0x2f4   :  { %4680 = vmatpush1.bf16.msra.mxu1 %v5893_v24  ;;  %v5142_v24 = vcombine.high %v1031_v20, %v1039_v21  ;;  %v1175_v40 = vld [vmem:[#allocation4 + $0x5b8] sm:$0xff] }
 0x2f5   :  { %4681 = vmatprep.subr.bf16.mxu1 %v5898_v27  ;;  %v1055_v27 = vld [vmem:[#allocation4 + $0x1f8] sm:$0xff] }
 0x2f6   :  { %2752 = vmatpush1.bf16.msra.mxu0 %v5249_v28  ;;  %v5925_v28 = vld [vmem:[#allocation6 + $0x1b4] ss:$8 sps:$4 sm:$0xff]  }
 0x2f7   :  { %2753 = vmatprep.subr.bf16.mxu0 %v5266_v29  ;;  %v5141_v29 = vcombine.low %v1031_v20, %v1039_v21  ;;  %v1183_v41 = vld [vmem:[#allocation4 + $0x5f8] sm:$0xff] }
 0x2f8   :  { %4682 = vmatpush1.bf16.msra.mxu1 %v5896_v31  ;;  %v5158_v31 = vcombine.high %v1047_v26, %v1055_v27 }
 0x2f9   :  { %4683 = vmatprep.subr.bf16.mxu1 %v5901_v34  ;;  %v1071_v34 = vld [vmem:[#allocation4 + $0x278] sm:$0xff] }
 0x2fa   :  { %2754 = vmatpush1.bf16.msra.mxu0 %v5265_v37  ;;  %v5928_v37 = vld [vmem:[#allocation6 + $0x1c4] ss:$8 sps:$4 sm:$0xff]  }
 0x2fb   :  { %2755 = vmatprep.subr.bf16.mxu0 %v5282_v38  ;;  %v5174_v38 = vcombine.high %v1063_v33, %v1071_v34 }
 0x2fc   :  { %4684 = vmatpush1.bf16.msra.mxu1 %v5899_v39  ;;  %v5926_v39 = vld [vmem:[#allocation6 + $0x1c0] ss:$8 sps:$4 sm:$0xff]  }
 0x2fd   :  { %4685 = vmatprep.subr.bf16.mxu1 %v5904_v42  ;;  %v5931_v42 = vld [vmem:[#allocation6 + $0x1d4] ss:$8 sps:$4 sm:$0xff]  }
 0x2fe   :  { %2756 = vmatpush1.bf16.msra.mxu0 %v5281_v44  ;;  %v6535_v44 = vsub.s32 2, %v6468_v3 }
 0x2ff   :  { %2757 = vmatprep.subr.bf16.mxu0 %v5298_v46  ;;  %v5173_v46 = vcombine.low %v1063_v33, %v1071_v34  ;;  %v1159_v33 = vld [vmem:[#allocation4 + $0x538] sm:$0xff] }
 0x300   :  { %4686 = vmatpush1.bf16.msra.mxu1 %v5902_v47  ;;  %v6538_v47 = vsub.s32 3, %v6468_v3  ;;  %v1167_v34 = vld [vmem:[#allocation4 + $0x578] sm:$0xff] }
 0x301   :  { %4687 = vmatprep.subr.bf16.mxu1 %v5907_v50  ;;  %v1095_v50 = vld [vmem:[#allocation4 + $0x338] sm:$0xff] }
 0x302   :  { %2758 = vmatpush1.bf16.msra.mxu0 %v5297_v51  ;;  %v1103_v51 = vld [vmem:[#allocation4 + $0x378] sm:$0xff]  ;;  %v2875_v55 = vrot.slane %v6513_v43, %v6538_v47 }
 0x303   :  { %2759 = vmatprep.subr.bf16.mxu0 %v5314_v52  ;;  %v2871_v52 = vrot.slane %v6513_v43, %v6535_v44 }
 0x304   :  { %4688 = vmatpush1.bf16.msra.mxu1 %v5905_v53  ;;  %v5934_v53 = vld [vmem:[#allocation6 + $0x1e4] ss:$8 sps:$4 sm:$0xff]  }
 0x305   :  { %4689 = vmatprep.subr.bf16.mxu1 %v5910_v57  ;;  %v2971_v57 = vrot.slane %v6518_v45, %v6535_v44 }
 0x306   :  { %2760 = vmatpush1.bf16.msra.mxu0 %v5313_v58  ;;  %v5206_v58 = vcombine.high %v1095_v50, %v1103_v51 }
 0x307   :  { %2761 = vmatprep.subr.bf16.mxu0 %v5330_v59 }
 0x308   :  { %4690 = vmatpush1.bf16.msra.mxu1 %v5908_v61  ;;  %v2975_v61 = vrot.slane %v6518_v45, %v6538_v47 }
 0x309   :  { %4691 = vmatprep.subr.bf16.mxu1 %v5913_v0  ;;  %v1119_v0 = vld [vmem:[#allocation4 + $0x3f8] sm:$0xff] }
 0x30a   :  { %2762 = vmatpush1.bf16.msra.mxu0 %v5329_v1  ;;  %v5221_v21 = vcombine.low %v1111_v63, %v1119_v0 }
 0x30b   :  { %2763 = vmatprep.subr.bf16.mxu0 %v5346_v2 }
 0x30c   :  { %4692 = vmatpush1.bf16.msra.mxu1 %v5911_v5  ;;  %v5937_v5 = vld [vmem:[#allocation6 + $0x1f4] ss:$8 sps:$4 sm:$0xff]  }
 0x30d   :  { %4693 = vmatprep.subr.bf16.mxu1 %v5916_v9  ;;  %v5205_v9 = vcombine.low %v1095_v50, %v1103_v51  ;;  %v1191_v50 = vld [vmem:[#allocation4 + $0x638] sm:$0xff] }
 0x30e   :  { %2764 = vmatpush1.bf16.msra.mxu0 %v5345_v10  ;;  %v1199_v51 = vld [vmem:[#allocation4 + $0x678] sm:$0xff] }
 0x30f   :  { %2815 = vmatprep.subr.bf16.mxu0 %v5110_v11 }
 0x310   :  { %4694 = vmatpush1.bf16.msra.mxu1 %v5914_v12  ;;  %v5222_v12 = vcombine.high %v1111_v63, %v1119_v0  ;;  %v5953_v63 = vld [vmem:[#allocation6 + $0x250] ss:$8 sps:$4 sm:$0xff]  }
 0x311   :  { %2766 = vmatmul.mubr.bf16.vlgmr.msra.gmra.mrb[24].mxu0 %v6483_v19  ;;  %4695 = vmatprep.subr.bf16.mxu1 %v5919_v14  ;;  %v1127_v14 = vld [vmem:[#allocation4 + $0x438] sm:$0xff] }
 0x312   :  { %2816 = vmatpush1.bf16.msra.mxu0 %v5109_v15  ;;  %2847 = vmatprep.mubr.bf16.mxu0 %v6481_v18  ;;  %v5157_v18 = vcombine.low %v1047_v26, %v1055_v27  ;;  %v1135_v15 = vld [vmem:[#allocation4 + $0x478] sm:$0xff] }
 0x313   :  { %2817 = vmatprep.subr.bf16.mxu0 %v5126_v16  ;;  %v1151_v26 = vld [vmem:[#allocation4 + $0x4f8] sm:$0xff] }
 0x314   :  { %4696 = vmatpush1.bf16.msra.mxu1 %v5917_v17  ;;  %v5940_v17 = vld [vmem:[#allocation6 + $0x204] ss:$8 sps:$4 sm:$0xff]   ;;  %v1223_v0 = vld [vmem:[#allocation4 + $0x738] sm:$0xff] }
 0x315   :  { %4697 = vmatprep.subr.bf16.mxu1 %v5922_v22  ;;  %v5238_v22 = vcombine.high %v1127_v14, %v1135_v15 }
 0x316   :  { %2818 = vmatpush1.bf16.msra.mxu0 %v5125_v23 }
 0x317   :  { %2819 = vmatprep.subr.bf16.mxu0 %v5142_v24  ;;  %v5938_v24 = vld [vmem:[#allocation6 + $0x200] ss:$8 sps:$4 sm:$0xff]  }
 0x318   :  { %4698 = vmatpush1.bf16.msra.mxu1 %v5920_v25  ;;  %v1143_v25 = vld [vmem:[#allocation4 + $0x4b8] sm:$0xff] }
 0x319   :  { %4699 = vmatprep.subr.bf16.mxu1 %v5925_v28  ;;  %v5943_v28 = vld [vmem:[#allocation6 + $0x214] ss:$8 sps:$4 sm:$0xff]  }
 0x31a   :  { %2820 = vmatpush1.bf16.msra.mxu0 %v5141_v29  ;;  %v5237_v29 = vcombine.low %v1127_v14, %v1135_v15  ;;  %v5964_v14 = vld [vmem:[#allocation6 + $0x284] ss:$8 sps:$4 sm:$0xff]  }
 0x31b   :  { %2821 = vmatprep.subr.bf16.mxu0 %v5158_v31  ;;  %v5254_v31 = vcombine.high %v1143_v25, %v1151_v26 }
 0x31c   :  { %4700 = vmatpush1.bf16.msra.mxu1 %v5923_v32  ;;  %v5941_v32 = vld [vmem:[#allocation6 + $0x210] ss:$8 sps:$4 sm:$0xff]  }
 0x31d   :  { %4701 = vmatprep.subr.bf16.mxu1 %v5928_v37  ;;  %v5946_v37 = vld [vmem:[#allocation6 + $0x224] ss:$8 sps:$4 sm:$0xff]  }
 0x31e   :  { %2822 = vmatpush1.bf16.msra.mxu0 %v5157_v18  ;;  %v5253_v18 = vcombine.low %v1143_v25, %v1151_v26  ;;  %v5976_v25 = vld [vmem:[#allocation6 + $0x2c4] ss:$8 sps:$4 sm:$0xff]   ;;  %v5974_v26 = vld [vmem:[#allocation6 + $0x2c0] ss:$8 sps:$4 sm:$0xff]  }
 0x31f   :  { %2823 = vmatprep.subr.bf16.mxu0 %v5174_v38  ;;  %v5270_v38 = vcombine.high %v1159_v33, %v1167_v34 }
 0x320   :  { %4702 = vmatpush1.bf16.msra.mxu1 %v5926_v39  ;;  %v5944_v39 = vld [vmem:[#allocation6 + $0x220] ss:$8 sps:$4 sm:$0xff]  }
 0x321   :  { %4703 = vmatprep.subr.bf16.mxu1 %v5931_v42  ;;  %v5949_v42 = vld [vmem:[#allocation6 + $0x234] ss:$8 sps:$4 sm:$0xff]  }
 0x322   :  { %2824 = vmatpush1.bf16.msra.mxu0 %v5173_v46  ;;  %v5269_v46 = vcombine.low %v1159_v33, %v1167_v34 }
 0x323   :  { %2825 = vmatprep.subr.bf16.mxu0 %v5190_v48  ;;  %v5286_v48 = vcombine.high %v1175_v40, %v1183_v41 }
 0x324   :  { %4704 = vmatpush1.bf16.msra.mxu1 %v5929_v49  ;;  %v2603_v59 = vpop.f32.mrb[12].mxu0  ;;  %v5947_v49 = vld [vmem:[#allocation6 + $0x230] ss:$8 sps:$4 sm:$0xff]  }
 0x325   :  { %v2942_v1 = vmul.f32 %v2871_v52, %v2603_v59  ;;  %v2605_v2 = vpop.f32.mrb[13].mxu0  ;;  %4705 = vmatprep.subr.bf16.mxu1 %v5934_v53  ;;  %v5952_v52 = vld [vmem:[#allocation6 + $0x244] ss:$8 sps:$4 sm:$0xff]   ;;  %v5285_v53 = vcombine.low %v1175_v40, %v1183_v41  ;;  %v5955_v59 = vld [vmem:[#allocation6 + $0x254] ss:$8 sps:$4 sm:$0xff]  }
 0x326   :  { %v2943_v7 = vmul.f32 %v2875_v55, %v2605_v2  ;;  %v2607_v8 = vpop.f32.mrb[14].mxu0  ;;  %2826 = vmatpush1.bf16.msra.mxu0 %v5189_v56  ;;  %v5302_v55 = vcombine.high %v1191_v50, %v1199_v51  ;;  %v5950_v56 = vld [vmem:[#allocation6 + $0x240] ss:$8 sps:$4 sm:$0xff]   ;;  %v5958_v2 = vld [vmem:[#allocation6 + $0x264] ss:$8 sps:$4 sm:$0xff]  }
 0x327   :  { %v3042_v10 = vadd.f32 %v2971_v57, %v2942_v1  ;;  %v2608_v11 = vpop.f32.mrb[15].mxu0  ;;  %2827 = vmatprep.subr.bf16.mxu0 %v5206_v58  ;;  %v1207_v57 = vld [vmem:[#allocation4 + $0x6b8] sm:$0xff]  ;;  %v5956_v8 = vld [vmem:[#allocation6 + $0x260] ss:$8 sps:$4 sm:$0xff]  }
 0x328   :  { %v3043_v13 = vadd.f32 %v2975_v61, %v2943_v7  ;;  %4706 = vmatpush1.bf16.msra.mxu1 %v5932_v62  ;;  %v1215_v58 = vld [vmem:[#allocation4 + $0x6f8] sm:$0xff]  ;;  %v5301_v61 = vcombine.low %v1191_v50, %v1199_v51 }
 0x329   :  { %v3058_v16 = vmax.f32 %v3042_v10, 0.0  ;;  %4707 = vmatprep.subr.bf16.mxu1 %v5937_v5  ;;  %v5318_v62 = vcombine.high %v1207_v57, %v1215_v58  ;;  %v1231_v1 = vld [vmem:[#allocation4 + $0x778] sm:$0xff]  ;;  %v5317_v5 = vcombine.low %v1207_v57, %v1215_v58  ;;  %v5986_v57 = vld [vmem:[#allocation6 + $0x300] ss:$8 sps:$4 sm:$0xff]  }
 0x32a   :  { %v3059_v20 = vmax.f32 %v3043_v13, 0.0  ;;  %2828 = vmatpush1.bf16.msra.mxu0 %v5205_v9  ;;  %v5334_v7 = vcombine.high %v1223_v0, %v1231_v1  ;;  %v1239_v9 = vld [vmem:[#allocation4 + $0x7b8] sm:$0xff] }
 0x32b   :  { %2829 = vmatprep.subr.bf16.mxu0 %v5222_v12  ;;  %v3074_v27 = vpack.c.bf16 %v3058_v16, %v3058_v16  ;;  %v1247_v10 = vld [vmem:[#allocation4 + $0x7f8] sm:$0xff]  ;;  %v5333_v12 = vcombine.low %v1223_v0, %v1231_v1  ;;  %v5962_v16 = vld [vmem:[#allocation6 + $0x280] ss:$8 sps:$4 sm:$0xff]  }
 0x32c   :  { %v3075_v23 = vpack.c.bf16 %v3059_v20, %v3059_v20  ;;  %4708 = vmatpush1.bf16.msra.mxu1 %v5935_v35  ;;  %v5961_v11 = vld [vmem:[#allocation6 + $0x274] ss:$8 sps:$4 sm:$0xff]   ;;  %v5350_v13 = vcombine.high %v1239_v9, %v1247_v10  ;;  %v5959_v35 = vld [vmem:[#allocation6 + $0x270] ss:$8 sps:$4 sm:$0xff]   ;;  %v5349_v15 = vcombine.low %v1239_v9, %v1247_v10  ;;  %v6006_v9 = vld [vmem:[#allocation6 + $0x364] ss:$8 sps:$4 sm:$0xff]  }
 0x32d   :  { %4718 = vmatprep.subr.bf16.mxu1 %v5940_v17  ;;  %v5967_v17 = vld [vmem:[#allocation6 + $0x294] ss:$8 sps:$4 sm:$0xff]   ;;  %v5965_v20 = vld [vmem:[#allocation6 + $0x290] ss:$8 sps:$4 sm:$0xff]   ;;  %v6004_v10 = vld [vmem:[#allocation6 + $0x360] ss:$8 sps:$4 sm:$0xff]  }
 0x32e   :  { %2830 = vmatpush1.bf16.msra.mxu0 %v5221_v21  ;;  %4709 = vmatprep.mubr.bf16.mxu1 %v3075_v23  ;;  %v5970_v21 = vld [vmem:[#allocation6 + $0x2a4] ss:$8 sps:$4 sm:$0xff]   ;;  %v5973_v23 = vld [vmem:[#allocation6 + $0x2b4] ss:$8 sps:$4 sm:$0xff]   ;;  %v5983_v51 = vld [vmem:[#allocation6 + $0x2f0] ss:$8 sps:$4 sm:$0xff]  }
 0x32f   :  { %4710 = vmatmul.mubr.bf16.vlgmr.msra.gmra.mrb[8].mxu1 %v3074_v27  ;;  %2831 = vmatprep.subr.bf16.mxu0 %v5238_v22  ;;  %v5968_v22 = vld [vmem:[#allocation6 + $0x2a0] ss:$8 sps:$4 sm:$0xff]   ;;  %v5979_v27 = vld [vmem:[#allocation6 + $0x2d4] ss:$8 sps:$4 sm:$0xff]   ;;  %v5995_v1 = vld [vmem:[#allocation6 + $0x330] ss:$8 sps:$4 sm:$0xff]  }
 0x330   :  { %4719 = vmatpush1.bf16.msra.mxu1 %v5938_v24  ;;  %v5971_v24 = vld [vmem:[#allocation6 + $0x2b0] ss:$8 sps:$4 sm:$0xff]   ;;  %v5985_v41 = vld [vmem:[#allocation6 + $0x2f4] ss:$8 sps:$4 sm:$0xff]  }
 0x331   :  { %4720 = vmatprep.subr.bf16.mxu1 %v5943_v28  ;;  %v6550_v28 = vsub.s32 4, %v6468_v3  ;;  %v5997_v0 = vld [vmem:[#allocation6 + $0x334] ss:$8 sps:$4 sm:$0xff]  }
 0x332   :  { %2832 = vmatpush1.bf16.msra.mxu0 %v5237_v29  ;;  %v6553_v29 = vsub.s32 5, %v6468_v3 }
 0x333   :  { %2833 = vmatprep.subr.bf16.mxu0 %v5254_v31  ;;  %v2879_v31 = vrot.slane %v6513_v43, %v6550_v28  ;;  %v2979_v34 = vrot.slane %v6518_v45, %v6550_v28 }
 0x334   :  { %4721 = vmatpush1.bf16.msra.mxu1 %v5941_v32  ;;  %v5982_v32 = vld [vmem:[#allocation6 + $0x2e4] ss:$8 sps:$4 sm:$0xff]   ;;  %v2883_v33 = vrot.slane %v6513_v43, %v6553_v29 }
 0x335   :  { %4722 = vmatprep.subr.bf16.mxu1 %v5946_v37 }
 0x336   :  { %2834 = vmatpush1.bf16.msra.mxu0 %v5253_v18  ;;  %v2983_v18 = vrot.slane %v6518_v45, %v6553_v29 }
 0x337   :  { %2835 = vmatprep.subr.bf16.mxu0 %v5270_v38  ;;  %v5980_v38 = vld [vmem:[#allocation6 + $0x2e0] ss:$8 sps:$4 sm:$0xff]  }
 0x338   :  { %4723 = vmatpush1.bf16.msra.mxu1 %v5944_v39 }
 0x339   :  { %4724 = vmatprep.subr.bf16.mxu1 %v5949_v42 }
 0x33a   :  { %2836 = vmatpush1.bf16.msra.mxu0 %v5269_v46 }
 0x33b   :  { %2837 = vmatprep.subr.bf16.mxu0 %v5286_v48 }
 0x33c   :  { %4725 = vmatpush1.bf16.msra.mxu1 %v5947_v49 }
 0x33d   :  { %4726 = vmatprep.subr.bf16.mxu1 %v5952_v52 }
 0x33e   :  { %2838 = vmatpush1.bf16.msra.mxu0 %v5285_v53  ;;  %v5988_v53 = vld [vmem:[#allocation6 + $0x304] ss:$8 sps:$4 sm:$0xff]  }
 0x33f   :  { %2839 = vmatprep.subr.bf16.mxu0 %v5302_v55 }
 0x340   :  { %4727 = vmatpush1.bf16.msra.mxu1 %v5950_v56 }
 0x341   :  { %4728 = vmatprep.subr.bf16.mxu1 %v5955_v59  ;;  %v5991_v59 = vld [vmem:[#allocation6 + $0x314] ss:$8 sps:$4 sm:$0xff]  }
 0x342   :  { %2840 = vmatpush1.bf16.msra.mxu0 %v5301_v61  ;;  %v5989_v61 = vld [vmem:[#allocation6 + $0x310] ss:$8 sps:$4 sm:$0xff]  }
 0x343   :  { %2841 = vmatprep.subr.bf16.mxu0 %v5318_v62  ;;  %v5994_v62 = vld [vmem:[#allocation6 + $0x324] ss:$8 sps:$4 sm:$0xff]  }
 0x344   :  { %4729 = vmatpush1.bf16.msra.mxu1 %v5953_v63  ;;  %v5992_v63 = vld [vmem:[#allocation6 + $0x320] ss:$8 sps:$4 sm:$0xff]  }
 0x345   :  { %4730 = vmatprep.subr.bf16.mxu1 %v5958_v2  ;;  %v6000_v2 = vld [vmem:[#allocation6 + $0x344] ss:$8 sps:$4 sm:$0xff]  }
 0x346   :  { %2842 = vmatpush1.bf16.msra.mxu0 %v5317_v5  ;;  %v5998_v5 = vld [vmem:[#allocation6 + $0x340] ss:$8 sps:$4 sm:$0xff]  }
 0x347   :  { %2843 = vmatprep.subr.bf16.mxu0 %v5334_v7  ;;  %v6003_v7 = vld [vmem:[#allocation6 + $0x354] ss:$8 sps:$4 sm:$0xff]  }
 0x348   :  { %4731 = vmatpush1.bf16.msra.mxu1 %v5956_v8  ;;  %v6001_v8 = vld [vmem:[#allocation6 + $0x350] ss:$8 sps:$4 sm:$0xff]  }
 0x349   :  { %4732 = vmatprep.subr.bf16.mxu1 %v5961_v11  ;;  %v6009_v11 = vld [vmem:[#allocation6 + $0x374] ss:$8 sps:$4 sm:$0xff]  }
 0x34a   :  { %2844 = vmatpush1.bf16.msra.mxu0 %v5333_v12  ;;  %v6007_v12 = vld [vmem:[#allocation6 + $0x370] ss:$8 sps:$4 sm:$0xff]  }
 0x34b   :  { %2845 = vmatprep.subr.bf16.mxu0 %v5350_v13  ;;  %v6012_v13 = vld [vmem:[#allocation6 + $0x384] ss:$8 sps:$4 sm:$0xff]  }
 0x34c   :  { %4733 = vmatpush1.bf16.msra.mxu1 %v5959_v35  ;;  %v6010_v35 = vld [vmem:[#allocation6 + $0x380] ss:$8 sps:$4 sm:$0xff]  }
 0x34d   :  { %4734 = vmatprep.subr.bf16.mxu1 %v5964_v14  ;;  %v6015_v14 = vld [vmem:[#allocation6 + $0x394] ss:$8 sps:$4 sm:$0xff]  }
 0x34e   :  { %2846 = vmatpush1.bf16.msra.mxu0 %v5349_v15  ;;  %v6013_v15 = vld [vmem:[#allocation6 + $0x390] ss:$8 sps:$4 sm:$0xff]  }
 0x350   :  { %4735 = vmatpush1.bf16.msra.mxu1 %v5962_v16  ;;  %v6018_v16 = vld [vmem:[#allocation6 + $0x3a4] ss:$8 sps:$4 sm:$0xff]  }
 0x351   :  { %2848 = vmatmul.mubr.bf16.vlgmr.msra.gmra.mrb[28].mxu0 %v6483_v19  ;;  %4736 = vmatprep.subr.bf16.mxu1 %v5967_v17  ;;  %v5977_v19 = vld [vmem:[#allocation6 + $0x2d0] ss:$8 sps:$4 sm:$0xff]   ;;  %v6016_v17 = vld [vmem:[#allocation6 + $0x3a0] ss:$8 sps:$4 sm:$0xff]  }
 0x354   :  { %4737 = vmatpush1.bf16.msra.mxu1 %v5965_v20  ;;  %v6021_v20 = vld [vmem:[#allocation6 + $0x3b4] ss:$8 sps:$4 sm:$0xff]  }
 0x355   :  { %4738 = vmatprep.subr.bf16.mxu1 %v5970_v21  ;;  %v6019_v21 = vld [vmem:[#allocation6 + $0x3b0] ss:$8 sps:$4 sm:$0xff]  }
 0x358   :  { %4739 = vmatpush1.bf16.msra.mxu1 %v5968_v22  ;;  %v6024_v22 = vld [vmem:[#allocation6 + $0x3c4] ss:$8 sps:$4 sm:$0xff]  }
 0x359   :  { %4740 = vmatprep.subr.bf16.mxu1 %v5973_v23  ;;  %v6566_v23 = vld [vmem:[%s6649_s6 + $0x8] sm:$0xff] }
 0x35c   :  { %4741 = vmatpush1.bf16.msra.mxu1 %v5971_v24  ;;  %v6022_v24 = vld [vmem:[#allocation6 + $0x3c0] ss:$8 sps:$4 sm:$0xff]  }
 0x35d   :  { %4742 = vmatprep.subr.bf16.mxu1 %v5976_v25  ;;  %v6027_v25 = vld [vmem:[#allocation6 + $0x3d4] ss:$8 sps:$4 sm:$0xff]  }
 0x360   :  { %4743 = vmatpush1.bf16.msra.mxu1 %v5974_v26  ;;  %v6569_v26 = vsub.s32 6, %v6468_v3 }
 0x361   :  { %4744 = vmatprep.subr.bf16.mxu1 %v5979_v27  ;;  %v2899_v27 = vrot.slane %v6566_v23, %v6477_v6 }
 0x364   :  { %4745 = vmatpush1.bf16.msra.mxu1 %v5977_v19  ;;  %v2644_v37 = vpop.f32.mrb[16].mxu0  ;;  %v6574_v19 = vsub.s32 7, %v6468_v3 }
 0x365   :  { %v2944_v39 = vmul.f32 %v2879_v31, %v2644_v37  ;;  %v2646_v40 = vpop.f32.mrb[17].mxu0  ;;  %4746 = vmatprep.subr.bf16.mxu1 %v5982_v32  ;;  %v6579_v31 = vld [vmem:[%s6650_s7 + $0x8] sm:$0xff]  ;;  %v6025_v32 = vld [vmem:[#allocation6 + $0x3d0] ss:$8 sps:$4 sm:$0xff]   ;;  %v2949_v37 = vmul.f32 %v2899_v27, %v6503_v36 }
 0x366   :  { %v2945_v42 = vmul.f32 %v2883_v33, %v2646_v40  ;;  %v2648_v46 = vpop.f32.mrb[18].mxu0  ;;  %v2887_v33 = vrot.slane %v6513_v43, %v6569_v26  ;;  %v2891_v3 = vrot.slane %v6513_v43, %v6574_v19  ;;  %v2991_v40 = vrot.slane %v6518_v45, %v6574_v19  ;;  %v6031_v43 = vld [vmem:[#allocation6 + $0x3f0] ss:$8 sps:$4 sm:$0xff]   ;;  %v6072_v27 = vld [vmem:[#allocation6 + $0x4c4] ss:$8 sps:$4 sm:$0xff]  }
 0x367   :  { %v3044_v48 = vadd.f32 %v2979_v34, %v2944_v39  ;;  %v2649_v49 = vpop.f32.mrb[19].mxu0  ;;  %v6030_v34 = vld [vmem:[#allocation6 + $0x3e4] ss:$8 sps:$4 sm:$0xff]  }
 0x368   :  { %v3045_v50 = vadd.f32 %v2983_v18, %v2945_v42  ;;  %4747 = vmatpush1.bf16.msra.mxu1 %v5980_v38  ;;  %v2999_v18 = vrot.slane %v6579_v31, %v6477_v6  ;;  %v2987_v38 = vrot.slane %v6518_v45, %v6569_v26  ;;  %v6034_v45 = vld [vmem:[#allocation6 + $0x400] ss:$8 sps:$4 sm:$0xff]  }
 0x369   :  { %v3060_v52 = vmax.f32 %v3044_v48, 0.0  ;;  %4748 = vmatprep.subr.bf16.mxu1 %v5985_v41  ;;  %v6028_v41 = vld [vmem:[#allocation6 + $0x3e0] ss:$8 sps:$4 sm:$0xff]   ;;  %v6033_v48 = vld [vmem:[#allocation6 + $0x3f4] ss:$8 sps:$4 sm:$0xff]  }
 0x36a   :  { %v3061_v55 = vmax.f32 %v3045_v50, 0.0  ;;  %v3049_v36 = vadd.f32 %v2999_v18, %v2949_v37  ;;  %v6073_v37 = vld [vmem:[#allocation6 + $0x4d0] ss:$8 sps:$4 sm:$0xff]  }
 0x36b   :  { %v3076_v58 = vpack.c.bf16 %v3060_v52, %v3060_v52 }
 0x36c   :  { %v3077_v56 = vpack.c.bf16 %v3061_v55, %v3061_v55  ;;  %4749 = vmatpush1.bf16.msra.mxu1 %v5983_v51 }
 0x36d   :  { %4759 = vmatprep.subr.bf16.mxu1 %v5988_v53 }
 0x36e   :  { %4750 = vmatprep.mubr.bf16.mxu1 %v3077_v56  ;;  %v6036_v56 = vld [vmem:[#allocation6 + $0x404] ss:$8 sps:$4 sm:$0xff]  }
 0x36f   :  { %4751 = vmatmul.mubr.bf16.vlgmr.msra.gmra.mrb[8].mxu1 %v3076_v58 }
 0x370   :  { %4760 = vmatpush1.bf16.msra.mxu1 %v5986_v57  ;;  %v3065_v57 = vmax.f32 %v3049_v36, 0.0  ;;  %v6081_v36 = vld [vmem:[#allocation6 + $0x4f4] ss:$8 sps:$4 sm:$0xff]  }
 0x371   :  { %4761 = vmatprep.subr.bf16.mxu1 %v5991_v59 }
 0x374   :  { %4762 = vmatpush1.bf16.msra.mxu1 %v5989_v61 }
 0x375   :  { %4763 = vmatprep.subr.bf16.mxu1 %v5994_v62  ;;  %v6039_v62 = vld [vmem:[#allocation6 + $0x414] ss:$8 sps:$4 sm:$0xff]  }
 0x378   :  { %4764 = vmatpush1.bf16.msra.mxu1 %v5992_v63  ;;  %v3081_v63 = vpack.c.bf16 %v3065_v57, %v3065_v57  ;;  %v6082_v57 = vld [vmem:[#allocation6 + $0x500] ss:$8 sps:$4 sm:$0xff]  }
 0x379   :  { %4765 = vmatprep.subr.bf16.mxu1 %v5997_v0  ;;  %v6037_v0 = vld [vmem:[#allocation6 + $0x410] ss:$8 sps:$4 sm:$0xff]  }
 0x37c   :  { %4766 = vmatpush1.bf16.msra.mxu1 %v5995_v1  ;;  %v6042_v1 = vld [vmem:[#allocation6 + $0x424] ss:$8 sps:$4 sm:$0xff]  }
 0x37d   :  { %4767 = vmatprep.subr.bf16.mxu1 %v6000_v2  ;;  %v6040_v2 = vld [vmem:[#allocation6 + $0x420] ss:$8 sps:$4 sm:$0xff]  }
 0x380   :  { %4768 = vmatpush1.bf16.msra.mxu1 %v5998_v5  ;;  %v6045_v5 = vld [vmem:[#allocation6 + $0x434] ss:$8 sps:$4 sm:$0xff]  }
 0x381   :  { %4769 = vmatprep.subr.bf16.mxu1 %v6003_v7  ;;  %v6043_v7 = vld [vmem:[#allocation6 + $0x430] ss:$8 sps:$4 sm:$0xff]  }
 0x384   :  { %4770 = vmatpush1.bf16.msra.mxu1 %v6001_v8  ;;  %v6048_v8 = vld [vmem:[#allocation6 + $0x444] ss:$8 sps:$4 sm:$0xff]  }
 0x385   :  { %4771 = vmatprep.subr.bf16.mxu1 %v6006_v9  ;;  %v6046_v9 = vld [vmem:[#allocation6 + $0x440] ss:$8 sps:$4 sm:$0xff]  }
 0x388   :  { %4772 = vmatpush1.bf16.msra.mxu1 %v6004_v10  ;;  %v6051_v10 = vld [vmem:[#allocation6 + $0x454] ss:$8 sps:$4 sm:$0xff]  }
 0x389   :  { %4773 = vmatprep.subr.bf16.mxu1 %v6009_v11  ;;  %v6049_v11 = vld [vmem:[#allocation6 + $0x450] ss:$8 sps:$4 sm:$0xff]  }
 0x38c   :  { %4774 = vmatpush1.bf16.msra.mxu1 %v6007_v12  ;;  %v6054_v12 = vld [vmem:[#allocation6 + $0x464] ss:$8 sps:$4 sm:$0xff]  }
 0x38d   :  { %4775 = vmatprep.subr.bf16.mxu1 %v6012_v13  ;;  %v6052_v13 = vld [vmem:[#allocation6 + $0x460] ss:$8 sps:$4 sm:$0xff]  }
 0x390   :  { %4776 = vmatpush1.bf16.msra.mxu1 %v6010_v35  ;;  %v6057_v35 = vld [vmem:[#allocation6 + $0x474] ss:$8 sps:$4 sm:$0xff]  }
 0x391   :  { %4777 = vmatprep.subr.bf16.mxu1 %v6015_v14  ;;  %v6055_v14 = vld [vmem:[#allocation6 + $0x470] ss:$8 sps:$4 sm:$0xff]  }
 0x394   :  { %4778 = vmatpush1.bf16.msra.mxu1 %v6013_v15  ;;  %v6060_v15 = vld [vmem:[#allocation6 + $0x484] ss:$8 sps:$4 sm:$0xff]  }
 0x395   :  { %4779 = vmatprep.subr.bf16.mxu1 %v6018_v16  ;;  %v6058_v16 = vld [vmem:[#allocation6 + $0x480] ss:$8 sps:$4 sm:$0xff]  }
 0x398   :  { %4780 = vmatpush1.bf16.msra.mxu1 %v6016_v17  ;;  %v6063_v17 = vld [vmem:[#allocation6 + $0x494] ss:$8 sps:$4 sm:$0xff]  }
 0x399   :  { %4781 = vmatprep.subr.bf16.mxu1 %v6021_v20  ;;  %v6061_v20 = vld [vmem:[#allocation6 + $0x490] ss:$8 sps:$4 sm:$0xff]  }
 0x39c   :  { %4782 = vmatpush1.bf16.msra.mxu1 %v6019_v21  ;;  %v6066_v21 = vld [vmem:[#allocation6 + $0x4a4] ss:$8 sps:$4 sm:$0xff]  }
 0x39d   :  { %4783 = vmatprep.subr.bf16.mxu1 %v6024_v22  ;;  %v6064_v22 = vld [vmem:[#allocation6 + $0x4a0] ss:$8 sps:$4 sm:$0xff]  }
 0x3a0   :  { %4784 = vmatpush1.bf16.msra.mxu1 %v6022_v24  ;;  %v6069_v24 = vld [vmem:[#allocation6 + $0x4b4] ss:$8 sps:$4 sm:$0xff]  }
 0x3a1   :  { %4785 = vmatprep.subr.bf16.mxu1 %v6027_v25  ;;  %v6067_v25 = vld [vmem:[#allocation6 + $0x4b0] ss:$8 sps:$4 sm:$0xff]  }
 0x3a4   :  { %4786 = vmatpush1.bf16.msra.mxu1 %v6025_v32  ;;  %v2685_v39 = vpop.f32.mrb[20].mxu0  ;;  %v6070_v32 = vld [vmem:[#allocation6 + $0x4c0] ss:$8 sps:$4 sm:$0xff]  }
 0x3a5   :  { %v2946_v42 = vmul.f32 %v2887_v33, %v2685_v39  ;;  %v2687_v46 = vpop.f32.mrb[21].mxu0  ;;  %4787 = vmatprep.subr.bf16.mxu1 %v6030_v34  ;;  %v2895_v33 = vrot.slane %v6566_v23, %v6471_v4  ;;  %v6075_v34 = vld [vmem:[#allocation6 + $0x4d4] ss:$8 sps:$4 sm:$0xff]   ;;  %v2907_v39 = vrot.slane %v6566_v23, %v6538_v47 }
 0x3a6   :  { %v2947_v49 = vmul.f32 %v2891_v3, %v2687_v46  ;;  %v2689_v50 = vpop.f32.mrb[22].mxu0  ;;  %v2995_v3 = vrot.slane %v6579_v31, %v6471_v4 }
 0x3a7   :  { %v3046_v51 = vadd.f32 %v2987_v38, %v2946_v42  ;;  %v2690_v52 = vpop.f32.mrb[23].mxu0  ;;  %v2948_v18 = vmul.f32 %v2895_v33, %v6498_v30  ;;  %v6078_v38 = vld [vmem:[#allocation6 + $0x4e4] ss:$8 sps:$4 sm:$0xff]   ;;  %v6076_v42 = vld [vmem:[#allocation6 + $0x4e0] ss:$8 sps:$4 sm:$0xff]   ;;  %v3003_v33 = vrot.slane %v6579_v31, %v6535_v44 }
 0x3a8   :  { %v3047_v53 = vadd.f32 %v2991_v40, %v2947_v49  ;;  %4788 = vmatpush1.bf16.msra.mxu1 %v6028_v41  ;;  %v3007_v41 = vrot.slane %v6579_v31, %v6538_v47  ;;  %v6079_v52 = vld [vmem:[#allocation6 + $0x4f0] ss:$8 sps:$4 sm:$0xff]   ;;  %v6087_v47 = vld [vmem:[#allocation6 + $0x514] ss:$8 sps:$4 sm:$0xff]  }
 0x3a9   :  { %v3062_v55 = vmax.f32 %v3046_v51, 0.0  ;;  %4789 = vmatprep.subr.bf16.mxu1 %v6033_v48  ;;  %v3048_v46 = vadd.f32 %v2995_v3, %v2948_v18  ;;  %v3015_v18 = vrot.slane %v6579_v31, %v6553_v29 }
 0x3aa   :  { %v3063_v58 = vmax.f32 %v3047_v53, 0.0 }
 0x3ab   :  { %v3078_v61 = vpack.c.bf16 %v3062_v55, %v3062_v55  ;;  %v3064_v53 = vmax.f32 %v3048_v46, 0.0 }
 0x3ac   :  { %v3079_v59 = vpack.c.bf16 %v3063_v58, %v3063_v58  ;;  %4790 = vmatpush1.bf16.msra.mxu1 %v6031_v43  ;;  %v6084_v43 = vld [vmem:[#allocation6 + $0x504] ss:$8 sps:$4 sm:$0xff]  }
 0x3ad   :  { %4800 = vmatprep.subr.bf16.mxu1 %v6036_v56  ;;  %v3080_v58 = vpack.c.bf16 %v3064_v53, %v3064_v53  ;;  %v6138_v53 = vld [vmem:[#allocation6 + $0x624] ss:$8 sps:$4 sm:$0xff]  }
 0x3ae   :  { %4791 = vmatprep.mubr.bf16.mxu1 %v3079_v59  ;;  %v6085_v59 = vld [vmem:[#allocation6 + $0x510] ss:$8 sps:$4 sm:$0xff]  }
 0x3af   :  { %4792 = vmatmul.mubr.bf16.vlgmr.msra.gmra.mrb[8].mxu1 %v3078_v61  ;;  %v6088_v61 = vld [vmem:[#allocation6 + $0x520] ss:$8 sps:$4 sm:$0xff]  }
 0x3b0   :  { %4801 = vmatpush1.bf16.msra.mxu1 %v6034_v45  ;;  %4832 = vmatprep.mubr.bf16.mxu1 %v3081_v63  ;;  %v6090_v45 = vld [vmem:[#allocation6 + $0x524] ss:$8 sps:$4 sm:$0xff]   ;;  %v6091_v63 = vld [vmem:[#allocation6 + $0x530] ss:$8 sps:$4 sm:$0xff]  }
 0x3b1   :  { %4802 = vmatprep.subr.bf16.mxu1 %v6039_v62  ;;  %v6093_v62 = vld [vmem:[#allocation6 + $0x534] ss:$8 sps:$4 sm:$0xff]  }
 0x3b4   :  { %4803 = vmatpush1.bf16.msra.mxu1 %v6037_v0  ;;  %v6096_v0 = vld [vmem:[#allocation6 + $0x544] ss:$8 sps:$4 sm:$0xff]  }
 0x3b5   :  { %4804 = vmatprep.subr.bf16.mxu1 %v6042_v1  ;;  %v6094_v1 = vld [vmem:[#allocation6 + $0x540] ss:$8 sps:$4 sm:$0xff]  }
 0x3b8   :  { %4805 = vmatpush1.bf16.msra.mxu1 %v6040_v2  ;;  %v6099_v2 = vld [vmem:[#allocation6 + $0x554] ss:$8 sps:$4 sm:$0xff]  }
 0x3b9   :  { %4806 = vmatprep.subr.bf16.mxu1 %v6045_v5  ;;  %v6097_v5 = vld [vmem:[#allocation6 + $0x550] ss:$8 sps:$4 sm:$0xff]  }
 0x3bc   :  { %4807 = vmatpush1.bf16.msra.mxu1 %v6043_v7  ;;  %v6102_v7 = vld [vmem:[#allocation6 + $0x564] ss:$8 sps:$4 sm:$0xff]  }
 0x3bd   :  { %4808 = vmatprep.subr.bf16.mxu1 %v6048_v8  ;;  %v6100_v8 = vld [vmem:[#allocation6 + $0x560] ss:$8 sps:$4 sm:$0xff]  }
 0x3c0   :  { %4809 = vmatpush1.bf16.msra.mxu1 %v6046_v9  ;;  %v6105_v9 = vld [vmem:[#allocation6 + $0x574] ss:$8 sps:$4 sm:$0xff]  }
 0x3c1   :  { %4810 = vmatprep.subr.bf16.mxu1 %v6051_v10  ;;  %v6103_v10 = vld [vmem:[#allocation6 + $0x570] ss:$8 sps:$4 sm:$0xff]  }
 0x3c4   :  { %4811 = vmatpush1.bf16.msra.mxu1 %v6049_v11  ;;  %v6108_v11 = vld [vmem:[#allocation6 + $0x584] ss:$8 sps:$4 sm:$0xff]  }
 0x3c5   :  { %4812 = vmatprep.subr.bf16.mxu1 %v6054_v12  ;;  %v6106_v12 = vld [vmem:[#allocation6 + $0x580] ss:$8 sps:$4 sm:$0xff]  }
 0x3c8   :  { %4813 = vmatpush1.bf16.msra.mxu1 %v6052_v13  ;;  %v6111_v13 = vld [vmem:[#allocation6 + $0x594] ss:$8 sps:$4 sm:$0xff]  }
 0x3c9   :  { %4814 = vmatprep.subr.bf16.mxu1 %v6057_v35  ;;  %v6109_v35 = vld [vmem:[#allocation6 + $0x590] ss:$8 sps:$4 sm:$0xff]  }
 0x3cc   :  { %4815 = vmatpush1.bf16.msra.mxu1 %v6055_v14  ;;  %v6114_v14 = vld [vmem:[#allocation6 + $0x5a4] ss:$8 sps:$4 sm:$0xff]  }
 0x3cd   :  { %4816 = vmatprep.subr.bf16.mxu1 %v6060_v15  ;;  %v6112_v15 = vld [vmem:[#allocation6 + $0x5a0] ss:$8 sps:$4 sm:$0xff]  }
 0x3d0   :  { %4817 = vmatpush1.bf16.msra.mxu1 %v6058_v16  ;;  %v6117_v16 = vld [vmem:[#allocation6 + $0x5b4] ss:$8 sps:$4 sm:$0xff]  }
 0x3d1   :  { %4818 = vmatprep.subr.bf16.mxu1 %v6063_v17  ;;  %v6115_v17 = vld [vmem:[#allocation6 + $0x5b0] ss:$8 sps:$4 sm:$0xff]  }
 0x3d4   :  { %4819 = vmatpush1.bf16.msra.mxu1 %v6061_v20  ;;  %v6120_v20 = vld [vmem:[#allocation6 + $0x5c4] ss:$8 sps:$4 sm:$0xff]  }
 0x3d5   :  { %4820 = vmatprep.subr.bf16.mxu1 %v6066_v21  ;;  %v6118_v21 = vld [vmem:[#allocation6 + $0x5c0] ss:$8 sps:$4 sm:$0xff]  }
 0x3d8   :  { %4821 = vmatpush1.bf16.msra.mxu1 %v6064_v22  ;;  %v2903_v22 = vrot.slane %v6566_v23, %v6535_v44  ;;  %v6127_v44 = vld [vmem:[#allocation6 + $0x5f0] ss:$8 sps:$4 sm:$0xff]  }
 0x3d9   :  { %4822 = vmatprep.subr.bf16.mxu1 %v6069_v24  ;;  %v6123_v24 = vld [vmem:[#allocation6 + $0x5d4] ss:$8 sps:$4 sm:$0xff]  }
 0x3dc   :  { %4823 = vmatpush1.bf16.msra.mxu1 %v6067_v25  ;;  %v2915_v25 = vrot.slane %v6566_v23, %v6553_v29  ;;  %v6130_v29 = vld [vmem:[#allocation6 + $0x600] ss:$8 sps:$4 sm:$0xff]  }
 0x3dd   :  { %4824 = vmatprep.subr.bf16.mxu1 %v6072_v27  ;;  %v6121_v27 = vld [vmem:[#allocation6 + $0x5d0] ss:$8 sps:$4 sm:$0xff]  }
 0x3e0   :  { %4825 = vmatpush1.bf16.msra.mxu1 %v6070_v32 }
 0x3e1   :  { %4826 = vmatprep.subr.bf16.mxu1 %v6075_v34  ;;  %v6126_v34 = vld [vmem:[#allocation6 + $0x5e4] ss:$8 sps:$4 sm:$0xff]  }
 0x3e4   :  { %4827 = vmatpush1.bf16.msra.mxu1 %v6073_v37  ;;  %v6599_v40 = vpop.f32.mrb[24].mxu0  ;;  %v2953_v37 = vmul.f32 %v2915_v25, %v6530_v60  ;;  %v6132_v60 = vld [vmem:[#allocation6 + $0x604] ss:$8 sps:$4 sm:$0xff]  }
 0x3e5   :  { %v2769_v48 = vpop.f32.mrb[25].mxu0  ;;  %4828 = vmatprep.subr.bf16.mxu1 %v6078_v38  ;;  %v2950_v32 = vmul.f32 %v2903_v22, %v6599_v40  ;;  %v6124_v38 = vld [vmem:[#allocation6 + $0x5e0] ss:$8 sps:$4 sm:$0xff]   ;;  %v3023_v22 = vrot.slane %v6579_v31, %v6574_v19 }
 0x3e6   :  { %v2951_v30 = vmul.f32 %v2907_v39, %v2769_v48  ;;  %v2771_v49 = vpop.f32.mrb[26].mxu0  ;;  %v3053_v40 = vadd.f32 %v3015_v18, %v2953_v37 }
 0x3e7   :  { %v2772_v50 = vpop.f32.mrb[27].mxu0  ;;  %v3050_v39 = vadd.f32 %v3003_v33, %v2950_v32  ;;  %v6175_v33 = vld [vmem:[#allocation6 + $0x6f0] ss:$8 sps:$4 sm:$0xff]  }
 0x3e8   :  { %v3051_v51 = vadd.f32 %v3007_v41, %v2951_v30  ;;  %4829 = vmatpush1.bf16.msra.mxu1 %v6076_v42  ;;  %v6129_v42 = vld [vmem:[#allocation6 + $0x5f4] ss:$8 sps:$4 sm:$0xff]   ;;  %v3069_v30 = vmax.f32 %v3053_v40, 0.0 }
 0x3e9   :  { %4830 = vmatprep.subr.bf16.mxu1 %v6081_v36  ;;  %v3066_v36 = vmax.f32 %v3050_v39, 0.0  ;;  %v6135_v50 = vld [vmem:[#allocation6 + $0x614] ss:$8 sps:$4 sm:$0xff]  }
 0x3ea   :  { %v3067_v55 = vmax.f32 %v3051_v51, 0.0  ;;  %v3085_v51 = vpack.c.bf16 %v3069_v30, %v3069_v30  ;;  %v6189_v40 = vld [vmem:[#allocation6 + $0x734] ss:$8 sps:$4 sm:$0xff]   ;;  %v6198_v30 = vld [vmem:[#allocation6 + $0x764] ss:$8 sps:$4 sm:$0xff]  }
 0x3eb   :  { %v3082_v49 = vpack.c.bf16 %v3066_v36, %v3066_v36  ;;  %v6195_v36 = vld [vmem:[#allocation6 + $0x754] ss:$8 sps:$4 sm:$0xff]  }
 0x3ec   :  { %v3083_v56 = vpack.c.bf16 %v3067_v55, %v3067_v55  ;;  %4831 = vmatpush1.bf16.msra.mxu1 %v6079_v52  ;;  %v6133_v52 = vld [vmem:[#allocation6 + $0x610] ss:$8 sps:$4 sm:$0xff]   ;;  %v6141_v55 = vld [vmem:[#allocation6 + $0x634] ss:$8 sps:$4 sm:$0xff]  }
 0x3ed   :  { %4841 = vmatprep.subr.bf16.mxu1 %v6084_v43  ;;  %v6136_v43 = vld [vmem:[#allocation6 + $0x620] ss:$8 sps:$4 sm:$0xff]  }
 0x3ef   :  { %4833 = vmatmul.mubr.bf16.vlgmr.msra.gmra.mrb[8].mxu1 %v3080_v58  ;;  %v6142_v58 = vld [vmem:[#allocation6 + $0x640] ss:$8 sps:$4 sm:$0xff]  }
 0x3f0   :  { %4842 = vmatpush1.bf16.msra.mxu1 %v6082_v57  ;;  %4873 = vmatprep.mubr.bf16.mxu1 %v3083_v56  ;;  %v6139_v56 = vld [vmem:[#allocation6 + $0x630] ss:$8 sps:$4 sm:$0xff]   ;;  %v6144_v57 = vld [vmem:[#allocation6 + $0x644] ss:$8 sps:$4 sm:$0xff]  }
 0x3f1   :  { %4843 = vmatprep.subr.bf16.mxu1 %v6087_v47  ;;  %v6147_v47 = vld [vmem:[#allocation6 + $0x654] ss:$8 sps:$4 sm:$0xff]  }
 0x3f4   :  { %4844 = vmatpush1.bf16.msra.mxu1 %v6085_v59  ;;  %v6145_v59 = vld [vmem:[#allocation6 + $0x650] ss:$8 sps:$4 sm:$0xff]  }
 0x3f5   :  { %4845 = vmatprep.subr.bf16.mxu1 %v6090_v45  ;;  %v6150_v45 = vld [vmem:[#allocation6 + $0x664] ss:$8 sps:$4 sm:$0xff]  }
 0x3f8   :  { %4846 = vmatpush1.bf16.msra.mxu1 %v6088_v61  ;;  %v6148_v61 = vld [vmem:[#allocation6 + $0x660] ss:$8 sps:$4 sm:$0xff]  }
 0x3f9   :  { %4847 = vmatprep.subr.bf16.mxu1 %v6093_v62  ;;  %v6153_v62 = vld [vmem:[#allocation6 + $0x674] ss:$8 sps:$4 sm:$0xff]  }
 0x3fc   :  { %4848 = vmatpush1.bf16.msra.mxu1 %v6091_v63  ;;  %v6151_v63 = vld [vmem:[#allocation6 + $0x670] ss:$8 sps:$4 sm:$0xff]  }
 0x3fd   :  { %4849 = vmatprep.subr.bf16.mxu1 %v6096_v0  ;;  %v6156_v0 = vld [vmem:[#allocation6 + $0x684] ss:$8 sps:$4 sm:$0xff]  }
 0x400   :  { %4850 = vmatpush1.bf16.msra.mxu1 %v6094_v1  ;;  %v6154_v1 = vld [vmem:[#allocation6 + $0x680] ss:$8 sps:$4 sm:$0xff]  }
 0x401   :  { %4851 = vmatprep.subr.bf16.mxu1 %v6099_v2  ;;  %v6159_v2 = vld [vmem:[#allocation6 + $0x694] ss:$8 sps:$4 sm:$0xff]  }
 0x404   :  { %4852 = vmatpush1.bf16.msra.mxu1 %v6097_v5  ;;  %v6157_v5 = vld [vmem:[#allocation6 + $0x690] ss:$8 sps:$4 sm:$0xff]  }
 0x405   :  { %4853 = vmatprep.subr.bf16.mxu1 %v6102_v7  ;;  %v6162_v7 = vld [vmem:[#allocation6 + $0x6a4] ss:$8 sps:$4 sm:$0xff]  }
 0x408   :  { %4854 = vmatpush1.bf16.msra.mxu1 %v6100_v8  ;;  %v6160_v8 = vld [vmem:[#allocation6 + $0x6a0] ss:$8 sps:$4 sm:$0xff]  }
 0x409   :  { %4855 = vmatprep.subr.bf16.mxu1 %v6105_v9  ;;  %v6165_v9 = vld [vmem:[#allocation6 + $0x6b4] ss:$8 sps:$4 sm:$0xff]  }
 0x40c   :  { %4856 = vmatpush1.bf16.msra.mxu1 %v6103_v10  ;;  %v6163_v10 = vld [vmem:[#allocation6 + $0x6b0] ss:$8 sps:$4 sm:$0xff]  }
 0x40d   :  { %4857 = vmatprep.subr.bf16.mxu1 %v6108_v11  ;;  %v6168_v11 = vld [vmem:[#allocation6 + $0x6c4] ss:$8 sps:$4 sm:$0xff]  }
 0x410   :  { %4858 = vmatpush1.bf16.msra.mxu1 %v6106_v12  ;;  %v6166_v12 = vld [vmem:[#allocation6 + $0x6c0] ss:$8 sps:$4 sm:$0xff]  }
 0x411   :  { %4859 = vmatprep.subr.bf16.mxu1 %v6111_v13  ;;  %v2911_v13 = vrot.slane %v6566_v23, %v6550_v28 }
 0x414   :  { %4860 = vmatpush1.bf16.msra.mxu1 %v6109_v35  ;;  %v6171_v35 = vld [vmem:[#allocation6 + $0x6d4] ss:$8 sps:$4 sm:$0xff]  }
 0x415   :  { %4861 = vmatprep.subr.bf16.mxu1 %v6114_v14  ;;  %v2923_v14 = vrot.slane %v6566_v23, %v6574_v19  ;;  %v6181_v19 = vld [vmem:[#allocation6 + $0x710] ss:$8 sps:$4 sm:$0xff]  }
 0x418   :  { %4862 = vmatpush1.bf16.msra.mxu1 %v6112_v15  ;;  %v6169_v15 = vld [vmem:[#allocation6 + $0x6d0] ss:$8 sps:$4 sm:$0xff]  }
 0x419   :  { %4863 = vmatprep.subr.bf16.mxu1 %v6117_v16  ;;  %v2952_v16 = vmul.f32 %v2911_v13, %v6526_v54  ;;  %v6180_v54 = vld [vmem:[#allocation6 + $0x704] ss:$8 sps:$4 sm:$0xff]  }
 0x41c   :  { %4864 = vmatpush1.bf16.msra.mxu1 %v6115_v17  ;;  %v3011_v17 = vrot.slane %v6579_v31, %v6550_v28  ;;  %v6178_v28 = vld [vmem:[#allocation6 + $0x700] ss:$8 sps:$4 sm:$0xff]  }
 0x41d   :  { %4865 = vmatprep.subr.bf16.mxu1 %v6120_v20  ;;  %v6174_v20 = vld [vmem:[#allocation6 + $0x6e4] ss:$8 sps:$4 sm:$0xff]  }
 0x41e   :  { %v3052_v25 = vadd.f32 %v3011_v17, %v2952_v16 }
 0x420   :  { %4866 = vmatpush1.bf16.msra.mxu1 %v6118_v21 }
 0x421   :  { %4867 = vmatprep.subr.bf16.mxu1 %v6123_v24  ;;  %v6172_v24 = vld [vmem:[#allocation6 + $0x6e0] ss:$8 sps:$4 sm:$0xff]  }
 0x424   :  { %4868 = vmatpush1.bf16.msra.mxu1 %v6121_v27  ;;  %v6613_v3 = vpop.f32.mrb[28].mxu0  ;;  %v6177_v27 = vld [vmem:[#allocation6 + $0x6f4] ss:$8 sps:$4 sm:$0xff]  }
 0x425   :  { %v6615_v41 = vpop.f32.mrb[29].mxu0  ;;  %4869 = vmatprep.subr.bf16.mxu1 %v6126_v34  ;;  %v3068_v34 = vmax.f32 %v3052_v25, 0.0 }
 0x426   :  { %v2853_v46 = vpop.f32.mrb[30].mxu0  ;;  %v2955_v21 = vmul.f32 %v2923_v14, %v6615_v41  ;;  %v6186_v41 = vld [vmem:[#allocation6 + $0x724] ss:$8 sps:$4 sm:$0xff]  }
 0x427   :  { %v2854_v48 = vpop.f32.mrb[31].mxu0  ;;  %v3084_v18 = vpack.c.bf16 %v3068_v34, %v3068_v34  ;;  %v6187_v46 = vld [vmem:[#allocation6 + $0x730] ss:$8 sps:$4 sm:$0xff]  }
 0x428   :  { %4870 = vmatpush1.bf16.msra.mxu1 %v6124_v38  ;;  %v3055_v32 = vadd.f32 %v3023_v22, %v2955_v21  ;;  %v6183_v38 = vld [vmem:[#allocation6 + $0x714] ss:$8 sps:$4 sm:$0xff]   ;;  %v6192_v48 = vld [vmem:[#allocation6 + $0x744] ss:$8 sps:$4 sm:$0xff]  }
 0x429   :  { %4871 = vmatprep.subr.bf16.mxu1 %v6129_v42  ;;  %v6184_v42 = vld [vmem:[#allocation6 + $0x720] ss:$8 sps:$4 sm:$0xff]  }
 0x42a   :  { %v3071_v37 = vmax.f32 %v3055_v32, 0.0 }
 0x42c   :  { %4872 = vmatpush1.bf16.msra.mxu1 %v6127_v44  ;;  %v3087_v39 = vpack.c.bf16 %v3071_v37, %v3071_v37  ;;  %v6190_v44 = vld [vmem:[#allocation6 + $0x740] ss:$8 sps:$4 sm:$0xff]  }
 0x42d   :  { %4882 = vmatprep.subr.bf16.mxu1 %v6132_v60  ;;  %v6193_v60 = vld [vmem:[#allocation6 + $0x750] ss:$8 sps:$4 sm:$0xff]  }
 0x42f   :  { %4874 = vmatmul.mubr.bf16.vlgmr.msra.gmra.mrb[8].mxu1 %v3082_v49  ;;  %v6201_v49 = vld [vmem:[#allocation6 + $0x774] ss:$8 sps:$4 sm:$0xff]  }
 0x430   :  { %4883 = vmatpush1.bf16.msra.mxu1 %v6130_v29  ;;  %4914 = vmatprep.mubr.bf16.mxu1 %v3085_v51  ;;  %v6196_v29 = vld [vmem:[#allocation6 + $0x760] ss:$8 sps:$4 sm:$0xff]   ;;  %v6204_v51 = vld [vmem:[#allocation6 + $0x784] ss:$8 sps:$4 sm:$0xff]  }
 0x431   :  { %4884 = vmatprep.subr.bf16.mxu1 %v6135_v50  ;;  %v6199_v50 = vld [vmem:[#allocation6 + $0x770] ss:$8 sps:$4 sm:$0xff]  }
 0x434   :  { %4885 = vmatpush1.bf16.msra.mxu1 %v6133_v52  ;;  %v6202_v52 = vld [vmem:[#allocation6 + $0x780] ss:$8 sps:$4 sm:$0xff]  }
 0x435   :  { %4886 = vmatprep.subr.bf16.mxu1 %v6138_v53  ;;  %v6207_v53 = vld [vmem:[#allocation6 + $0x794] ss:$8 sps:$4 sm:$0xff]  }
 0x438   :  { %4887 = vmatpush1.bf16.msra.mxu1 %v6136_v43  ;;  %v6205_v43 = vld [vmem:[#allocation6 + $0x790] ss:$8 sps:$4 sm:$0xff]  }
 0x439   :  { %4888 = vmatprep.subr.bf16.mxu1 %v6141_v55  ;;  %v6210_v55 = vld [vmem:[#allocation6 + $0x7a4] ss:$8 sps:$4 sm:$0xff]  }
 0x43c   :  { %4889 = vmatpush1.bf16.msra.mxu1 %v6139_v56  ;;  %v6208_v56 = vld [vmem:[#allocation6 + $0x7a0] ss:$8 sps:$4 sm:$0xff]  }
 0x43d   :  { %4890 = vmatprep.subr.bf16.mxu1 %v6144_v57  ;;  %v6213_v57 = vld [vmem:[#allocation6 + $0x7b4] ss:$8 sps:$4 sm:$0xff]  }
 0x440   :  { %4891 = vmatpush1.bf16.msra.mxu1 %v6142_v58  ;;  %v6211_v58 = vld [vmem:[#allocation6 + $0x7b0] ss:$8 sps:$4 sm:$0xff]  }
 0x441   :  { %4892 = vmatprep.subr.bf16.mxu1 %v6147_v47  ;;  %v6216_v47 = vld [vmem:[#allocation6 + $0x7c4] ss:$8 sps:$4 sm:$0xff]  }
 0x444   :  { %4893 = vmatpush1.bf16.msra.mxu1 %v6145_v59  ;;  %v6214_v59 = vld [vmem:[#allocation6 + $0x7c0] ss:$8 sps:$4 sm:$0xff]  }
 0x445   :  { %4894 = vmatprep.subr.bf16.mxu1 %v6150_v45  ;;  %v2919_v45 = vrot.slane %v6566_v23, %v6569_v26 }
 0x448   :  { %4895 = vmatpush1.bf16.msra.mxu1 %v6148_v61  ;;  %v6219_v61 = vld [vmem:[#allocation6 + $0x7d4] ss:$8 sps:$4 sm:$0xff]  }
 0x449   :  { %4896 = vmatprep.subr.bf16.mxu1 %v6153_v62  ;;  %v6217_v62 = vld [vmem:[#allocation6 + $0x7d0] ss:$8 sps:$4 sm:$0xff]  }
 0x44c   :  { %4897 = vmatpush1.bf16.msra.mxu1 %v6151_v63  ;;  %v2954_v63 = vmul.f32 %v2919_v45, %v6613_v3  ;;  %v3344_v3 = vld [vmem:[%s6652_s9] sm:$0x3] }
 0x44d   :  { %4898 = vmatprep.subr.bf16.mxu1 %v6156_v0  ;;  %v3019_v0 = vrot.slane %v6579_v31, %v6569_v26  ;;  %v3349_v26 = vrot.slane %v3344_v3, %v6471_v4  ;;  %v3353_v31 = vrot.slane %v3344_v3, %v6477_v6 }
 0x450   :  { %4899 = vmatpush1.bf16.msra.mxu1 %v6154_v1  ;;  %v6222_v1 = vld [vmem:[#allocation6 + $0x7e4] ss:$8 sps:$4 sm:$0xff]  }
 0x451   :  { %4900 = vmatprep.subr.bf16.mxu1 %v6159_v2  ;;  %v6220_v2 = vld [vmem:[#allocation6 + $0x7e0] ss:$8 sps:$4 sm:$0xff]  }
 0x454   :  { %4901 = vmatpush1.bf16.msra.mxu1 %v6157_v5  ;;  %v3054_v5 = vadd.f32 %v3019_v0, %v2954_v63 }
 0x455   :  { %4902 = vmatprep.subr.bf16.mxu1 %v6162_v7  ;;  %v6225_v7 = vld [vmem:[#allocation6 + $0x7f4] ss:$8 sps:$4 sm:$0xff]  }
 0x458   :  { %4903 = vmatpush1.bf16.msra.mxu1 %v6160_v8  ;;  %v6223_v8 = vld [vmem:[#allocation6 + $0x7f0] ss:$8 sps:$4 sm:$0xff]  }
 0x459   :  { %4904 = vmatprep.subr.bf16.mxu1 %v6165_v9  ;;  %v3070_v9 = vmax.f32 %v3054_v5, 0.0 }
 0x45b   :  { %v3086_v23 = vpack.c.bf16 %v3070_v9, %v3070_v9 }
 0x45c   :  { %4905 = vmatpush1.bf16.msra.mxu1 %v6163_v10 }
 0x45d   :  { %4906 = vmatprep.subr.bf16.mxu1 %v6168_v11 }
 0x460   :  { %4907 = vmatpush1.bf16.msra.mxu1 %v6166_v12 }
 0x461   :  { %4908 = vmatprep.subr.bf16.mxu1 %v6171_v35 }
 0x464   :  { %4909 = vmatpush1.bf16.msra.mxu1 %v6169_v15 }
 0x465   :  { %4910 = vmatprep.subr.bf16.mxu1 %v6174_v20 }
 0x468   :  { %4911 = vmatpush1.bf16.msra.mxu1 %v6172_v24 }
 0x469   :  { %4912 = vmatprep.subr.bf16.mxu1 %v6177_v27 }
 0x46c   :  { %4913 = vmatpush1.bf16.msra.mxu1 %v6175_v33 }
 0x46d   :  { %4923 = vmatprep.subr.bf16.mxu1 %v6180_v54 }
 0x46f   :  { %4915 = vmatmul.mubr.bf16.vlgmr.msra.gmra.mrb[8].mxu1 %v3084_v18 }
 0x470   :  { %4924 = vmatpush1.bf16.msra.mxu1 %v6178_v28  ;;  %4955 = vmatprep.mubr.bf16.mxu1 %v3087_v39 }
 0x471   :  { %4925 = vmatprep.subr.bf16.mxu1 %v6183_v38 }
 0x474   :  { %4926 = vmatpush1.bf16.msra.mxu1 %v6181_v19 }
 0x475   :  { %4927 = vmatprep.subr.bf16.mxu1 %v6186_v41 }
 0x478   :  { %4928 = vmatpush1.bf16.msra.mxu1 %v6184_v42 }
 0x479   :  { %4929 = vmatprep.subr.bf16.mxu1 %v6189_v40 }
 0x47c   :  { %4930 = vmatpush1.bf16.msra.mxu1 %v6187_v46 }
 0x47d   :  { %4931 = vmatprep.subr.bf16.mxu1 %v6192_v48 }
 0x480   :  { %4932 = vmatpush1.bf16.msra.mxu1 %v6190_v44 }
 0x481   :  { %4933 = vmatprep.subr.bf16.mxu1 %v6195_v36 }
 0x484   :  { %4934 = vmatpush1.bf16.msra.mxu1 %v6193_v60 }
 0x485   :  { %4935 = vmatprep.subr.bf16.mxu1 %v6198_v30 }
 0x488   :  { %4936 = vmatpush1.bf16.msra.mxu1 %v6196_v29 }
 0x489   :  { %4937 = vmatprep.subr.bf16.mxu1 %v6201_v49 }
 0x48c   :  { %4938 = vmatpush1.bf16.msra.mxu1 %v6199_v50 }
 0x48d   :  { %4939 = vmatprep.subr.bf16.mxu1 %v6204_v51 }
 0x490   :  { %4940 = vmatpush1.bf16.msra.mxu1 %v6202_v52 }
 0x491   :  { %4941 = vmatprep.subr.bf16.mxu1 %v6207_v53 }
 0x494   :  { %4942 = vmatpush1.bf16.msra.mxu1 %v6205_v43 }
 0x495   :  { %4943 = vmatprep.subr.bf16.mxu1 %v6210_v55 }
 0x498   :  { %4944 = vmatpush1.bf16.msra.mxu1 %v6208_v56 }
 0x499   :  { %4945 = vmatprep.subr.bf16.mxu1 %v6213_v57 }
 0x49c   :  { %4946 = vmatpush1.bf16.msra.mxu1 %v6211_v58 }
 0x49d   :  { %4947 = vmatprep.subr.bf16.mxu1 %v6216_v47 }
 0x4a0   :  { %4948 = vmatpush1.bf16.msra.mxu1 %v6214_v59 }
 0x4a1   :  { %4949 = vmatprep.subr.bf16.mxu1 %v6219_v61 }
 0x4a4   :  { %4950 = vmatpush1.bf16.msra.mxu1 %v6217_v62 }
 0x4a5   :  { %4951 = vmatprep.subr.bf16.mxu1 %v6222_v1 }
 0x4a8   :  { %4952 = vmatpush1.bf16.msra.mxu1 %v6220_v2 }
 0x4a9   :  { %4953 = vmatprep.subr.bf16.mxu1 %v6225_v7 }
 0x4ac   :  { %4954 = vmatpush1.bf16.msra.mxu1 %v6223_v8 }
 0x4af   :  { %4956 = vmatmul.mubr.bf16.vlgmr.msra.gmra.mrb[8].mxu1 %v3086_v23 }
 0x582   :  { %v4957_v10 = vpop.f32.mrb[8].mxu1 }
 0x583   :  { %v5631_v11 = vadd.f32 %v4957_v10, %v3349_v26  ;;  %v4959_v12 = vpop.f32.mrb[9].mxu1 }
 0x584   :  { %v5632_v13 = vadd.f32 %v4959_v12, %v3353_v31  ;;  %v4961_v35 = vpop.f32.mrb[10].mxu1 }
 0x585   :  { %4964 = vst [vmem:[%s6654_s11] sm:$0xff] %v5631_v11  ;;  %v4962_v14 = vpop.f32.mrb[11].mxu1 }
 0x586   :  { %4965 = vst [vmem:[%s6654_s11 + $0x8] sm:$0xff] %v5632_v13 }
 0x587   :  { %4974 = vsyncpa [#allocation3], 1 }
 0x588   :  { %4975 = vsyncpa [#allocation5], 1 }

</bundles_post_ra>
